<compile_context>
chip_gen: v7x
topology: tpu7x:2x2x1
jax: 0.10.0
libtpu: 0.0.40
codegen_flags: <defaults>
</compile_context>

<pallas_src>
import functools

import jax
import jax.numpy as jnp
from jax.experimental import pallas as pl
from jax.experimental.pallas import tpu as pltpu


# ---------------------------------------------------------------------------
# Pallas kernel: memory projection + decoder layer + GroupFC head, fully fused
# ---------------------------------------------------------------------------
def _layernorm(x, gamma, beta, eps):
    # x: (N, D) f32; biased variance, as in torch.nn.LayerNorm
    mu = jnp.mean(x, axis=-1, keepdims=True)
    xc = x - mu
    var = jnp.mean(xc * xc, axis=-1, keepdims=True)
    return xc * jax.lax.rsqrt(var + eps) * gamma + beta


def mldecoder_kernel(x_sp_ref, q_emb_ref,
                     we_ref, be_ref,
                     wq_ref, bq_ref, wkv_ref, bkv_ref,
                     wo_ref, bo_ref,
                     ln1w_ref, ln1b_ref,
                     ln2w_ref, ln2b_ref,
                     ln3w_ref, ln3b_ref,
                     w1_ref, b1_ref, w2_ref, b2_ref,
                     dp_ref, gbias_ref,
                     out_ref, *, nhead, eps):
    K, D = q_emb_ref.shape            # queries (embed_len_decoder), d_model
    S = x_sp_ref.shape[1]             # spatial tokens
    dh = D // nhead
    bf16 = jnp.bfloat16
    f32 = jnp.float32

    def _ld(ref):                     # small f32 param (bias / LN affine)
        return ref[...].astype(f32)

    # ---- memory = relu(embed_standart(x_spatial))  (fused producer) --------
    x_sp = x_sp_ref[0]                                                  # (S, C) bf16
    mem_f = jnp.dot(x_sp, we_ref[...], preferred_element_type=f32) + _ld(be_ref)
    mem = jnp.maximum(mem_f, 0.0).astype(bf16)                          # (S, D)

    # ---- tgt = tgt + dropout1(tgt) ; LayerNorm1  (f32 VPU math) ------------
    t = q_emb_ref[...].astype(f32)                                      # (K, D)
    x = _layernorm(t + t, _ld(ln1w_ref), _ld(ln1b_ref), eps)            # (K, D) f32
    x_bf = x.astype(bf16)

    # ---- multi-head attention: q from x, k/v from memory -------------------
    # (1/sqrt(dh) attention scale already folded into wq/bq in the wrapper)
    q = jnp.dot(x_bf, wq_ref[...], preferred_element_type=f32) + _ld(bq_ref)
    kv = jnp.dot(mem, wkv_ref[...], preferred_element_type=f32) + _ld(bkv_ref)
    k = kv[:, :D]                                                       # (S, D)
    v = kv[:, D:]                                                       # (S, D)

    qh = q.reshape(K, nhead, dh).astype(bf16)
    kh = k.reshape(S, nhead, dh).astype(bf16)
    vh = v.reshape(S, nhead, dh).astype(bf16)

    # one batched contraction per stage (no per-head loop, no concatenate)
    s = jnp.einsum("khd,shd->hks", qh, kh, preferred_element_type=f32)  # (H, K, S)
    s = s - jnp.max(s, axis=-1, keepdims=True)
    p = jnp.exp(s)
    p = p * pl.reciprocal(jnp.sum(p, axis=-1, keepdims=True), approx=True)
    attn = jnp.einsum("hks,shd->khd", p.astype(bf16), vh,
                      preferred_element_type=f32).reshape(K, D)
    attn = jnp.dot(attn.astype(bf16), wo_ref[...],
                   preferred_element_type=f32) + _ld(bo_ref)

    # ---- residual + LayerNorm2 ----------------------------------------------
    x = _layernorm(x + attn, _ld(ln2w_ref), _ld(ln2b_ref), eps)

    # ---- feed-forward --------------------------------------------------------
    h1 = jnp.dot(x.astype(bf16), w1_ref[...], preferred_element_type=f32) + _ld(b1_ref)
    h1 = jnp.maximum(h1, 0.0)                                           # relu
    y = jnp.dot(h1.astype(bf16), w2_ref[...], preferred_element_type=f32) + _ld(b2_ref)

    # ---- residual + LayerNorm3 -> decoder output h (K, D) f32 ---------------
    h = _layernorm(x + y, _ld(ln3w_ref), _ld(ln3b_ref), eps)

    # ---- GroupFC head (fused): out[k, f] = sum_d h[k, d] * dp[k, f, d] + bias
    # dp_ref is (K, F, D) (lane-dense reduce axis); f32 VPU mul + XLU lane sum.
    prod = h[:, None, :] * dp_ref[...]                                  # (K, F, D)
    logits_kf = jnp.sum(prod, axis=-1) + gbias_ref[...]                 # (K, F)
    out_ref[0] = logits_kf.astype(out_ref.dtype)


# ---------------------------------------------------------------------------
# Wrapper: weight repacking (transpose / fuse / scale / bf16) + pallas_call
# ---------------------------------------------------------------------------
def ml_decoder(x, params, *, nhead=8, eps=1e-5, num_classes):
    """x: (B, C, H, W) features -> logits (B, num_classes)."""
    B, C, H, W = x.shape
    S = H * W
    D = params["w_e"].shape[0]
    FF = params["w1"].shape[0]
    K = params["q_emb"].shape[0]
    F = params["dup_pool"].shape[2]
    dh = D // nhead
    scale = dh ** -0.5
    bf16 = jnp.bfloat16
    f32 = jnp.float32

    # (B, C, H, W) -> (B, S, C); all decoder tensors stay batch-major, so no
    # seq-major (T, B, D) transposes exist anywhere downstream. Ship the
    # (largest) activation input to VMEM in bf16 to halve its DMA bytes.
    x_sp = jnp.transpose(x.reshape(B, C, S), (0, 2, 1)).astype(bf16)

    # Pre-transpose / fuse weights once at trace time; MXU operands in bf16.
    w_in, b_in = params["w_in"], params["b_in"]
    wq_t = (w_in[:D].T * scale).astype(bf16)                              # (D, D), scale folded
    bq = (b_in[:D] * scale).reshape(1, D).astype(f32)
    wkv_t = jnp.concatenate([w_in[D:2 * D].T, w_in[2 * D:].T], 1).astype(bf16)  # (D, 2D)

    # GroupFC weights transposed to (K, F, D) for a lane-dense in-kernel
    # reduce; class bias zero-padded to (K, F) so the kernel can add it.
    dp_t = jnp.transpose(params["dup_pool"], (0, 2, 1)).astype(f32)       # (K, F, D)
    gbias = jnp.zeros((K * F,), f32).at[:num_classes].set(
        params["dup_bias"].astype(f32)).reshape(K, F)

    args = (
        x_sp,                                                             # (B,S,C) bf16
        params["q_emb"],                                                  # (K,D)  f32
        params["w_e"].T.astype(bf16), params["b_e"].reshape(1, D),
        wq_t, bq,
        wkv_t, b_in[D:].reshape(1, 2 * D),
        params["w_out"].T.astype(bf16), params["b_out"].reshape(1, D),
        params["ln1_w"].reshape(1, D), params["ln1_b"].reshape(1, D),
        params["ln2_w"].reshape(1, D), params["ln2_b"].reshape(1, D),
        params["ln3_w"].reshape(1, D), params["ln3_b"].reshape(1, D),
        params["w1"].T.astype(bf16), params["b1"].reshape(1, FF),
        params["w2"].T.astype(bf16), params["b2"].reshape(1, D),
        dp_t, gbias,
    )

    def rep(shape):            # replicated weight: constant block across grid
        n = len(shape)
        return pl.BlockSpec(shape, lambda b, n=n: (0,) * n)

    in_specs = [
        pl.BlockSpec((1, S, C), lambda b: (b, 0, 0)),   # spatial features
        rep((K, D)),                                    # query embedding
        rep((C, D)), rep((1, D)),                       # embed_standart (w, b)
        rep((D, D)), rep((1, D)),                       # q projection (pre-scaled)
        rep((D, 2 * D)), rep((1, 2 * D)),               # fused [k|v] projection
        rep((D, D)), rep((1, D)),                       # attn out projection
        rep((1, D)), rep((1, D)),                       # norm1
        rep((1, D)), rep((1, D)),                       # norm2
        rep((1, D)), rep((1, D)),                       # norm3
        rep((D, FF)), rep((1, FF)),                     # linear1
        rep((FF, D)), rep((1, D)),                      # linear2
        rep((K, F, D)), rep((K, F)),                    # GroupFC weights + padded bias
    ]

    out_ext = pl.pallas_call(
        functools.partial(mldecoder_kernel, nhead=nhead, eps=eps),
        out_shape=jax.ShapeDtypeStruct((B, K, F), jnp.float32),
        grid=(B,),
        in_specs=in_specs,
        out_specs=pl.BlockSpec((1, K, F), lambda b: (b, 0, 0)),
        compiler_params=pltpu.CompilerParams(
            dimension_semantics=("parallel",),        # megacore / v7x dual-TC
            vmem_limit_bytes=48 * 1024 * 1024),       # explicit (v7x-safe) budget
    )(*args)

    # Bias was already added in-kernel (zero-padded); only flatten + slice left.
    return out_ext.reshape(B, K * F)[:, :num_classes]


# ---------------------------------------------------------------------------
# Pure-JAX f32 reference (mirrors the PyTorch module math exactly)
# ---------------------------------------------------------------------------
def reference(x, p, *, nhead=8, eps=1e-5, num_classes):
    B, C, H, W = x.shape
    S = H * W
    D = p["w_e"].shape[0]
    K = p["q_emb"].shape[0]
    dh = D // nhead

    def ln(z, g, b):
        mu = z.mean(-1, keepdims=True)
        var = ((z - mu) ** 2).mean(-1, keepdims=True)
        return (z - mu) / jnp.sqrt(var + eps) * g + b

    xs = jnp.transpose(x.reshape(B, C, S), (0, 2, 1))                 # (B,S,C)
    mem = jax.nn.relu(xs @ p["w_e"].T + p["b_e"])                     # (B,S,D)
    memory = jnp.transpose(mem, (1, 0, 2))                            # (S,B,D)
    tgt = jnp.broadcast_to(p["q_emb"][:, None, :], (K, B, D))         # (K,B,D)

    t = ln(tgt + tgt, p["ln1_w"], p["ln1_b"])
    w_in, b_in = p["w_in"], p["b_in"]
    q = t @ w_in[:D].T + b_in[:D]
    k = memory @ w_in[D:2 * D].T + b_in[D:2 * D]
    v = memory @ w_in[2 * D:].T + b_in[2 * D:]
    q = q.reshape(K, B, nhead, dh) / jnp.sqrt(jnp.float32(dh))
    kh = k.reshape(S, B, nhead, dh)
    vh = v.reshape(S, B, nhead, dh)
    s = jnp.einsum("tbhd,sbhd->bhts", q, kh)
    a = jax.nn.softmax(s, axis=-1)
    att = jnp.einsum("bhts,sbhd->tbhd", a, vh).reshape(K, B, D)
    att = att @ p["w_out"].T + p["b_out"]
    t = ln(t + att, p["ln2_w"], p["ln2_b"])
    ff = jax.nn.relu(t @ p["w1"].T + p["b1"]) @ p["w2"].T + p["b2"]
    t = ln(t + ff, p["ln3_w"], p["ln3_b"])

    h = jnp.transpose(t, (1, 0, 2))                                   # (B,K,D)
    out_extrap = jnp.einsum("bkd,kdf->bkf", h, p["dup_pool"])
    return out_extrap.reshape(B, -1)[:, :num_classes] + p["dup_bias"]


# ---------------------------------------------------------------------------
if __name__ == "__main__":
    # Small shapes consistent with MLDecoder (scaled down, lane-dense D):
    # batch=2, initial_num_features=64, 4x4 spatial (S=16),
    # decoder_embedding D=128, nhead=8, dim_feedforward=256,
    # num_of_groups K=8, num_classes=20 -> duplicate_factor=3.
    B, C, H, W = 2, 64, 4, 4
    D, NHEAD, FF = 128, 8, 256
    K = 8
    NUM_CLASSES = 20
    DUP_F = int(NUM_CLASSES / K + 0.999)          # = 3, as in the torch module
    EPS = 1e-5

    key = jax.random.PRNGKey(0)
    ks = jax.random.split(key, 16)
    f32 = jnp.float32

    params = {
        "w_e":   0.05 * jax.random.normal(ks[0], (D, C), f32),      # embed_standart
        "b_e":   0.05 * jax.random.normal(ks[1], (D,), f32),
        "q_emb": jax.random.normal(ks[2], (K, D), f32),             # query_embed.weight
        "w_in":  0.05 * jax.random.normal(ks[3], (3 * D, D), f32),  # MHA in_proj
        "b_in":  0.02 * jax.random.normal(ks[4], (3 * D,), f32),
        "w_out": 0.05 * jax.random.normal(ks[5], (D, D), f32),      # MHA out_proj
        "b_out": 0.02 * jax.random.normal(ks[6], (D,), f32),
        "ln1_w": jnp.ones((D,), f32),  "ln1_b": jnp.zeros((D,), f32),
        "ln2_w": jnp.ones((D,), f32),  "ln2_b": jnp.zeros((D,), f32),
        "ln3_w": jnp.ones((D,), f32),  "ln3_b": jnp.zeros((D,), f32),
        "w1":    0.05 * jax.random.normal(ks[7], (FF, D), f32),     # linear1
        "b1":    0.02 * jax.random.normal(ks[8], (FF,), f32),
        "w2":    0.05 * jax.random.normal(ks[9], (D, FF), f32),     # linear2
        "b2":    0.02 * jax.random.normal(ks[10], (D,), f32),
        # GroupFC parameters (xavier-normal / zero init, as in MLDecoder)
        "dup_pool": (2.0 / (D + DUP_F)) ** 0.5
                    * jax.random.normal(ks[11], (K, D, DUP_F), f32),
        "dup_bias": jnp.zeros((NUM_CLASSES,), f32),
    }

    x = jax.random.normal(ks[12], (B, C, H, W), f32)

    run = jax.jit(functools.partial(ml_decoder, nhead=NHEAD, eps=EPS,
                                    num_classes=NUM_CLASSES))
    out = jax.block_until_ready(run(x, params))

    ref = jax.block_until_ready(
        reference(x, params, nhead=NHEAD, eps=EPS, num_classes=NUM_CLASSES))

    assert out.shape == (B, NUM_CLASSES), out.shape
    max_err = float(jnp.max(jnp.abs(out - ref)))
    # bf16 MXU operands vs. a pure-f32 reference -> percent-level tolerance;
    # real bugs (wrong weight layout / missing residual) would produce O(1)
    # errors on these O(1) logits.
    assert jnp.allclose(out, ref, atol=5e-2, rtol=5e-2), max_err

    print("KERNEL_OK")
</pallas_src>

<mosaic_0001>
module attributes {stable_mosaic.version = 11 : i64} {
  func.func @mldecoder_kernel(%arg0: i32, %arg1: memref<1x16x64xbf16, #tpu.memory_space<vmem>>, %arg2: memref<8x128xf32, #tpu.memory_space<vmem>>, %arg3: memref<64x128xbf16, #tpu.memory_space<vmem>>, %arg4: memref<1x128xf32, #tpu.memory_space<vmem>>, %arg5: memref<128x128xbf16, #tpu.memory_space<vmem>>, %arg6: memref<1x128xf32, #tpu.memory_space<vmem>>, %arg7: memref<128x256xbf16, #tpu.memory_space<vmem>>, %arg8: memref<1x256xf32, #tpu.memory_space<vmem>>, %arg9: memref<128x128xbf16, #tpu.memory_space<vmem>>, %arg10: memref<1x128xf32, #tpu.memory_space<vmem>>, %arg11: memref<1x128xf32, #tpu.memory_space<vmem>>, %arg12: memref<1x128xf32, #tpu.memory_space<vmem>>, %arg13: memref<1x128xf32, #tpu.memory_space<vmem>>, %arg14: memref<1x128xf32, #tpu.memory_space<vmem>>, %arg15: memref<1x128xf32, #tpu.memory_space<vmem>>, %arg16: memref<1x128xf32, #tpu.memory_space<vmem>>, %arg17: memref<128x256xbf16, #tpu.memory_space<vmem>>, %arg18: memref<1x256xf32, #tpu.memory_space<vmem>>, %arg19: memref<256x128xbf16, #tpu.memory_space<vmem>>, %arg20: memref<1x128xf32, #tpu.memory_space<vmem>>, %arg21: memref<8x3x128xf32, #tpu.memory_space<vmem>>, %arg22: memref<8x3xf32, #tpu.memory_space<vmem>>, %arg23: memref<1x8x3xf32, #tpu.memory_space<vmem>>) attributes {dimension_semantics = [#tpu.dimension_semantics<parallel>], iteration_bounds = array<i64: 2>, scalar_prefetch = 0 : i64, scratch_operands = 0 : i64, tpu.core_type = #tpu.core_type<tc>, window_params = [{transform_indices = @transform_0, window_bounds = array<i64: 1, 16, 64>}, {pipeline_mode = #tpu.pipeline_mode<synchronous>, transform_indices = @transform_1, window_bounds = array<i64: 8, 128>}, {pipeline_mode = #tpu.pipeline_mode<synchronous>, transform_indices = @transform_2, window_bounds = array<i64: 64, 128>}, {pipeline_mode = #tpu.pipeline_mode<synchronous>, transform_indices = @transform_3, window_bounds = array<i64: 1, 128>}, {pipeline_mode = #tpu.pipeline_mode<synchronous>, transform_indices = @transform_4, window_bounds = array<i64: 128, 128>}, {pipeline_mode = #tpu.pipeline_mode<synchronous>, transform_indices = @transform_5, window_bounds = array<i64: 1, 128>}, {pipeline_mode = #tpu.pipeline_mode<synchronous>, transform_indices = @transform_6, window_bounds = array<i64: 128, 256>}, {pipeline_mode = #tpu.pipeline_mode<synchronous>, transform_indices = @transform_7, window_bounds = array<i64: 1, 256>}, {pipeline_mode = #tpu.pipeline_mode<synchronous>, transform_indices = @transform_8, window_bounds = array<i64: 128, 128>}, {pipeline_mode = #tpu.pipeline_mode<synchronous>, transform_indices = @transform_9, window_bounds = array<i64: 1, 128>}, {pipeline_mode = #tpu.pipeline_mode<synchronous>, transform_indices = @transform_10, window_bounds = array<i64: 1, 128>}, {pipeline_mode = #tpu.pipeline_mode<synchronous>, transform_indices = @transform_11, window_bounds = array<i64: 1, 128>}, {pipeline_mode = #tpu.pipeline_mode<synchronous>, transform_indices = @transform_12, window_bounds = array<i64: 1, 128>}, {pipeline_mode = #tpu.pipeline_mode<synchronous>, transform_indices = @transform_13, window_bounds = array<i64: 1, 128>}, {pipeline_mode = #tpu.pipeline_mode<synchronous>, transform_indices = @transform_14, window_bounds = array<i64: 1, 128>}, {pipeline_mode = #tpu.pipeline_mode<synchronous>, transform_indices = @transform_15, window_bounds = array<i64: 1, 128>}, {pipeline_mode = #tpu.pipeline_mode<synchronous>, transform_indices = @transform_16, window_bounds = array<i64: 128, 256>}, {pipeline_mode = #tpu.pipeline_mode<synchronous>, transform_indices = @transform_17, window_bounds = array<i64: 1, 256>}, {pipeline_mode = #tpu.pipeline_mode<synchronous>, transform_indices = @transform_18, window_bounds = array<i64: 256, 128>}, {pipeline_mode = #tpu.pipeline_mode<synchronous>, transform_indices = @transform_19, window_bounds = array<i64: 1, 128>}, {pipeline_mode = #tpu.pipeline_mode<synchronous>, transform_indices = @transform_20, window_bounds = array<i64: 8, 3, 128>}, {pipeline_mode = #tpu.pipeline_mode<synchronous>, transform_indices = @transform_21, window_bounds = array<i64: 8, 3>}, {transform_indices = @transform_22, window_bounds = array<i64: 1, 8, 3>}]} {
    %c0 = arith.constant 0 : index
    %c0_0 = arith.constant 0 : index
    %c0_1 = arith.constant 0 : index
    %0 = vector.load %arg1[%c0, %c0_0, %c0_1] : memref<1x16x64xbf16, #tpu.memory_space<vmem>>, vector<1x16x64xbf16>
    %1 = vector.shape_cast %0 : vector<1x16x64xbf16> to vector<16x64xbf16>
    %c0_2 = arith.constant 0 : index
    %c0_3 = arith.constant 0 : index
    %2 = vector.load %arg3[%c0_2, %c0_3] : memref<64x128xbf16, #tpu.memory_space<vmem>>, vector<64x128xbf16>
    %cst = arith.constant dense<0.000000e+00> : vector<16x128xf32>
    %3 = tpu.matmul %1, %2, %cst {dimension_numbers = #tpu.dot_dimension_numbers<[1], [0], [0], [1], [0, 0, 1, 1], [], []>} : vector<16x64xbf16>, vector<64x128xbf16>, vector<16x128xf32> -> vector<16x128xf32>
    %c0_4 = arith.constant 0 : index
    %c0_5 = arith.constant 0 : index
    %4 = vector.load %arg4[%c0_4, %c0_5] : memref<1x128xf32, #tpu.memory_space<vmem>>, vector<1x128xf32>
    %5 = vector.broadcast %4 : vector<1x128xf32> to vector<16x128xf32>
    %6 = arith.addf %3, %5 : vector<16x128xf32>
    %cst_6 = arith.constant 0.000000e+00 : f32
    %7 = vector.broadcast %cst_6 : f32 to vector<16x128xf32>
    %8 = arith.maximumf %6, %7 : vector<16x128xf32>
    %9 = arith.truncf %8 : vector<16x128xf32> to vector<16x128xbf16>
    %c0_7 = arith.constant 0 : index
    %c0_8 = arith.constant 0 : index
    %10 = vector.load %arg2[%c0_7, %c0_8] : memref<8x128xf32, #tpu.memory_space<vmem>>, vector<8x128xf32>
    %11 = arith.addf %10, %10 : vector<8x128xf32>
    %c0_9 = arith.constant 0 : index
    %c0_10 = arith.constant 0 : index
    %12 = vector.load %arg11[%c0_9, %c0_10] : memref<1x128xf32, #tpu.memory_space<vmem>>, vector<1x128xf32>
    %c0_11 = arith.constant 0 : index
    %c0_12 = arith.constant 0 : index
    %13 = vector.load %arg12[%c0_11, %c0_12] : memref<1x128xf32, #tpu.memory_space<vmem>>, vector<1x128xf32>
    %cst_13 = arith.constant dense<0.000000e+00> : vector<8xf32>
    %14 = vector.multi_reduction <add>, %11, %cst_13 [1] : vector<8x128xf32> to vector<8xf32>
    %15 = vector.shape_cast %14 : vector<8xf32> to vector<8x1xf32>
    %cst_14 = arith.constant 1.280000e+02 : f32
    %16 = vector.broadcast %cst_14 : f32 to vector<8x1xf32>
    %17 = arith.divf %15, %16 : vector<8x1xf32>
    %18 = vector.broadcast %17 : vector<8x1xf32> to vector<8x128xf32>
    %19 = arith.subf %11, %18 : vector<8x128xf32>
    %20 = arith.mulf %19, %19 : vector<8x128xf32>
    %cst_15 = arith.constant dense<0.000000e+00> : vector<8xf32>
    %21 = vector.multi_reduction <add>, %20, %cst_15 [1] : vector<8x128xf32> to vector<8xf32>
    %22 = vector.shape_cast %21 : vector<8xf32> to vector<8x1xf32>
    %cst_16 = arith.constant 1.280000e+02 : f32
    %23 = vector.broadcast %cst_16 : f32 to vector<8x1xf32>
    %24 = arith.divf %22, %23 : vector<8x1xf32>
    %cst_17 = arith.constant 9.99999974E-6 : f32
    %25 = vector.broadcast %cst_17 : f32 to vector<8x1xf32>
    %26 = arith.addf %24, %25 : vector<8x1xf32>
    %27 = math.rsqrt %26 : vector<8x1xf32>
    %28 = vector.broadcast %27 : vector<8x1xf32> to vector<8x128xf32>
    %29 = arith.mulf %19, %28 : vector<8x128xf32>
    %30 = vector.broadcast %12 : vector<1x128xf32> to vector<8x128xf32>
    %31 = arith.mulf %29, %30 : vector<8x128xf32>
    %32 = vector.broadcast %13 : vector<1x128xf32> to vector<8x128xf32>
    %33 = arith.addf %31, %32 : vector<8x128xf32>
    %34 = arith.truncf %33 : vector<8x128xf32> to vector<8x128xbf16>
    %c0_18 = arith.constant 0 : index
    %c0_19 = arith.constant 0 : index
    %35 = vector.load %arg5[%c0_18, %c0_19] : memref<128x128xbf16, #tpu.memory_space<vmem>>, vector<128x128xbf16>
    %cst_20 = arith.constant dense<0.000000e+00> : vector<8x128xf32>
    %36 = tpu.matmul %34, %35, %cst_20 {dimension_numbers = #tpu.dot_dimension_numbers<[1], [0], [0], [1], [0, 0, 1, 1], [], []>} : vector<8x128xbf16>, vector<128x128xbf16>, vector<8x128xf32> -> vector<8x128xf32>
    %c0_21 = arith.constant 0 : index
    %c0_22 = arith.constant 0 : index
    %37 = vector.load %arg6[%c0_21, %c0_22] : memref<1x128xf32, #tpu.memory_space<vmem>>, vector<1x128xf32>
    %38 = vector.broadcast %37 : vector<1x128xf32> to vector<8x128xf32>
    %39 = arith.addf %36, %38 : vector<8x128xf32>
    %c0_23 = arith.constant 0 : index
    %c0_24 = arith.constant 0 : index
    %40 = vector.load %arg7[%c0_23, %c0_24] : memref<128x256xbf16, #tpu.memory_space<vmem>>, vector<128x256xbf16>
    %cst_25 = arith.constant dense<0.000000e+00> : vector<16x256xf32>
    %41 = tpu.matmul %9, %40, %cst_25 {dimension_numbers = #tpu.dot_dimension_numbers<[1], [0], [0], [1], [0, 0, 1, 1], [], []>} : vector<16x128xbf16>, vector<128x256xbf16>, vector<16x256xf32> -> vector<16x256xf32>
    %c0_26 = arith.constant 0 : index
    %c0_27 = arith.constant 0 : index
    %42 = vector.load %arg8[%c0_26, %c0_27] : memref<1x256xf32, #tpu.memory_space<vmem>>, vector<1x256xf32>
    %43 = vector.broadcast %42 : vector<1x256xf32> to vector<16x256xf32>
    %44 = arith.addf %41, %43 : vector<16x256xf32>
    %45 = vector.extract_strided_slice %44 {offsets = [0, 0], sizes = [16, 128], strides = [1, 1]} : vector<16x256xf32> to vector<16x128xf32>
    %46 = vector.extract_strided_slice %44 {offsets = [0, 128], sizes = [16, 128], strides = [1, 1]} : vector<16x256xf32> to vector<16x128xf32>
    %47 = vector.shape_cast %39 : vector<8x128xf32> to vector<8x8x16xf32>
    %48 = arith.truncf %47 : vector<8x8x16xf32> to vector<8x8x16xbf16>
    %49 = vector.shape_cast %45 : vector<16x128xf32> to vector<16x8x16xf32>
    %50 = arith.truncf %49 : vector<16x8x16xf32> to vector<16x8x16xbf16>
    %51 = vector.shape_cast %46 : vector<16x128xf32> to vector<16x8x16xf32>
    %52 = arith.truncf %51 : vector<16x8x16xf32> to vector<16x8x16xbf16>
    "tpu.trace_start"() <{level = 10 : i32, message = "khd,shd->hks"}> : () -> ()
    %cst_28 = arith.constant dense<0.000000e+00> : vector<8x8x16xf32>
    %53 = tpu.matmul %48, %50, %cst_28 {dimension_numbers = #tpu.dot_dimension_numbers<[2], [2], [0], [0], [0, 1, 0, 0, 1, 0], [1], [1]>} : vector<8x8x16xbf16>, vector<16x8x16xbf16>, vector<8x8x16xf32> -> vector<8x8x16xf32>
    "tpu.trace_stop"() : () -> ()
    %cst_29 = arith.constant dense<0xFF800000> : vector<8x8xf32>
    %54 = vector.multi_reduction <maximumf>, %53, %cst_29 [2] : vector<8x8x16xf32> to vector<8x8xf32>
    %55 = vector.shape_cast %54 : vector<8x8xf32> to vector<8x8x1xf32>
    %56 = vector.broadcast %55 : vector<8x8x1xf32> to vector<8x8x16xf32>
    %57 = arith.subf %53, %56 : vector<8x8x16xf32>
    %58 = math.exp %57 : vector<8x8x16xf32>
    %cst_30 = arith.constant dense<0.000000e+00> : vector<8x8xf32>
    %59 = vector.multi_reduction <add>, %58, %cst_30 [2] : vector<8x8x16xf32> to vector<8x8xf32>
    %60 = vector.shape_cast %59 : vector<8x8xf32> to vector<8x8x1xf32>
    %61 = tpu.reciprocal %60 {approx = true} : vector<8x8x1xf32> -> vector<8x8x1xf32>
    %62 = vector.broadcast %61 : vector<8x8x1xf32> to vector<8x8x16xf32>
    %63 = arith.mulf %58, %62 : vector<8x8x16xf32>
    %64 = arith.truncf %63 : vector<8x8x16xf32> to vector<8x8x16xbf16>
    "tpu.trace_start"() <{level = 10 : i32, message = "hks,shd->khd"}> : () -> ()
    %cst_31 = arith.constant dense<0.000000e+00> : vector<8x16x8xf32>
    %65 = tpu.matmul %52, %64, %cst_31 {dimension_numbers = #tpu.dot_dimension_numbers<[0], [2], [2], [1], [0, 1, 0, 2, 1, 1], [1], [0]>} : vector<16x8x16xbf16>, vector<8x8x16xbf16>, vector<8x16x8xf32> -> vector<8x16x8xf32>
    %66 = tpu.transpose %65, [2, 0, 1] : vector<8x16x8xf32> -> vector<8x8x16xf32>
    "tpu.trace_stop"() : () -> ()
    %67 = vector.shape_cast %66 : vector<8x8x16xf32> to vector<8x128xf32>
    %68 = arith.truncf %67 : vector<8x128xf32> to vector<8x128xbf16>
    %c0_32 = arith.constant 0 : index
    %c0_33 = arith.constant 0 : index
    %69 = vector.load %arg9[%c0_32, %c0_33] : memref<128x128xbf16, #tpu.memory_space<vmem>>, vector<128x128xbf16>
    %cst_34 = arith.constant dense<0.000000e+00> : vector<8x128xf32>
    %70 = tpu.matmul %68, %69, %cst_34 {dimension_numbers = #tpu.dot_dimension_numbers<[1], [0], [0], [1], [0, 0, 1, 1], [], []>} : vector<8x128xbf16>, vector<128x128xbf16>, vector<8x128xf32> -> vector<8x128xf32>
    %c0_35 = arith.constant 0 : index
    %c0_36 = arith.constant 0 : index
    %71 = vector.load %arg10[%c0_35, %c0_36] : memref<1x128xf32, #tpu.memory_space<vmem>>, vector<1x128xf32>
    %72 = vector.broadcast %71 : vector<1x128xf32> to vector<8x128xf32>
    %73 = arith.addf %70, %72 : vector<8x128xf32>
    %74 = arith.addf %33, %73 : vector<8x128xf32>
    %c0_37 = arith.constant 0 : index
    %c0_38 = arith.constant 0 : index
    %75 = vector.load %arg13[%c0_37, %c0_38] : memref<1x128xf32, #tpu.memory_space<vmem>>, vector<1x128xf32>
    %c0_39 = arith.constant 0 : index
    %c0_40 = arith.constant 0 : index
    %76 = vector.load %arg14[%c0_39, %c0_40] : memref<1x128xf32, #tpu.memory_space<vmem>>, vector<1x128xf32>
    %cst_41 = arith.constant dense<0.000000e+00> : vector<8xf32>
    %77 = vector.multi_reduction <add>, %74, %cst_41 [1] : vector<8x128xf32> to vector<8xf32>
    %78 = vector.shape_cast %77 : vector<8xf32> to vector<8x1xf32>
    %cst_42 = arith.constant 1.280000e+02 : f32
    %79 = vector.broadcast %cst_42 : f32 to vector<8x1xf32>
    %80 = arith.divf %78, %79 : vector<8x1xf32>
    %81 = vector.broadcast %80 : vector<8x1xf32> to vector<8x128xf32>
    %82 = arith.subf %74, %81 : vector<8x128xf32>
    %83 = arith.mulf %82, %82 : vector<8x128xf32>
    %cst_43 = arith.constant dense<0.000000e+00> : vector<8xf32>
    %84 = vector.multi_reduction <add>, %83, %cst_43 [1] : vector<8x128xf32> to vector<8xf32>
    %85 = vector.shape_cast %84 : vector<8xf32> to vector<8x1xf32>
    %cst_44 = arith.constant 1.280000e+02 : f32
    %86 = vector.broadcast %cst_44 : f32 to vector<8x1xf32>
    %87 = arith.divf %85, %86 : vector<8x1xf32>
    %cst_45 = arith.constant 9.99999974E-6 : f32
    %88 = vector.broadcast %cst_45 : f32 to vector<8x1xf32>
    %89 = arith.addf %87, %88 : vector<8x1xf32>
    %90 = math.rsqrt %89 : vector<8x1xf32>
    %91 = vector.broadcast %90 : vector<8x1xf32> to vector<8x128xf32>
    %92 = arith.mulf %82, %91 : vector<8x128xf32>
    %93 = vector.broadcast %75 : vector<1x128xf32> to vector<8x128xf32>
    %94 = arith.mulf %92, %93 : vector<8x128xf32>
    %95 = vector.broadcast %76 : vector<1x128xf32> to vector<8x128xf32>
    %96 = arith.addf %94, %95 : vector<8x128xf32>
    %97 = arith.truncf %96 : vector<8x128xf32> to vector<8x128xbf16>
    %c0_46 = arith.constant 0 : index
    %c0_47 = arith.constant 0 : index
    %98 = vector.load %arg17[%c0_46, %c0_47] : memref<128x256xbf16, #tpu.memory_space<vmem>>, vector<128x256xbf16>
    %cst_48 = arith.constant dense<0.000000e+00> : vector<8x256xf32>
    %99 = tpu.matmul %97, %98, %cst_48 {dimension_numbers = #tpu.dot_dimension_numbers<[1], [0], [0], [1], [0, 0, 1, 1], [], []>} : vector<8x128xbf16>, vector<128x256xbf16>, vector<8x256xf32> -> vector<8x256xf32>
    %c0_49 = arith.constant 0 : index
    %c0_50 = arith.constant 0 : index
    %100 = vector.load %arg18[%c0_49, %c0_50] : memref<1x256xf32, #tpu.memory_space<vmem>>, vector<1x256xf32>
    %101 = vector.broadcast %100 : vector<1x256xf32> to vector<8x256xf32>
    %102 = arith.addf %99, %101 : vector<8x256xf32>
    %cst_51 = arith.constant 0.000000e+00 : f32
    %103 = vector.broadcast %cst_51 : f32 to vector<8x256xf32>
    %104 = arith.maximumf %102, %103 : vector<8x256xf32>
    %105 = arith.truncf %104 : vector<8x256xf32> to vector<8x256xbf16>
    %c0_52 = arith.constant 0 : index
    %c0_53 = arith.constant 0 : index
    %106 = vector.load %arg19[%c0_52, %c0_53] : memref<256x128xbf16, #tpu.memory_space<vmem>>, vector<256x128xbf16>
    %cst_54 = arith.constant dense<0.000000e+00> : vector<8x128xf32>
    %107 = tpu.matmul %105, %106, %cst_54 {dimension_numbers = #tpu.dot_dimension_numbers<[1], [0], [0], [1], [0, 0, 1, 1], [], []>} : vector<8x256xbf16>, vector<256x128xbf16>, vector<8x128xf32> -> vector<8x128xf32>
    %c0_55 = arith.constant 0 : index
    %c0_56 = arith.constant 0 : index
    %108 = vector.load %arg20[%c0_55, %c0_56] : memref<1x128xf32, #tpu.memory_space<vmem>>, vector<1x128xf32>
    %109 = vector.broadcast %108 : vector<1x128xf32> to vector<8x128xf32>
    %110 = arith.addf %107, %109 : vector<8x128xf32>
    %111 = arith.addf %96, %110 : vector<8x128xf32>
    %c0_57 = arith.constant 0 : index
    %c0_58 = arith.constant 0 : index
    %112 = vector.load %arg15[%c0_57, %c0_58] : memref<1x128xf32, #tpu.memory_space<vmem>>, vector<1x128xf32>
    %c0_59 = arith.constant 0 : index
    %c0_60 = arith.constant 0 : index
    %113 = vector.load %arg16[%c0_59, %c0_60] : memref<1x128xf32, #tpu.memory_space<vmem>>, vector<1x128xf32>
    %cst_61 = arith.constant dense<0.000000e+00> : vector<8xf32>
    %114 = vector.multi_reduction <add>, %111, %cst_61 [1] : vector<8x128xf32> to vector<8xf32>
    %115 = vector.shape_cast %114 : vector<8xf32> to vector<8x1xf32>
    %cst_62 = arith.constant 1.280000e+02 : f32
    %116 = vector.broadcast %cst_62 : f32 to vector<8x1xf32>
    %117 = arith.divf %115, %116 : vector<8x1xf32>
    %118 = vector.broadcast %117 : vector<8x1xf32> to vector<8x128xf32>
    %119 = arith.subf %111, %118 : vector<8x128xf32>
    %120 = arith.mulf %119, %119 : vector<8x128xf32>
    %cst_63 = arith.constant dense<0.000000e+00> : vector<8xf32>
    %121 = vector.multi_reduction <add>, %120, %cst_63 [1] : vector<8x128xf32> to vector<8xf32>
    %122 = vector.shape_cast %121 : vector<8xf32> to vector<8x1xf32>
    %cst_64 = arith.constant 1.280000e+02 : f32
    %123 = vector.broadcast %cst_64 : f32 to vector<8x1xf32>
    %124 = arith.divf %122, %123 : vector<8x1xf32>
    %cst_65 = arith.constant 9.99999974E-6 : f32
    %125 = vector.broadcast %cst_65 : f32 to vector<8x1xf32>
    %126 = arith.addf %124, %125 : vector<8x1xf32>
    %127 = math.rsqrt %126 : vector<8x1xf32>
    %128 = vector.broadcast %127 : vector<8x1xf32> to vector<8x128xf32>
    %129 = arith.mulf %119, %128 : vector<8x128xf32>
    %130 = vector.broadcast %112 : vector<1x128xf32> to vector<8x128xf32>
    %131 = arith.mulf %129, %130 : vector<8x128xf32>
    %132 = vector.broadcast %113 : vector<1x128xf32> to vector<8x128xf32>
    %133 = arith.addf %131, %132 : vector<8x128xf32>
    %134 = vector.shape_cast %133 : vector<8x128xf32> to vector<8x1x128xf32>
    %c0_66 = arith.constant 0 : index
    %c0_67 = arith.constant 0 : index
    %c0_68 = arith.constant 0 : index
    %135 = vector.load %arg21[%c0_66, %c0_67, %c0_68] : memref<8x3x128xf32, #tpu.memory_space<vmem>>, vector<8x3x128xf32>
    %136 = vector.broadcast %134 : vector<8x1x128xf32> to vector<8x3x128xf32>
    %137 = arith.mulf %136, %135 : vector<8x3x128xf32>
    %cst_69 = arith.constant dense<0.000000e+00> : vector<8x3xf32>
    %138 = vector.multi_reduction <add>, %137, %cst_69 [2] : vector<8x3x128xf32> to vector<8x3xf32>
    %c0_70 = arith.constant 0 : index
    %c0_71 = arith.constant 0 : index
    %139 = vector.load %arg22[%c0_70, %c0_71] : memref<8x3xf32, #tpu.memory_space<vmem>>, vector<8x3xf32>
    %140 = arith.addf %138, %139 : vector<8x3xf32>
    %c0_72 = arith.constant 0 : index
    %c0_73 = arith.constant 0 : index
    %c0_74 = arith.constant 0 : index
    %141 = vector.load %arg23[%c0_72, %c0_73, %c0_74] : memref<1x8x3xf32, #tpu.memory_space<vmem>>, vector<1x8x3xf32>
    %142 = vector.shape_cast %141 : vector<1x8x3xf32> to vector<8x3xf32>
    %143 = vector.shape_cast %140 : vector<8x3xf32> to vector<1x8x3xf32>
    tpu.vector_store %arg23[%c0_72, %c0_73, %c0_74], %143 {strides = array<i32>} : memref<1x8x3xf32, #tpu.memory_space<vmem>>, vector<1x8x3xf32>,
    return
  }
  func.func @transform_0(%arg0: i32) -> (i32, i32, i32) {
    %c0_i32 = arith.constant 0 : i32
    %c0_i32_0 = arith.constant 0 : i32
    %c0_i32_1 = arith.constant 0 : i32
    return %arg0, %c0_i32, %c0_i32_0 : i32, i32, i32
  }
  func.func @transform_1(%arg0: i32) -> (i32, i32) {
    %c0_i32 = arith.constant 0 : i32
    %c0_i32_0 = arith.constant 0 : i32
    %c0_i32_1 = arith.constant 0 : i32
    return %c0_i32, %c0_i32_0 : i32, i32
  }
  func.func @transform_2(%arg0: i32) -> (i32, i32) {
    %c0_i32 = arith.constant 0 : i32
    %c0_i32_0 = arith.constant 0 : i32
    %c0_i32_1 = arith.constant 0 : i32
    return %c0_i32, %c0_i32_0 : i32, i32
  }
  func.func @transform_3(%arg0: i32) -> (i32, i32) {
    %c0_i32 = arith.constant 0 : i32
    %c0_i32_0 = arith.constant 0 : i32
    %c0_i32_1 = arith.constant 0 : i32
    return %c0_i32, %c0_i32_0 : i32, i32
  }
  func.func @transform_4(%arg0: i32) -> (i32, i32) {
    %c0_i32 = arith.constant 0 : i32
    %c0_i32_0 = arith.constant 0 : i32
    %c0_i32_1 = arith.constant 0 : i32
    return %c0_i32, %c0_i32_0 : i32, i32
  }
  func.func @transform_5(%arg0: i32) -> (i32, i32) {
    %c0_i32 = arith.constant 0 : i32
    %c0_i32_0 = arith.constant 0 : i32
    %c0_i32_1 = arith.constant 0 : i32
    return %c0_i32, %c0_i32_0 : i32, i32
  }
  func.func @transform_6(%arg0: i32) -> (i32, i32) {
    %c0_i32 = arith.constant 0 : i32
    %c0_i32_0 = arith.constant 0 : i32
    %c0_i32_1 = arith.constant 0 : i32
    return %c0_i32, %c0_i32_0 : i32, i32
  }
  func.func @transform_7(%arg0: i32) -> (i32, i32) {
    %c0_i32 = arith.constant 0 : i32
    %c0_i32_0 = arith.constant 0 : i32
    %c0_i32_1 = arith.constant 0 : i32
    return %c0_i32, %c0_i32_0 : i32, i32
  }
  func.func @transform_8(%arg0: i32) -> (i32, i32) {
    %c0_i32 = arith.constant 0 : i32
    %c0_i32_0 = arith.constant 0 : i32
    %c0_i32_1 = arith.constant 0 : i32
    return %c0_i32, %c0_i32_0 : i32, i32
  }
  func.func @transform_9(%arg0: i32) -> (i32, i32) {
    %c0_i32 = arith.constant 0 : i32
    %c0_i32_0 = arith.constant 0 : i32
    %c0_i32_1 = arith.constant 0 : i32
    return %c0_i32, %c0_i32_0 : i32, i32
  }
  func.func @transform_10(%arg0: i32) -> (i32, i32) {
    %c0_i32 = arith.constant 0 : i32
    %c0_i32_0 = arith.constant 0 : i32
    %c0_i32_1 = arith.constant 0 : i32
    return %c0_i32, %c0_i32_0 : i32, i32
  }
  func.func @transform_11(%arg0: i32) -> (i32, i32) {
    %c0_i32 = arith.constant 0 : i32
    %c0_i32_0 = arith.constant 0 : i32
    %c0_i32_1 = arith.constant 0 : i32
    return %c0_i32, %c0_i32_0 : i32, i32
  }
  func.func @transform_12(%arg0: i32) -> (i32, i32) {
    %c0_i32 = arith.constant 0 : i32
    %c0_i32_0 = arith.constant 0 : i32
    %c0_i32_1 = arith.constant 0 : i32
    return %c0_i32, %c0_i32_0 : i32, i32
  }
  func.func @transform_13(%arg0: i32) -> (i32, i32) {
    %c0_i32 = arith.constant 0 : i32
    %c0_i32_0 = arith.constant 0 : i32
    %c0_i32_1 = arith.constant 0 : i32
    return %c0_i32, %c0_i32_0 : i32, i32
  }
  func.func @transform_14(%arg0: i32) -> (i32, i32) {
    %c0_i32 = arith.constant 0 : i32
    %c0_i32_0 = arith.constant 0 : i32
    %c0_i32_1 = arith.constant 0 : i32
    return %c0_i32, %c0_i32_0 : i32, i32
  }
  func.func @transform_15(%arg0: i32) -> (i32, i32) {
    %c0_i32 = arith.constant 0 : i32
    %c0_i32_0 = arith.constant 0 : i32
    %c0_i32_1 = arith.constant 0 : i32
    return %c0_i32, %c0_i32_0 : i32, i32
  }
  func.func @transform_16(%arg0: i32) -> (i32, i32) {
    %c0_i32 = arith.constant 0 : i32
    %c0_i32_0 = arith.constant 0 : i32
    %c0_i32_1 = arith.constant 0 : i32
    return %c0_i32, %c0_i32_0 : i32, i32
  }
  func.func @transform_17(%arg0: i32) -> (i32, i32) {
    %c0_i32 = arith.constant 0 : i32
    %c0_i32_0 = arith.constant 0 : i32
    %c0_i32_1 = arith.constant 0 : i32
    return %c0_i32, %c0_i32_0 : i32, i32
  }
  func.func @transform_18(%arg0: i32) -> (i32, i32) {
    %c0_i32 = arith.constant 0 : i32
    %c0_i32_0 = arith.constant 0 : i32
    %c0_i32_1 = arith.constant 0 : i32
    return %c0_i32, %c0_i32_0 : i32, i32
  }
  func.func @transform_19(%arg0: i32) -> (i32, i32) {
    %c0_i32 = arith.constant 0 : i32
    %c0_i32_0 = arith.constant 0 : i32
    %c0_i32_1 = arith.constant 0 : i32
    return %c0_i32, %c0_i32_0 : i32, i32
  }
  func.func @transform_20(%arg0: i32) -> (i32, i32, i32) {
    %c0_i32 = arith.constant 0 : i32
    %c0_i32_0 = arith.constant 0 : i32
    %c0_i32_1 = arith.constant 0 : i32
    %c0_i32_2 = arith.constant 0 : i32
    return %c0_i32, %c0_i32_0, %c0_i32_1 : i32, i32, i32
  }
  func.func @transform_21(%arg0: i32) -> (i32, i32) {
    %c0_i32 = arith.constant 0 : i32
    %c0_i32_0 = arith.constant 0 : i32
    %c0_i32_1 = arith.constant 0 : i32
    return %c0_i32, %c0_i32_0 : i32, i32
  }
  func.func @transform_22(%arg0: i32) -> (i32, i32, i32) {
    %c0_i32 = arith.constant 0 : i32
    %c0_i32_0 = arith.constant 0 : i32
    %c0_i32_1 = arith.constant 0 : i32
    return %arg0, %c0_i32, %c0_i32_0 : i32, i32, i32
  }
}

</mosaic_0001>

<bundles_post_ra>
// kernel: ml_decoder.1
= control target key start
LH: loop header
LB: loop body
LE: loop exit
PB: predicated region body
PF: predicated region fallthrough
CT: control target
= control target key end

     0   :  { %s7931_s0 = inlined_call_operand.vmem [shape: bf16[2,16,64], index: 0, kind: input, shape index: {}]   ;;  %s7932_s1 = inlined_call_operand.vmem [shape: f32[8,128], index: 1, kind: input, shape index: {}]   ;;  %s7933_s2 = inlined_call_operand.vmem [shape: bf16[64,128], index: 2, kind: input, shape index: {}]   ;;  %s7934_s3 = inlined_call_operand.vmem [shape: f32[1,128], index: 3, kind: input, shape index: {}]   ;;  %s7935_s4 = inlined_call_operand.vmem [shape: bf16[128,128], index: 4, kind: input, shape index: {}]   ;;  %s7936_s5 = inlined_call_operand.vmem [shape: f32[1,128], index: 5, kind: input, shape index: {}]   ;;  %s7937_s6 = inlined_call_operand.vmem [shape: bf16[128,256], index: 6, kind: input, shape index: {}]   ;;  %s7938_s7 = inlined_call_operand.vmem [shape: f32[1,256], index: 7, kind: input, shape index: {}]   ;;  %s7939_s8 = inlined_call_operand.vmem [shape: bf16[128,128], index: 8, kind: input, shape index: {}]   ;;  %s7940_s9 = inlined_call_operand.vmem [shape: f32[1,128], index: 9, kind: input, shape index: {}]   ;;  %s7941_s10 = inlined_call_operand.vmem [shape: f32[1,128], index: 10, kind: input, shape index: {}]   ;;  %s7942_s11 = inlined_call_operand.vmem [shape: f32[1,128], index: 11, kind: input, shape index: {}]   ;;  %s7943_s12 = inlined_call_operand.vmem [shape: f32[1,128], index: 12, kind: input, shape index: {}]   ;;  %s7944_s13 = inlined_call_operand.vmem [shape: f32[1,128], index: 13, kind: input, shape index: {}]   ;;  %s7945_s14 = inlined_call_operand.vmem [shape: f32[1,128], index: 14, kind: input, shape index: {}]   ;;  %s7946_s15 = inlined_call_operand.vmem [shape: f32[1,128], index: 15, kind: input, shape index: {}]   ;;  %s7947_s16 = inlined_call_operand.vmem [shape: bf16[128,256], index: 16, kind: input, shape index: {}]   ;;  %s7948_s17 = inlined_call_operand.vmem [shape: f32[1,256], index: 17, kind: input, shape index: {}]   ;;  %s7949_s18 = inlined_call_operand.vmem [shape: bf16[256,128], index: 18, kind: input, shape index: {}]   ;;  %s7950_s19 = inlined_call_operand.vmem [shape: f32[1,128], index: 19, kind: input, shape index: {}]   ;;  %s7951_s20 = inlined_call_operand.vmem [shape: f32[8,3,128], index: 20, kind: input, shape index: {}]   ;;  %s7952_s21 = inlined_call_operand.vmem [shape: f32[8,3], index: 21, kind: input, shape index: {}]   ;;  %s7953_s22 = inlined_call_operand.vmem [shape: f32[2,8,3], index: 22, kind: output, shape index: {}]  }
   0x1   :  { %7959 = sst [smem:[#allocation2_spill]] %s7931_s0 }
   0x2   :  { %7960 = sst [smem:[#allocation3_spill]] %s7932_s1 }
   0x3   :  { %7961 = sst [smem:[#allocation4_spill]] %s7933_s2 }
   0x4   :  { %7962 = sst [smem:[#allocation5_spill]] %s7934_s3  ;;  %s6865_s3 = smov 0  }
   0x5   :  { %7963 = sst [smem:[#allocation6_spill]] %s7935_s4 }
   0x6   :  { %7964 = sst [smem:[#allocation7_spill]] %s7936_s5 }
   0x7   :  { %7965 = sst [smem:[#allocation8_spill]] %s7937_s6 }
   0x8 LB: > { %s6239_s28 = sadd.s32 4294967295, %s6735_s3   ;;  %p6243_p0 = scmp.ge.s32.totalorder %s6735_s3, 1  ;;  %s6735_s3 = sphi %s6865_s3, %s32_s3  }
   0x9   : > { %p612_p1 = scmp.lt.s32.totalorder %s6735_s3, 3 }
   0xb   : > { %p613_p2 = pnand %p6243_p0, %p612_p1 }
   0xc   : > { %s7966_s4 = sld [smem:[#allocation3_spill]] (!%p613_p2)  ;;  %v6737_v1 = vmov (!%p613_p2), 0.0   ;;  %s7967_s1 = sld [smem:[#allocation4_spill]] (!%p613_p2)  ;;  %vm6738_vm0 = vmmov (!%p613_p2), 0   ;;  %vm729_vm1 = vcmask (!%p613_p2), 523264   ;;  %v6739_v24 = vmov (!%p613_p2), 0  }
   0xd   : > { %616 = sbr.rel (%p613_p2) target bundleno = 3597 (0xe0d), region = 108  ;;  %6435 = vmatprep.subr.bf16.mxu1 (!%p613_p2), %v6737_v1  ;;  %6443 = vmatprep.mubr.msk.bf16.mxu1 (!%p613_p2), %vm6738_vm0, %v6737_v1  ;;  %p673_p3 = scmp.lt.s32.totalorder (!%p613_p2), %s6239_s28, 1  ;;  %v6254_v51 = vld [vmem:[%s7941_s10] ss:$0 sm:$0xff] (!%p613_p2)  ;;  %v937_v57 = vlaneseq (!%p613_p2)  ;;  %vm3008_vm2 = vcmask (!%p613_p2), 130048   ;;  %vm5390_vm3 = vcmask (!%p613_p2), 261120  }
   0xe   : > { %s7968_s29 = sld [smem:[#allocation2_spill]] (!%p613_p2)  ;;  %s7969_s24 = sld [smem:[#allocation8_spill]] (!%p613_p2)  ;;  %1059 = vmatprep.mubr.bf16.mxu0 (!%p613_p2), %v6739_v24  ;;  %v6255_v53 = vld [vmem:[%s7942_s11] ss:$0 sm:$0xff] (!%p613_p2)  ;;  %vm5392_vm4 = vcmask (!%p613_p2), 392192   ;;  %vm5395_vm5 = vcmask (!%p613_p2), 654336  }
   0xf   : > { %s7970_s2 = sld [smem:[#allocation6_spill]] (!%p613_p2)  ;;  %s7971_s6 = sld [smem:[#allocation5_spill]] (!%p613_p2)  ;;  %v7010_v58 = vshrl.u32 (!%p613_p2), %v937_v57, 7  ;;  %v7018_v60 = vld [vmem:[%s7938_s7] sm:$0x3] (!%p613_p2)  ;;  %vm5397_vm6 = vcmask (!%p613_p2), 785408  }
  0x10   : > { %s7958_s23 = smov (!%p613_p2), 96   ;;  %s6741_s5 = smov (!%p613_p2), 112   ;;  %vm5399_vm7 = vcmask (!%p613_p2), 916480   ;;  %vm6004_vm8 = vcmask (!%p613_p2), 1042432   ;;  %vm6169_vm9 = vcmask (!%p613_p2), 1041409   ;;  %vm6171_vm10 = vcmask (!%p613_p2), 1042434  }
  0x11   : > { %v7013_v59 = vsub.s32 (!%p613_p2), 0, %v7010_v58  ;;  %s6743_s25 = smov (!%p613_p2), 80   ;;  %s6744_s27 = smov (!%p613_p2), 32   ;;  %vm6173_vm11 = vcmask (!%p613_p2), 1043459   ;;  %vm6175_vm12 = vcmask (!%p613_p2), 1044484   ;;  %vm6177_vm13 = vcmask (!%p613_p2), 1045509  }
  0x12   : > { %v777_v0 = vld [vmem:[%s7966_s4] sm:$0xff] (!%p613_p2)  ;;  %v6607_v4 = vld [vmem:[%s7967_s1 + $0x8] sm:$0xff] (!%p613_p2)   ;;  %v6608_v5 = vld [vmem:[%s7967_s1 + $0x10] sm:$0xff] (!%p613_p2)   ;;  %vm6179_vm14 = vcmask (!%p613_p2), 1046534   ;;  %vm6181_vm15 = vcmask (!%p613_p2), 1047559  }
  0x13   : > { %v6877_v2 = vadd.f32 (!%p613_p2), %v777_v0, %v777_v0  ;;  %v6606_v3 = vld [vmem:[%s7967_s1] sm:$0xff] (!%p613_p2)   ;;  %v6609_v6 = vld [vmem:[%s7967_s1 + $0x18] sm:$0xff] (!%p613_p2)   ;;  %v940_v61 = vrot.slane (!%p613_p2), %v7018_v60, %v7013_v59 }
  0x14   : > { %6436 = vmatpush3.bf16.msra.mxu1 %v6606_v3  ;;  %s7976_s28 = smov (!%p673_p3, %s6239_s28), 1  ;;  %v6611_v8 = vld [vmem:[%s7969_s24 + $0x4] ss:$8 sps:$4 sm:$0xff]   ;;  %v6613_v9 = vld [vmem:[%s7969_s24] ss:$8 sps:$4 sm:$0xff]  }
  0x15   : > { %781 = vadd.xlane.f32.xlu0 %v6877_v2  ;;  %6437 = vmatprep.subr.bf16.mxu1 %v6737_v1  ;;  %s7957_s26 = sshll.u32 %s7976_s28, 3  ;;  %v6614_v10 = vld [vmem:[%s7969_s24 + $0x14] ss:$8 sps:$4 sm:$0xff]   ;;  %v6616_v11 = vld [vmem:[%s7969_s24 + $0x10] ss:$8 sps:$4 sm:$0xff]   ;;  %v6635_v25 = vld [vmem:[%s7970_s2] sm:$0xff]  }
  0x16   : > { %s677_s30 = scalar_lea.vmem %s7968_s29, %s7957_s26  ;;  %1027 = vmatprep.subr.bf16.mxu0 %v6611_v8  ;;  %v6617_v12 = vld [vmem:[%s7969_s24 + $0x24] ss:$8 sps:$4 sm:$0xff]   ;;  %v6619_v13 = vld [vmem:[%s7969_s24 + $0x20] ss:$8 sps:$4 sm:$0xff]   ;;  %v6620_v14 = vld [vmem:[%s7969_s24 + $0x34] ss:$8 sps:$4 sm:$0xff]  }
  0x17   : > { %v6610_v7 = vld [vmem:[%s677_s30] sm:$0xff]   ;;  %1028 = vmatpush1.bf16.msra.mxu0 %v6613_v9  ;;  %v6622_v15 = vld [vmem:[%s7969_s24 + $0x30] ss:$8 sps:$4 sm:$0xff]   ;;  %v6626_v18 = vld [vmem:[%s7969_s24 + $0x54] ss:$8 sps:$4 sm:$0xff]   ;;  %s6745_s29 = smov 64  }
  0x18   : > { %6438 = vmatpush3.bf16.msra.mxu1 %v6607_v4  ;;  %1029 = vmatprep.subr.bf16.mxu0 %v6614_v10  ;;  %v6623_v16 = vld [vmem:[%s7969_s24 + $0x44] ss:$8 sps:$4 sm:$0xff]   ;;  %v6625_v17 = vld [vmem:[%s7969_s24 + $0x40] ss:$8 sps:$4 sm:$0xff]   ;;  %v6628_v19 = vld [vmem:[%s7969_s24 + $0x50] ss:$8 sps:$4 sm:$0xff]  }
  0x19   : > { %6439 = vmatprep.subr.bf16.mxu1 %v6737_v1  ;;  %v6629_v20 = vld [vmem:[%s7969_s24 + $0x64] ss:$8 sps:$4 sm:$0xff]   ;;  %v6631_v21 = vld [vmem:[%s7969_s24 + $0x60] ss:$8 sps:$4 sm:$0xff]   ;;  %v6632_v22 = vld [vmem:[%s7969_s24 + $0x74] ss:$8 sps:$4 sm:$0xff]  }
  0x1a   : > { %v6634_v23 = vld [vmem:[%s7969_s24 + $0x70] ss:$8 sps:$4 sm:$0xff]   ;;  %v6636_v26 = vld [vmem:[%s7970_s2 + $0x8] sm:$0xff]   ;;  %v6639_v33 = vld [vmem:[%s7970_s2 + $0x20] sm:$0xff]   ;;  %s6746_s30 = smov 16   ;;  %s7972_s26 = sld [smem:[#allocation7_spill]] }
  0x1b   : > { %1030 = vmatpush1.bf16.msra.mxu0 %v6616_v11  ;;  %v6637_v31 = vld [vmem:[%s7970_s2 + $0x10] sm:$0xff]   ;;  %v6638_v32 = vld [vmem:[%s7970_s2 + $0x18] sm:$0xff]   ;;  %v6640_v34 = vld [vmem:[%s7970_s2 + $0x28] sm:$0xff]  }
  0x1c   : > { %6440 = vmatpush3.bf16.msra.mxu1 %v6608_v5  ;;  %1031 = vmatprep.subr.bf16.mxu0 %v6617_v12  ;;  %v6641_v35 = vld [vmem:[%s7970_s2 + $0x30] sm:$0xff]   ;;  %v6642_v36 = vld [vmem:[%s7970_s2 + $0x38] sm:$0xff]   ;;  %v6247_v37 = vld [vmem:[%s7971_s6] ss:$0 sm:$0xff]  ;;  %s6742_s6 = smov 48  }
  0x1d   : > { %6441 = vmatprep.subr.bf16.mxu1 %v6737_v1 }
  0x1f   : > { %1032 = vmatpush1.bf16.msra.mxu0 %v6619_v13 }
  0x20   : > { %6442 = vmatpush3.bf16.msra.mxu1 %v6609_v6  ;;  %1033 = vmatprep.subr.bf16.mxu0 %v6620_v14  ;;  %v6256_v5 = vld [vmem:[%s7972_s26] ss:$0 sm:$0xff]  ;;  %v6747_v14 = vmov 1983009808   ;;  %s7974_s26 = sshll.u32 %s7976_s28, 3 }
  0x21   : > { %6447 = vmatprep.subr.bf16.mxu1 %v6737_v1 }
  0x23   : > { %6444 = vmatmul.mubr.msk.bf16.vlgmr.msra.gmra.mrb[0].mxu1 %vm729_vm1, %v6610_v7  ;;  %1034 = vmatpush1.bf16.msra.mxu0 %v6622_v15  ;;  %v1095_v15 = vunpack.c.l.s4 %v6747_v14 }
  0x24   : > { %6463 = vmatprep.mubr.msk.bf16.mxu1 %vm6738_vm0, %v6737_v1  ;;  %1035 = vmatprep.subr.bf16.mxu0 %v6623_v16 }
  0x25   : > { %6448 = vmatpush3.bf16.msra.mxu1 %v6635_v25 }
  0x26   : > { %6449 = vmatprep.subr.bf16.mxu1 %v6737_v1 }
  0x27   : > { %1036 = vmatpush1.bf16.msra.mxu0 %v6625_v17 }
  0x28   : > { %1037 = vmatprep.subr.bf16.mxu0 %v6626_v18  ;;  %v1096_v18 = vunpack.c.0.s8 %v1095_v15 }
  0x29   : > { %6450 = vmatpush3.bf16.msra.mxu1 %v6636_v26 }
  0x2a   : > { %6451 = vmatprep.subr.bf16.mxu1 %v6737_v1 }
  0x2b   : > { %1038 = vmatpush1.bf16.msra.mxu0 %v6628_v19  ;;  %v6748_v19 = vmov 1934713408  }
  0x2c   : > { %1039 = vmatprep.subr.bf16.mxu0 %v6629_v20  ;;  %v1159_v20 = vunpack.c.l.s4 %v6748_v19 }
  0x2d   : > { %6452 = vmatpush3.bf16.msra.mxu1 %v6637_v31 }
  0x2e   : > { %6453 = vmatprep.subr.bf16.mxu1 %v6737_v1 }
  0x2f   : > { %1040 = vmatpush1.bf16.msra.mxu0 %v6631_v21 }
  0x30   : > { %1041 = vmatprep.subr.bf16.mxu0 %v6632_v22 }
  0x31   : > { %6454 = vmatpush3.bf16.msra.mxu1 %v6638_v32 }
  0x32   : > { %6455 = vmatprep.subr.bf16.mxu1 %v6737_v1 }
  0x33   : > { %1042 = vmatpush1.bf16.msra.mxu0 %v6634_v23  ;;  %v7074_v23 = vsub.s32 %v1096_v18, %v7010_v58 }
  0x34   : > { %6479 = vmatprep.subr.bf16.mxu0 %v6737_v1 }
  0x35   : > { %6456 = vmatpush3.bf16.msra.mxu1 %v6639_v33 }
  0x36   : > { %6457 = vmatprep.subr.bf16.mxu1 %v6737_v1 }
  0x39   : > { %6458 = vmatpush3.bf16.msra.mxu1 %v6640_v34 }
  0x3a   : > { %6459 = vmatprep.subr.bf16.mxu1 %v6737_v1 }
  0x3d   : > { %6460 = vmatpush3.bf16.msra.mxu1 %v6641_v35 }
  0x3e   : > { %6461 = vmatprep.subr.bf16.mxu1 %v6737_v1 }
  0x41   : > { %6462 = vmatpush3.bf16.msra.mxu1 %v6642_v36 }
  0x42   : > { %6467 = vmatprep.subr.bf16.mxu1 %v6737_v1 }
  0xa2   : > { %v782_v27 = vpop.xlane.xlu0 %781 }
  0xa3   : > { %v784_v28 = vmul.f32 0.0078125, %v782_v27  ;;  %v1160_v27 = vunpack.c.0.s8 %v1159_v20 }
  0xa5   : > { %v785_v29 = vsub.f32 %v6877_v2, %v784_v28  ;;  %v7082_v36 = vsub.s32 %v1160_v27, %v7010_v58 }
  0xa7   : > { %v786_v30 = vmul.f32 %v785_v29, %v785_v29 }
  0xa9   : > { %787 = vadd.xlane.f32.xlu0 %v786_v30 }
  0xf6   : > { %v767_v38 = vpop.f32.mrb[0].mxu1 }
  0xf7   : > { %v768_v39 = vadd.f32 %v6247_v37, %v767_v38  ;;  %v6445_v40 = vpop.f32.mrb[1].mxu1 }
  0xf8   : > { %v770_v41 = vpop.f32.mrb[2].mxu1 }
  0xf9   : > { %v771_v42 = vadd.f32 %v6247_v37, %v770_v41  ;;  %v6446_v43 = vpop.f32.mrb[3].mxu1  ;;  %v774_v44 = vmax.f32 %v768_v39, 0.0 }
  0xfb   : > { %v775_v45 = vmax.f32 %v771_v42, 0.0 }
  0xfd   : > { %v776_v46 = vpack.c.bf16 %v775_v45, %v774_v44 }
  0xff   : > { %1060 = vmatmul.mubr.bf16.vlgmr.msra.gmra.mrb[0].mxu0 %v776_v46 }
 0x100   : > { %6481 = vmatprep.mubr.msk.bf16.mxu0 %vm6738_vm0, %v6737_v1 }
 0x136   : > { %v788_v47 = vpop.xlane.xlu0 %787 }
 0x137   : > { %v789_v48 = vmul.f32 0.0078125, %v788_v47 }
 0x139   : > { %v790_v49 = vadd.f32 1e-05, %v789_v48 }
 0x13b   : > { %6691 = vrsqrt.f32 %v790_v49 }
 0x145   : > { %v6692_v50 = vpop.eup %6691 }
 0x146   : > { %v792_v52 = vmul.f32 %v6692_v50, %v785_v29 }
 0x148   : > { %v799_v54 = vmul.f32 %v6254_v51, %v792_v52 }
 0x14a   : > { %v7003_v55 = vadd.f32 %v6255_v53, %v799_v54 }
 0x14c   : > { %v807_v56 = vpack.c.bf16 %v7003_v55, %v7003_v55 }
 0x14e   : > { %6464 = vmatmul.mubr.bf16.vlgmr.msra.gmra.mrb[4].mxu1 %v807_v56 }
 0x14f   : > { %6469 = vmatprep.mubr.msk.bf16.mxu1 %vm6738_vm0, %v6737_v1 }
 0x1d2   : > { %v1061_v62 = vpop.f32.mrb[0].mxu0 }
 0x1d3   : > { %v7022_v63 = vadd.f32 %v1061_v62, %v940_v61  ;;  %v7024_v0 = vpop.f32.mrb[1].mxu0 }
 0x1d4   : > { %v1065_v2 = vpop.f32.mrb[2].mxu0 }
 0x1d5   : > { %v7026_v3 = vpop.f32.mrb[3].mxu0  ;;  %1244 = vrot.lane.b32.xlu0 %v7022_v63, %s7958_s23  ;;  %1238 = vrot.lane.b32.xlu1 %v7022_v63, %s6741_s5  ;;  %v7032_v4 = vadd.f32 %v1065_v2, %v940_v61 }
 0x1d9   : > { %1264 = vrot.lane.b32.xlu0 %v7032_v4, %s6742_s6  ;;  %1250 = vrot.lane.b32.xlu1 %v7022_v63, %s6743_s25 }
 0x1dd   : > { %1270 = vrot.lane.b32.xlu0 %v7032_v4, %s6744_s27  ;;  %1256 = vrot.lane.b32.xlu1 %v7022_v63, %s6745_s29 }
 0x1e1   : > { %1276 = vrot.lane.b32.xlu0 %v7032_v4, %s6746_s30  ;;  %1262 = vrot.lane.b32.xlu1 %v7022_v63, %s6742_s6 }
 0x1e5   : > { %1268 = vrot.lane.b32.xlu1 %v7022_v63, %s6744_s27 }
 0x1e9   : > { %1274 = vrot.lane.b32.xlu1 %v7022_v63, %s6746_s30 }
 0x1ed   : > { %1240 = vrot.lane.b32.xlu1 %v7032_v4, %s6741_s5 }
 0x1f1   : > { %1246 = vrot.lane.b32.xlu1 %v7032_v4, %s7958_s23 }
 0x1f5   : > { %1252 = vrot.lane.b32.xlu1 %v7032_v4, %s6743_s25 }
 0x1f9   : > { %1258 = vrot.lane.b32.xlu1 %v7032_v4, %s6745_s29 }
 0x221   : > { %v913_v6 = vpop.f32.mrb[4].mxu1 }
 0x222   : > { %v7061_v7 = vadd.f32 %v6256_v5, %v913_v6  ;;  %v6465_v8 = vpop.f32.mrb[5].mxu1 }
 0x223   : > { %v916_v9 = vpop.f32.mrb[6].mxu1 }
 0x224   : > { %1074 = vrot.lane.b32.xlu1 %v7061_v7, %s7958_s23  ;;  %1071 = vrot.lane.b32.xlu0 %v7061_v7, %s6741_s5  ;;  %v6466_v10 = vpop.f32.mrb[7].mxu1 }
 0x228   : > { %1077 = vrot.lane.b32.xlu1 %v7061_v7, %s6743_s25  ;;  %1080 = vrot.lane.b32.xlu0 %v7061_v7, %s6745_s29 }
 0x22c   : > { %1083 = vrot.lane.b32.xlu1 %v7061_v7, %s6742_s6 }
 0x247   : > { %v1239_v11 = vpop.permute.xlu1 %1238  ;;  %v1245_v16 = vpop.permute.xlu0 %1244 }
 0x248   : > { %v1280_v25 = vcombine.low %v7022_v63, %v1245_v16  ;;  %v1281_v37 = vcombine.high %v7022_v63, %v1245_v16 }
 0x24a   : > { %v1288_v33 = vrot.slane %v1280_v25, %v7074_v23  ;;  %v1295_v49 = vrot.slane %v1281_v37, %v7074_v23 }
 0x24b   : > { %v1251_v12 = vpop.permute.xlu1 %1250  ;;  %v7077_v26 = vpop.permute.xlu0 %1264 }
 0x24c   : > { %v1296_v21 = vcombine.low %v1239_v11, %v1251_v12  ;;  %v1297_v30 = vcombine.high %v1239_v11, %v1251_v12 }
 0x24e   : > { %v1304_v28 = vrot.slane %v1296_v21, %v7074_v23  ;;  %v1311_v43 = vrot.slane %v1297_v30, %v7074_v23 }
 0x24f   : > { %v1257_v13 = vpop.permute.xlu1 %1256  ;;  %v1271_v38 = vpop.permute.xlu0 %1270 }
 0x250   : > { %v1344_v42 = vcombine.low %v1288_v33, %v1304_v28  ;;  %v1345_v47 = vcombine.high %v1288_v33, %v1304_v28  ;;  %v1360_v56 = vcombine.low %v1295_v49, %v1311_v43  ;;  %v1361_v15 = vcombine.high %v1295_v49, %v1311_v43 }
 0x252   : > { %v1352_v51 = vrot.slane %v1344_v42, %v7082_v36  ;;  %v1359_v2 = vrot.slane %v1345_v47, %v7082_v36  ;;  %v1368_v14 = vrot.slane %v1360_v56, %v7082_v36 }
 0x253   : > { %v1263_v17 = vpop.permute.xlu1 %1262  ;;  %v1277_v61 = vpop.permute.xlu0 %1276 }
 0x254   : > { %v1464_v12 = vcombine.low %v7077_v26, %v1277_v61  ;;  %v1465_v27 = vcombine.high %v7077_v26, %v1277_v61 }
 0x256   : > { %v1472_v28 = vrot.slane %v1464_v12, %v7074_v23 }
 0x257   : > { %v1269_v22 = vpop.permute.xlu1 %1268 }
 0x258   : > { %v1312_v29 = vcombine.low %v1257_v13, %v1269_v22  ;;  %v1313_v31 = vcombine.high %v1257_v13, %v1269_v22 }
 0x25a   : > { %v1320_v39 = vrot.slane %v1312_v29, %v7074_v23  ;;  %v1327_v44 = vrot.slane %v1313_v31, %v7074_v23  ;;  %v1375_v31 = vrot.slane %v1361_v15, %v7082_v36 }
 0x25b   : > { %v1275_v32 = vpop.permute.xlu1 %1274 }
 0x25c   : > { %v1328_v34 = vcombine.low %v1263_v17, %v1275_v32  ;;  %v1329_v35 = vcombine.high %v1263_v17, %v1275_v32 }
 0x25e   : > { %v1336_v40 = vrot.slane %v1328_v34, %v7074_v23  ;;  %v1343_v41 = vrot.slane %v1329_v35, %v7074_v23 }
 0x25f   : > { %v1241_v45 = vpop.permute.xlu1 %1240 }
 0x260   : > { %v1376_v46 = vcombine.low %v1320_v39, %v1336_v40  ;;  %v1377_v48 = vcombine.high %v1320_v39, %v1336_v40  ;;  %v1392_v50 = vcombine.low %v1327_v44, %v1343_v41  ;;  %v1393_v6 = vcombine.high %v1327_v44, %v1343_v41 }
 0x261   : > { %v1479_v44 = vrot.slane %v1465_v27, %v7074_v23 }
 0x262   : > { %v1384_v52 = vrot.slane %v1376_v46, %v7082_v36  ;;  %v1391_v53 = vrot.slane %v1377_v48, %v7082_v36  ;;  %v1400_v5 = vrot.slane %v1392_v50, %v7082_v36  ;;  %v1407_v20 = vrot.slane %v1393_v6, %v7082_v36 }
 0x263   : > { %v1247_v54 = vpop.permute.xlu1 %1246 }
 0x264   : > { %v1408_v62 = vcombine.low %v1352_v51, %v1384_v52  ;;  %v1409_v63 = vcombine.high %v1352_v51, %v1384_v52  ;;  %v1411_v10 = vcombine.high %v1359_v2, %v1391_v53  ;;  %v1410_v11 = vcombine.low %v1359_v2, %v1391_v53 }
 0x265   : > { %v1416_v16 = vcombine.low %v7032_v4, %v1247_v54  ;;  %v1413_v18 = vcombine.high %v1368_v14, %v1400_v5  ;;  %v1412_v19 = vcombine.low %v1368_v14, %v1400_v5  ;;  %v1417_v35 = vcombine.high %v7032_v4, %v1247_v54 }
 0x266   : > { %v1552_v8 = vpack.c.bf16 %v1408_v62, %v1408_v62  ;;  %v1553_v9 = vpack.c.bf16 %v1409_v63, %v1409_v63  ;;  %v1555_v22 = vpack.c.bf16 %v1411_v10, %v1411_v10  ;;  %v1554_v25 = vpack.c.bf16 %v1410_v11, %v1410_v11 }
 0x267   : > { %v1253_v13 = vpop.permute.xlu1 %1252  ;;  %v1424_v32 = vrot.slane %v1416_v16, %v7074_v23  ;;  %v1557_v37 = vpack.c.bf16 %v1413_v18, %v1413_v18  ;;  %v1556_v39 = vpack.c.bf16 %v1412_v19, %v1412_v19  ;;  %v1415_v40 = vcombine.high %v1375_v31, %v1407_v20 }
 0x268   : > { %v1432_v17 = vcombine.low %v1241_v45, %v1253_v13  ;;  %1992 = vxpose.xlu1.c.b16.start.end [1/1] (short) (narrow) %v1552_v8, 16  ;;  %2008 = vxpose.xlu0.c.b16.start.end [1/1] (short) (narrow) %v1553_v9, 16  ;;  %v1433_v29 = vcombine.high %v1241_v45, %v1253_v13  ;;  %v1414_v42 = vcombine.low %v1375_v31, %v1407_v20 }
 0x269   : > { %v1431_v4 = vrot.slane %v1417_v35, %v7074_v23  ;;  %v1559_v48 = vpack.c.bf16 %v1415_v40, %v1415_v40 }
 0x26a   : > { %v1440_v21 = vrot.slane %v1432_v17, %v7074_v23  ;;  %v1447_v45 = vrot.slane %v1433_v29, %v7074_v23  ;;  %v1558_v50 = vpack.c.bf16 %v1414_v42, %v1414_v42 }
 0x26b   : > { %v1259_v30 = vpop.permute.xlu1 %1258 }
 0x26c   : > { %v1448_v33 = vcombine.low %v1259_v30, %v1271_v38  ;;  %v1449_v34 = vcombine.high %v1259_v30, %v1271_v38  ;;  %2040 = vxpose.xlu1.c.b16.start.end [1/1] (short) (narrow) %v1555_v22, 16  ;;  %2024 = vxpose.xlu0.c.b16.start.end [1/1] (short) (narrow) %v1554_v25, 16  ;;  %v1480_v43 = vcombine.low %v1424_v32, %v1440_v21 }
 0x26d   : > { %v1481_v46 = vcombine.high %v1424_v32, %v1440_v21  ;;  %v1496_v54 = vcombine.low %v1431_v4, %v1447_v45  ;;  %v1497_v11 = vcombine.high %v1431_v4, %v1447_v45 }
 0x26e   : > { %v1456_v41 = vrot.slane %v1448_v33, %v7074_v23  ;;  %v1463_v26 = vrot.slane %v1449_v34, %v7074_v23  ;;  %v1488_v51 = vrot.slane %v1480_v43, %v7082_v36 }
 0x26f   : > { %v1495_v62 = vrot.slane %v1481_v46, %v7082_v36  ;;  %v1504_v10 = vrot.slane %v1496_v54, %v7082_v36  ;;  %v1511_v17 = vrot.slane %v1497_v11, %v7082_v36 }
 0x270   : > { %2072 = vxpose.xlu1.c.b16.start.end [1/1] (short) (narrow) %v1557_v37, 16  ;;  %2056 = vxpose.xlu0.c.b16.start.end [1/1] (short) (narrow) %v1556_v39, 16  ;;  %v1512_v38 = vcombine.low %v1456_v41, %v1472_v28  ;;  %v1513_v47 = vcombine.high %v1456_v41, %v1472_v28  ;;  %v1528_v49 = vcombine.low %v1463_v26, %v1479_v44 }
 0x271   : > { %v1529_v2 = vcombine.high %v1463_v26, %v1479_v44 }
 0x272   : > { %v1520_v52 = vrot.slane %v1512_v38, %v7082_v36  ;;  %v1527_v53 = vrot.slane %v1513_v47, %v7082_v36  ;;  %v1536_v63 = vrot.slane %v1528_v49, %v7082_v36 }
 0x273   : > { %v1543_v12 = vrot.slane %v1529_v2, %v7082_v36 }
 0x274   : > { %2104 = vxpose.xlu1.c.b16.start.end [1/1] (short) (narrow) %v1559_v48, 16  ;;  %2088 = vxpose.xlu0.c.b16.start.end [1/1] (short) (narrow) %v1558_v50, 16  ;;  %v1545_v56 = vcombine.high %v1488_v51, %v1520_v52  ;;  %v1544_v61 = vcombine.low %v1488_v51, %v1520_v52  ;;  %v1547_v8 = vcombine.high %v1495_v62, %v1527_v53 }
 0x275   : > { %v1546_v9 = vcombine.low %v1495_v62, %v1527_v53  ;;  %v1549_v15 = vcombine.high %v1504_v10, %v1536_v63  ;;  %v1548_v16 = vcombine.low %v1504_v10, %v1536_v63  ;;  %v1551_v20 = vcombine.high %v1511_v17, %v1543_v12 }
 0x276   : > { %v1561_v5 = vpack.c.bf16 %v1545_v56, %v1545_v56  ;;  %v1560_v6 = vpack.c.bf16 %v1544_v61, %v1544_v61  ;;  %v1563_v13 = vpack.c.bf16 %v1547_v8, %v1547_v8  ;;  %v1550_v21 = vcombine.low %v1511_v17, %v1543_v12 }
 0x277   : > { %v1562_v14 = vpack.c.bf16 %v1546_v9, %v1546_v9  ;;  %v1565_v18 = vpack.c.bf16 %v1549_v15, %v1549_v15  ;;  %v1564_v19 = vpack.c.bf16 %v1548_v16, %v1548_v16  ;;  %v1567_v22 = vpack.c.bf16 %v1551_v20, %v1551_v20 }
 0x278   : > { %2136 = vxpose.xlu1.c.b16.start.end [1/1] (short) (narrow) %v1561_v5, 16  ;;  %2120 = vxpose.xlu0.c.b16.start.end [1/1] (short) (narrow) %v1560_v6, 16  ;;  %v1566_v25 = vpack.c.bf16 %v1550_v21, %v1550_v21 }
 0x27c   : > { %2168 = vxpose.xlu1.c.b16.start.end [1/1] (short) (narrow) %v1563_v13, 16  ;;  %2152 = vxpose.xlu0.c.b16.start.end [1/1] (short) (narrow) %v1562_v14, 16 }
 0x280   : > { %2200 = vxpose.xlu1.c.b16.start.end [1/1] (short) (narrow) %v1565_v18, 16  ;;  %2184 = vxpose.xlu0.c.b16.start.end [1/1] (short) (narrow) %v1564_v19, 16 }
 0x284   : > { %2232 = vxpose.xlu1.c.b16.start.end [1/1] (short) (narrow) %v1567_v22, 16  ;;  %2216 = vxpose.xlu0.c.b16.start.end [1/1] (short) (narrow) %v1566_v25, 16 }
 0x288   : > { %1089 = vrot.lane.b32.xlu1 %v7061_v7, %s6746_s30 }
 0x28d   : > { %1086 = vrot.lane.b32.xlu0 %v7061_v7, %s6744_s27 }
 0x296   : > { %v7123_v27 = vpop.permute.xlu1 %1074  ;;  %v7125_v28 = vpop.permute.xlu0 %1071 }
 0x29a   : > { %v7127_v29 = vpop.permute.xlu1 %1077  ;;  %v7129_v30 = vpop.permute.xlu0 %1080 }
 0x29e   : > { %v7131_v31 = vpop.permute.xlu1 %1083 }
 0x2ce   : > { %v2000_v32 = vpop.trf.xlu1  ;;  %v2016_v33 = vpop.trf.xlu0 }
 0x2d2   : > { %v2048_v34 = vpop.trf.xlu1  ;;  %v2032_v35 = vpop.trf.xlu0 }
 0x2d6   : > { %v2080_v37 = vpop.trf.xlu1  ;;  %v2064_v39 = vpop.trf.xlu0 }
 0x2d7   : > { %v2384_v46 = vcombine.low %v2016_v33, %v2080_v37  ;;  %v2248_v47 = vcombine.low %v2000_v32, %v2064_v39  ;;  %v2385_v4 = vcombine.high %v2016_v33, %v2080_v37  ;;  %v2249_v48 = vcombine.high %v2000_v32, %v2064_v39 }
 0x2d9   : > { %v2392_v56 = vrot.slane %v2384_v46, %v7074_v23  ;;  %v2256_v61 = vrot.slane %v2248_v47, %v7074_v23  ;;  %v7138_v2 = vrot.slane %v2385_v4, %v7074_v23  ;;  %v7141_v5 = vrot.slane %v2249_v48, %v7074_v23 }
 0x2da   : > { %v2112_v40 = vpop.trf.xlu1  ;;  %v2096_v41 = vpop.trf.xlu0 }
 0x2db   : > { %v2400_v43 = vcombine.low %v2048_v34, %v2112_v40  ;;  %v2264_v44 = vcombine.low %v2032_v35, %v2096_v41  ;;  %v2401_v49 = vcombine.high %v2048_v34, %v2112_v40  ;;  %v2265_v50 = vcombine.high %v2032_v35, %v2096_v41 }
 0x2dd   : > { %v2408_v51 = vrot.slane %v2400_v43, %v7074_v23  ;;  %v2272_v52 = vrot.slane %v2264_v44, %v7074_v23  ;;  %v7144_v6 = vrot.slane %v2401_v49, %v7074_v23  ;;  %v7147_v8 = vrot.slane %v2265_v50, %v7074_v23 }
 0x2de   : > { %v2144_v26 = vpop.trf.xlu1  ;;  %v2128_v42 = vpop.trf.xlu0 }
 0x2df   : > { %v2449_v9 = vcombine.high %v2392_v56, %v2408_v51  ;;  %v2313_v10 = vcombine.high %v2256_v61, %v2272_v52  ;;  %v2448_v19 = vcombine.low %v2392_v56, %v2408_v51  ;;  %v2312_v20 = vcombine.low %v2256_v61, %v2272_v52 }
 0x2e0   : > { %v2328_v50 = vcombine.low %v7141_v5, %v7147_v8  ;;  %v2464_v51 = vcombine.low %v7138_v2, %v7144_v6 }
 0x2e1   : > { %v2327_v39 = vrot.slane %v2313_v10, %v7082_v36  ;;  %v2463_v40 = vrot.slane %v2449_v9, %v7082_v36  ;;  %v2320_v44 = vrot.slane %v2312_v20, %v7082_v36 }
 0x2e2   : > { %v2176_v45 = vpop.trf.xlu1  ;;  %v2160_v38 = vpop.trf.xlu0 }
 0x2e6   : > { %v2208_v53 = vpop.trf.xlu1  ;;  %v2192_v54 = vpop.trf.xlu0 }
 0x2e7   : > { %v2416_v62 = vcombine.low %v2144_v26, %v2208_v53  ;;  %v2280_v63 = vcombine.low %v2128_v42, %v2192_v54  ;;  %v2417_v11 = vcombine.high %v2144_v26, %v2208_v53  ;;  %v2281_v12 = vcombine.high %v2128_v42, %v2192_v54 }
 0x2e9   : > { %v2424_v21 = vrot.slane %v2416_v62, %v7074_v23  ;;  %v2288_v22 = vrot.slane %v2280_v63, %v7074_v23  ;;  %v2431_v35 = vrot.slane %v2417_v11, %v7074_v23  ;;  %v2295_v37 = vrot.slane %v2281_v12, %v7074_v23 }
 0x2ea   : > { %v2240_v13 = vpop.trf.xlu1  ;;  %v2224_v14 = vpop.trf.xlu0 }
 0x2eb   : > { %v2432_v15 = vcombine.low %v2176_v45, %v2240_v13  ;;  %v2433_v16 = vcombine.high %v2176_v45, %v2240_v13  ;;  %v2296_v17 = vcombine.low %v2160_v38, %v2224_v14  ;;  %v2297_v18 = vcombine.high %v2160_v38, %v2224_v14 }
 0x2ec   : > { %v2456_v45 = vrot.slane %v2448_v19, %v7082_v36  ;;  %v2336_v14 = vrot.slane %v2328_v50, %v7082_v36 }
 0x2ed   : > { %v2440_v25 = vrot.slane %v2432_v15, %v7074_v23  ;;  %v2447_v32 = vrot.slane %v2433_v16, %v7074_v23  ;;  %v2304_v33 = vrot.slane %v2296_v17, %v7074_v23  ;;  %v2311_v34 = vrot.slane %v2297_v18, %v7074_v23 }
 0x2ee   : > { %v2472_v15 = vrot.slane %v2464_v51, %v7082_v36  ;;  %v7182_v51 = vsub.s32 1, %v7010_v58 }
 0x2ef   : > { %v2480_v41 = vcombine.low %v2424_v21, %v2440_v25  ;;  %v2481_v26 = vcombine.high %v2424_v21, %v2440_v25  ;;  %v2344_v42 = vcombine.low %v2288_v22, %v2304_v33  ;;  %v2345_v43 = vcombine.high %v2288_v22, %v2304_v33 }
 0x2f0   : > { %v2360_v38 = vcombine.low %v2295_v37, %v2311_v34  ;;  %v2496_v46 = vcombine.low %v2431_v35, %v2447_v32  ;;  %v2361_v18 = vcombine.high %v2295_v37, %v2311_v34  ;;  %v2497_v19 = vcombine.high %v2431_v35, %v2447_v32 }
 0x2f1   : > { %v2359_v47 = vrot.slane %v2345_v43, %v7082_v36  ;;  %v2495_v4 = vrot.slane %v2481_v26, %v7082_v36  ;;  %v2352_v48 = vrot.slane %v2344_v42, %v7082_v36  ;;  %v2488_v49 = vrot.slane %v2480_v41, %v7082_v36 }
 0x2f2   : > { %v2368_v63 = vrot.slane %v2360_v38, %v7082_v36  ;;  %v2504_v9 = vrot.slane %v2496_v46, %v7082_v36  ;;  %v2329_v33 = vcombine.high %v7141_v5, %v7147_v8  ;;  %v2375_v26 = vrot.slane %v2361_v18, %v7082_v36 }
 0x2f3   : > { %v2378_v52 = vcombine.low %v2327_v39, %v2359_v47  ;;  %v2514_v53 = vcombine.low %v2463_v40, %v2495_v4  ;;  %v2376_v54 = vcombine.low %v2320_v44, %v2352_v48  ;;  %v2512_v56 = vcombine.low %v2456_v45, %v2488_v49 }
 0x2f4   : > { %v2379_v61 = vcombine.high %v2327_v39, %v2359_v47  ;;  %v2515_v62 = vcombine.high %v2463_v40, %v2495_v4  ;;  %v2377_v12 = vcombine.high %v2320_v44, %v2352_v48  ;;  %v2513_v13 = vcombine.high %v2456_v45, %v2488_v49 }
 0x2f5   : > { %v2538_v10 = vpack.i.b16 %v2514_v53, %v2378_v52  ;;  %v2522_v11 = vpack.i.b16 %v2512_v56, %v2376_v54  ;;  %v2380_v16 = vcombine.low %v2336_v14, %v2368_v63  ;;  %v2516_v17 = vcombine.low %v2472_v15, %v2504_v9 }
 0x2f6   : > { %v2546_v20 = vpack.i.b16 %v2515_v62, %v2379_v61  ;;  %v2530_v21 = vpack.i.b16 %v2513_v13, %v2377_v12  ;;  %v2532_v22 = vshrl.u32 %v2377_v12, 16  ;;  %v2533_v25 = vshrl.u32 %v2513_v13, 16 }
 0x2f7   : > { %2648 = vxpose.xlu1.c.b16.start.end [1/1] (short) (narrow) %v2538_v10, 16  ;;  %2584 = vxpose.xlu0.c.b16.start.end [1/1] (short) (narrow) %v2522_v11, 16  ;;  %v2465_v39 = vcombine.high %v7138_v2, %v7144_v6  ;;  %v2554_v40 = vpack.i.b16 %v2516_v17, %v2380_v16  ;;  %v2381_v41 = vcombine.high %v2336_v14, %v2368_v63  ;;  %v2540_v35 = vshrl.u32 %v2378_v52, 16 }
 0x2f8   : > { %v2511_v42 = vrot.slane %v2497_v19, %v7082_v36  ;;  %v2534_v34 = vpack.i.b16 %v2533_v25, %v2532_v22  ;;  %v2517_v32 = vcombine.high %v2472_v15, %v2504_v9  ;;  %v2541_v37 = vshrl.u32 %v2514_v53, 16 }
 0x2f9   : > { %v2343_v43 = vrot.slane %v2329_v33, %v7082_v36  ;;  %v2479_v44 = vrot.slane %v2465_v39, %v7082_v36  ;;  %v2548_v45 = vshrl.u32 %v2379_v61, 16  ;;  %v2549_v38 = vshrl.u32 %v2515_v62, 16 }
 0x2fa   : > { %v2562_v6 = vpack.i.b16 %v2517_v32, %v2381_v41  ;;  %v2542_v8 = vpack.i.b16 %v2541_v37, %v2540_v35  ;;  %v2524_v4 = vshrl.u32 %v2376_v54, 16  ;;  %v2525_v48 = vshrl.u32 %v2512_v56, 16 }
 0x2fb   : > { %2680 = vxpose.xlu1.c.b16.start.end [1/1] (short) (narrow) %v2546_v20, 16  ;;  %2616 = vxpose.xlu0.c.b16.start.end [1/1] (short) (narrow) %v2530_v21, 16  ;;  %v2382_v5 = vcombine.low %v2343_v43, %v2375_v26  ;;  %v2518_v2 = vcombine.low %v2479_v44, %v2511_v42  ;;  %v2550_v47 = vpack.i.b16 %v2549_v38, %v2548_v45  ;;  %v2556_v49 = vshrl.u32 %v2380_v16, 16 }
 0x2fc   : > { %v2557_v50 = vshrl.u32 %v2516_v17, 16  ;;  %v2526_v52 = vpack.i.b16 %v2525_v48, %v2524_v4  ;;  %v2383_v53 = vcombine.high %v2343_v43, %v2375_v26  ;;  %v2519_v63 = vcombine.high %v2479_v44, %v2511_v42 }
 0x2fd   : > { %v2570_v46 = vpack.i.b16 %v2518_v2, %v2382_v5  ;;  %v2564_v10 = vshrl.u32 %v2381_v41, 16  ;;  %v2565_v61 = vshrl.u32 %v2517_v32, 16  ;;  %v944_v62 = vrot.slane %v7018_v60, %v7182_v51 }
 0x2fe   : > { %v2558_v9 = vpack.i.b16 %v2557_v50, %v2556_v49  ;;  %v2578_v54 = vpack.i.b16 %v2519_v63, %v2383_v53  ;;  %v2572_v11 = vshrl.u32 %v2382_v5, 16  ;;  %v2573_v12 = vshrl.u32 %v2518_v2, 16 }
 0x2ff   : > { %2712 = vxpose.xlu1.c.b16.start.end [1/1] (short) (narrow) %v2554_v40, 16  ;;  %2632 = vxpose.xlu0.c.b16.start.end [1/1] (short) (narrow) %v2534_v34, 16  ;;  %v2566_v56 = vpack.i.b16 %v2565_v61, %v2564_v10  ;;  %v7187_v13 = vadd.f32 %v7024_v0, %v944_v62  ;;  %v2580_v15 = vshrl.u32 %v2383_v53, 16  ;;  %v2581_v16 = vshrl.u32 %v2519_v63, 16  ;;  %v1090_v0 = vpop.permute.xlu1 %1089 }
 0x300   : > { %v2574_v14 = vpack.i.b16 %v2573_v12, %v2572_v11  ;;  %v7194_v60 = vadd.f32 %v7026_v3, %v944_v62  ;;  %v1087_v3 = vpop.permute.xlu0 %1086  ;;  %v1108_v33 = vcombine.low %v7125_v28, %v7127_v29  ;;  %v1140_v39 = vcombine.low %v7131_v31, %v1090_v0 }
 0x301   : > { %v2582_v17 = vpack.i.b16 %v2581_v16, %v2580_v15  ;;  %v1124_v22 = vcombine.low %v7129_v30, %v1087_v3  ;;  %v1125_v25 = vcombine.high %v7129_v30, %v1087_v3  ;;  %v1109_v26 = vcombine.high %v7125_v28, %v7127_v29 }
 0x302   : > { %v1141_v42 = vcombine.high %v7131_v31, %v1090_v0  ;;  %v1092_v34 = vcombine.low %v7061_v7, %v7123_v27  ;;  %v1093_v30 = vcombine.high %v7061_v7, %v7123_v27  ;;  %v1116_v37 = vrot.slane %v1108_v33, %v7074_v23 }
 0x303   : > { %2744 = vxpose.xlu1.c.b16.start.end [1/1] (short) (narrow) %v2562_v6, 16  ;;  %2664 = vxpose.xlu0.c.b16.start.end [1/1] (short) (narrow) %v2542_v8, 16  ;;  %v1132_v32 = vrot.slane %v1124_v22, %v7074_v23  ;;  %v1139_v35 = vrot.slane %v1125_v25, %v7074_v23  ;;  %v1148_v43 = vrot.slane %v1140_v39, %v7074_v23 }
 0x304   : > { %v1123_v28 = vrot.slane %v1109_v26, %v7074_v23  ;;  %v1155_v29 = vrot.slane %v1141_v42, %v7074_v23  ;;  %v1100_v31 = vrot.slane %v1092_v34, %v7074_v23  ;;  %v1107_v8 = vrot.slane %v1093_v30, %v7074_v23 }
 0x305   : > { %v1188_v2 = vcombine.low %v1132_v32, %v1148_v43  ;;  %v1189_v6 = vcombine.high %v1132_v32, %v1148_v43 }
 0x306   : > { %v1204_v45 = vcombine.low %v1139_v35, %v1155_v29  ;;  %v1205_v7 = vcombine.high %v1139_v35, %v1155_v29  ;;  %v1156_v27 = vcombine.low %v1100_v31, %v1116_v37  ;;  %v1157_v38 = vcombine.high %v1100_v31, %v1116_v37 }
 0x307   : > { %2776 = vxpose.xlu1.c.b16.start.end [1/1] (short) (narrow) %v2570_v46, 16  ;;  %2696 = vxpose.xlu0.c.b16.start.end [1/1] (short) (narrow) %v2550_v47, 16  ;;  %v1172_v4 = vcombine.low %v1107_v8, %v1123_v28  ;;  %v1173_v48 = vcombine.high %v1107_v8, %v1123_v28  ;;  %v1196_v49 = vrot.slane %v1188_v2, %v7082_v36 }
 0x308   : > { %v1203_v50 = vrot.slane %v1189_v6, %v7082_v36  ;;  %v1219_v53 = vrot.slane %v1205_v7, %v7082_v36  ;;  %v1164_v63 = vrot.slane %v1156_v27, %v7082_v36 }
 0x309   : > { %v1180_v61 = vrot.slane %v1172_v4, %v7082_v36  ;;  %v1187_v62 = vrot.slane %v1173_v48, %v7082_v36 }
 0x30a   : > { %v1221_v11 = vcombine.high %v1164_v63, %v1196_v49 }
 0x30b   : > { %2600 = vxpose.xlu1.c.b16.start.end [1/1] (short) (narrow) %v2526_v52, 16  ;;  %2728 = vxpose.xlu0.c.b16.start.end [1/1] (short) (narrow) %v2558_v9, 16  ;;  %v1212_v52 = vrot.slane %v1204_v45, %v7082_v36  ;;  %v1171_v9 = vrot.slane %v1157_v38, %v7082_v36  ;;  %v1227_v0 = vcombine.high %v1187_v62, %v1219_v53 }
 0x30d   : > { %v1222_v12 = vcombine.low %v1171_v9, %v1203_v50  ;;  %v1224_v15 = vcombine.low %v1180_v61, %v1212_v52  ;;  %v1225_v16 = vcombine.high %v1180_v61, %v1212_v52 }
 0x30f   : > { %2808 = vxpose.xlu1.c.b16.start.end [1/1] (short) (narrow) %v2578_v54, 16  ;;  %2760 = vxpose.xlu0.c.b16.start.end [1/1] (short) (narrow) %v2566_v56, 16  ;;  %v1220_v56 = vcombine.low %v1164_v63, %v1196_v49  ;;  %v6283_v26 = vpack.c.bf16 %v1225_v16, %v1221_v11 }
 0x311   : > { %v6281_v33 = vpack.c.bf16 %v1224_v15, %v1220_v56  ;;  %v7274_v31 = vrot.slane %v6283_v26, %v7074_v23 }
 0x313   : > { %1570 = vrot.lane.b32.xlu1 %v7187_v13, %s6741_s5  ;;  %2792 = vxpose.xlu0.c.b16.start.end [1/1] (short) (narrow) %v2574_v14, 16  ;;  %v1223_v14 = vcombine.high %v1171_v9, %v1203_v50 }
 0x315   : > { %v6284_v42 = vpack.c.bf16 %v1227_v0, %v1223_v14 }
 0x317   : > { %1576 = vrot.lane.b32.xlu1 %v7187_v13, %s7958_s23  ;;  %2824 = vxpose.xlu0.c.b16.start.end [1/1] (short) (narrow) %v2582_v17, 16  ;;  %v1226_v17 = vcombine.low %v1187_v62, %v1219_v53 }
 0x319   : > { %v6282_v39 = vpack.c.bf16 %v1226_v17, %v1222_v12 }
 0x31b   : > { %1578 = vrot.lane.b32.xlu1 %v7194_v60, %s7958_s23  ;;  %v7271_v29 = vrot.slane %v6282_v39, %v7074_v23 }
 0x31f   : > { %1584 = vrot.lane.b32.xlu1 %v7194_v60, %s6743_s25 }
 0x320   : > { %1572 = vrot.lane.b32.xlu0 %v7194_v60, %s6741_s5 }
 0x323   : > { %1590 = vrot.lane.b32.xlu1 %v7194_v60, %s6745_s29 }
 0x324   : > { %1582 = vrot.lane.b32.xlu0 %v7187_v13, %s6743_s25 }
 0x327   : > { %1596 = vrot.lane.b32.xlu1 %v7194_v60, %s6742_s6 }
 0x328   : > { %1588 = vrot.lane.b32.xlu0 %v7187_v13, %s6745_s29 }
 0x32b   : > { %1602 = vrot.lane.b32.xlu1 %v7194_v60, %s6744_s27 }
 0x32c   : > { %1594 = vrot.lane.b32.xlu0 %v7187_v13, %s6742_s6 }
 0x32f   : > { %1608 = vrot.lane.b32.xlu1 %v7194_v60, %s6746_s30 }
 0x330   : > { %1600 = vrot.lane.b32.xlu0 %v7187_v13, %s6744_s27 }
 0x334   : > { %1606 = vrot.lane.b32.xlu0 %v7187_v13, %s6746_s30 }
 0x35d   : > { %v7220_v18 = vpop.trf.xlu1  ;;  %v7222_v19 = vpop.trf.xlu0 }
 0x35e   : > { %v2840_v37 = vcombine.low %v7222_v19, %v7220_v18 }
 0x361   : > { %v7224_v20 = vpop.trf.xlu1  ;;  %v7226_v21 = vpop.trf.xlu0 }
 0x362   : > { %v2848_v34 = vcombine.low %v7226_v21, %v7224_v20  ;;  %v7277_v20 = vrot.slane %v6284_v42, %v7074_v23 }
 0x364   : > { %v2855_v21 = vrot.slane %v2848_v34, %v7074_v23  ;;  %v1950_v7 = vcombine.low %v7274_v31, %v7277_v20 }
 0x365   : > { %v7233_v40 = vpop.trf.xlu1  ;;  %v7235_v41 = vpop.trf.xlu0 }
 0x366   : > { %v1958_v9 = vrot.slane %v1950_v7, %v7082_v36 }
 0x369   : > { %v2752_v44 = vpop.trf.xlu1  ;;  %v2672_v5 = vpop.trf.xlu0 }
 0x36d   : > { %v2784_v46 = vpop.trf.xlu1  ;;  %v2704_v47 = vpop.trf.xlu0 }
 0x36e   : > { %v2856_v32 = vcombine.low %v7233_v40, %v2784_v46  ;;  %v2916_v43 = vcombine.low %v7235_v41, %v2704_v47 }
 0x370   : > { %v2863_v18 = vrot.slane %v2856_v32, %v7074_v23  ;;  %v2923_v2 = vrot.slane %v2916_v43, %v7074_v23 }
 0x371   : > { %v2608_v10 = vpop.trf.xlu1  ;;  %v2736_v54 = vpop.trf.xlu0 }
 0x372   : > { %v2908_v30 = vcombine.low %v2608_v10, %v2672_v5  ;;  %v2847_v5 = vrot.slane %v2840_v37, %v7074_v23 }
 0x374   : > { %v2915_v19 = vrot.slane %v2908_v30, %v7074_v23  ;;  %v2872_v27 = vcombine.low %v2847_v5, %v2855_v21  ;;  %v2873_v53 = vcombine.high %v2847_v5, %v2855_v21 }
 0x375   : > { %v2816_v3 = vpop.trf.xlu1  ;;  %v2768_v22 = vpop.trf.xlu0 }
 0x376   : > { %v2864_v25 = vcombine.low %v2752_v44, %v2816_v3  ;;  %v7268_v44 = vrot.slane %v6281_v33, %v7074_v23  ;;  %v2940_v38 = vcombine.low %v2915_v19, %v2923_v2  ;;  %v2941_v4 = vcombine.high %v2915_v19, %v2923_v2 }
 0x377   : > { %v2880_v10 = vrot.slane %v2872_v27, %v7082_v36  ;;  %v2887_v0 = vrot.slane %v2873_v53, %v7082_v36 }
 0x378   : > { %v2871_v28 = vrot.slane %v2864_v25, %v7074_v23  ;;  %v1916_v45 = vcombine.low %v7268_v44, %v7271_v29  ;;  %v2948_v61 = vrot.slane %v2940_v38, %v7082_v36  ;;  %v2955_v11 = vrot.slane %v2941_v4, %v7082_v36 }
 0x379   : > { %v2800_v35 = vpop.trf.xlu0  ;;  %v1917_v34 = vcombine.high %v7268_v44, %v7271_v29  ;;  %v1972_v29 = vshrl.u32 %v1958_v9, 16 }
 0x37a   : > { %v2924_v40 = vcombine.low %v2736_v54, %v2800_v35  ;;  %v2888_v6 = vcombine.low %v2863_v18, %v2871_v28  ;;  %v2889_v48 = vcombine.high %v2863_v18, %v2871_v28  ;;  %v1924_v63 = vrot.slane %v1916_v45, %v7082_v36 }
 0x37b   : > { %v1951_v35 = vcombine.high %v7274_v31, %v7277_v20  ;;  %v1931_v31 = vrot.slane %v1917_v34, %v7082_v36 }
 0x37c   : > { %v2931_v46 = vrot.slane %v2924_v40, %v7074_v23  ;;  %v2896_v49 = vrot.slane %v2888_v6, %v7082_v36  ;;  %v2903_v12 = vrot.slane %v2889_v48, %v7082_v36  ;;  %v1932_v3 = vcombine.high %v1924_v63, %v6739_v24 }
 0x37d   : > { %v2832_v41 = vpop.trf.xlu0  ;;  %v1970_v37 = vpack.i.b16 %v1958_v9, %v1924_v63  ;;  %v1971_v44 = vshrl.u32 %v1924_v63, 16  ;;  %v1965_v20 = vrot.slane %v1951_v35, %v7082_v36  ;;  %v1933_v48 = vcombine.high %v1931_v31, %v6739_v24 }
 0x37e   : > { %v2932_v8 = vcombine.low %v2768_v22, %v2832_v41  ;;  %v2904_v14 = vcombine.low %v2880_v10, %v2896_v49  ;;  %v2905_v16 = vcombine.high %v2880_v10, %v2896_v49  ;;  %v1966_v22 = vcombine.high %v1958_v9, %v6739_v24 }
 0x37f   : > { %v2906_v30 = vcombine.low %v2887_v0, %v2903_v12  ;;  %v2907_v6 = vcombine.high %v2887_v0, %v2903_v12  ;;  %v1982_v45 = vpack.i.b16 %v1965_v20, %v1931_v31  ;;  %v1967_v49 = vcombine.high %v1965_v20, %v6739_v24 }
 0x380   : > { %v2939_v47 = vrot.slane %v2932_v8, %v7074_v23  ;;  %v2980_v32 = vshrl.u32 %v2904_v14, 16  ;;  %v1976_v43 = vpack.i.b16 %v1966_v22, %v1932_v3  ;;  %v2988_v2 = vshrl.u32 %v2905_v16, 16 }
 0x381   : > { %v1973_v8 = vpack.i.b16 %v1972_v29, %v1971_v44  ;;  %v1978_v4 = vshrl.u32 %v1966_v22, 16  ;;  %v2996_v53 = vshrl.u32 %v2906_v30, 16  ;;  %v1988_v9 = vpack.i.b16 %v1967_v49, %v1933_v48 }
 0x382   : > { %v2956_v50 = vcombine.low %v2931_v46, %v2939_v47  ;;  %v2957_v52 = vcombine.high %v2931_v46, %v2939_v47  ;;  %v1977_v47 = vshrl.u32 %v1932_v3, 16  ;;  %v1989_v34 = vshrl.u32 %v1933_v48, 16 }
 0x384   : > { %v2964_v62 = vrot.slane %v2956_v50, %v7082_v36  ;;  %v2971_v54 = vrot.slane %v2957_v52, %v7082_v36  ;;  %v1979_v63 = vpack.i.b16 %v1978_v4, %v1977_v47 }
 0x385   : > { %v7297_v56 = vpop.permute.xlu1 %1570 }
 0x386   : > { %v2972_v15 = vcombine.low %v2948_v61, %v2964_v62  ;;  %v2973_v17 = vcombine.high %v2948_v61, %v2964_v62  ;;  %v2974_v42 = vcombine.low %v2955_v11, %v2971_v54  ;;  %v2975_v40 = vcombine.high %v2955_v11, %v2971_v54 }
 0x387   : > { %v1983_v54 = vshrl.u32 %v1931_v31, 16  ;;  %v1984_v11 = vshrl.u32 %v1965_v20, 16 }
 0x388   : > { %v2978_v33 = vpack.i.b16 %v2972_v15, %v2904_v14  ;;  %v2986_v39 = vpack.i.b16 %v2973_v17, %v2905_v16  ;;  %v2981_v26 = vshrl.u32 %v2972_v15, 16  ;;  %v2994_v18 = vpack.i.b16 %v2974_v42, %v2906_v30 }
 0x389   : > { %v7304_v25 = vpop.permute.xlu1 %1576  ;;  %v2989_v19 = vshrl.u32 %v2973_v17, 16  ;;  %v3002_v27 = vpack.i.b16 %v2975_v40, %v2907_v6  ;;  %v2997_v50 = vshrl.u32 %v2974_v42, 16  ;;  %v3005_v12 = vshrl.u32 %v2975_v40, 16 }
 0x38a   : > { %6468 = vmatpush3.bf16.msra.mxu1 %v2978_v33  ;;  %6480 = vmatpush3.bf16.msra.mxu0 %v2986_v39  ;;  %v2982_v21 = vpack.i.b16 %v2981_v26, %v2980_v32  ;;  %v3004_v16 = vshrl.u32 %v2907_v6, 16  ;;  %v1612_v17 = vcombine.low %v7187_v13, %v7304_v25  ;;  %v1985_v3 = vpack.i.b16 %v1984_v11, %v1983_v54 }
 0x38b   : > { %6473 = vmatprep.subr.bf16.mxu1 %v6737_v1  ;;  %6491 = vmatprep.subr.bf16.mxu0 %v6737_v1  ;;  %v2990_v7 = vpack.i.b16 %v2989_v19, %v2988_v2  ;;  %v2998_v10 = vpack.i.b16 %v2997_v50, %v2996_v53  ;;  %v1990_v32 = vshrl.u32 %v1967_v49, 16 }
 0x38c   : > { %v3006_v22 = vpack.i.b16 %v3005_v12, %v3004_v16  ;;  %v1620_v30 = vrot.slane %v1612_v17, %v7074_v23 }
 0x38d   : > { %v7312_v28 = vpop.permute.xlu1 %1578  ;;  %6470 = vmatmul.mubr.msk.bf16.vlgmr.msra.gmra.mrb[8].mxu1 %vm3008_vm2, %v1970_v37  ;;  %6482 = vmatmul.mubr.msk.bf16.vlgmr.msra.gmra.mrb[4].mxu0 %vm3008_vm2, %v1976_v43  ;;  %v1991_v40 = vpack.i.b16 %v1990_v32, %v1989_v34 }
 0x38e   : > { %6474 = vmatpush3.bf16.msra.mxu1 %v2982_v21  ;;  %6492 = vmatpush3.bf16.msra.mxu0 %v2994_v18  ;;  %v1613_v21 = vcombine.high %v7187_v13, %v7304_v25  ;;  %v1748_v53 = vcombine.low %v7194_v60, %v7312_v28 }
 0x38f   : > { %6475 = vmatprep.mubr.msk.bf16.mxu1 %vm6738_vm0, %v6737_v1  ;;  %6485 = vmatprep.subr.bf16.mxu1 %v6737_v1 }
 0x390   : > { %6493 = vmatprep.mubr.msk.bf16.mxu0 %vm6738_vm0, %v6737_v1  ;;  %6503 = vmatprep.subr.bf16.mxu0 %v6737_v1  ;;  %v1627_v13 = vrot.slane %v1613_v21, %v7074_v23 }
 0x391   : > { %v7324_v41 = vpop.permute.xlu1 %1584 }
 0x392   : > { %v7326_v5 = vpop.permute.xlu0 %1572 }
 0x393   : > { %v1764_v47 = vcombine.low %v7326_v5, %v7324_v41 }
 0x395   : > { %6476 = vmatmul.mubr.msk.bf16.vlgmr.msra.gmra.mrb[12].mxu1 %vm3008_vm2, %v1973_v8  ;;  %6494 = vmatmul.mubr.msk.bf16.vlgmr.msra.gmra.mrb[8].mxu0 %vm3008_vm2, %v1982_v45  ;;  %v7330_v46 = vpop.permute.xlu1 %1590 }
 0x396   : > { %6486 = vmatpush3.bf16.msra.mxu1 %v2990_v7  ;;  %6504 = vmatpush3.bf16.msra.mxu0 %v3002_v27  ;;  %v1583_v38 = vpop.permute.xlu0 %1582 }
 0x397   : > { %6487 = vmatprep.mubr.msk.bf16.mxu1 %vm6738_vm0, %v6737_v1  ;;  %6497 = vmatprep.subr.bf16.mxu1 %v6737_v1  ;;  %v1628_v14 = vcombine.low %v7297_v56, %v1583_v38  ;;  %v1629_v35 = vcombine.high %v7297_v56, %v1583_v38 }
 0x398   : > { %6505 = vmatprep.mubr.msk.bf16.mxu0 %vm6738_vm0, %v6737_v1  ;;  %6515 = vmatprep.subr.bf16.mxu0 %v6737_v1 }
 0x399   : > { %v7340_v61 = vpop.permute.xlu1 %1596  ;;  %v1636_v33 = vrot.slane %v1628_v14, %v7074_v23  ;;  %v1643_v56 = vrot.slane %v1629_v35, %v7074_v23  ;;  %v1765_v35 = vcombine.high %v7326_v5, %v7324_v41 }
 0x39a   : > { %v1589_v52 = vpop.permute.xlu0 %1588 }
 0x39b   : > { %v1676_v18 = vcombine.low %v1620_v30, %v1636_v33  ;;  %v1677_v8 = vcombine.high %v1620_v30, %v1636_v33  ;;  %v1693_v17 = vcombine.high %v1627_v13, %v1643_v56  ;;  %v1779_v41 = vrot.slane %v1765_v35, %v7074_v23 }
 0x39d   : > { %6488 = vmatmul.mubr.msk.bf16.vlgmr.msra.gmra.mrb[16].mxu1 %vm3008_vm2, %v1979_v63  ;;  %6506 = vmatmul.mubr.msk.bf16.vlgmr.msra.gmra.mrb[12].mxu0 %vm3008_vm2, %v1988_v9  ;;  %v7352_v0 = vpop.permute.xlu1 %1602  ;;  %v1684_v25 = vrot.slane %v1676_v18, %v7082_v36  ;;  %v1691_v50 = vrot.slane %v1677_v8, %v7082_v36 }
 0x39e   : > { %6498 = vmatpush3.bf16.msra.mxu1 %v2998_v10  ;;  %v1595_v62 = vpop.permute.xlu0 %1594  ;;  %6499 = vmatprep.mubr.msk.bf16.mxu1 %vm6738_vm0, %v6737_v1  ;;  %v1780_v4 = vcombine.low %v7330_v46, %v7352_v0  ;;  %v1781_v30 = vcombine.high %v7330_v46, %v7352_v0 }
 0x39f   : > { %6509 = vmatprep.subr.bf16.mxu1 %v6737_v1  ;;  %6517 = vmatprep.mubr.msk.bf16.mxu0 %vm6738_vm0, %v6737_v1 }
 0x3a0   : > { %v1788_v14 = vrot.slane %v1780_v4, %v7074_v23  ;;  %v1795_v0 = vrot.slane %v1781_v30, %v7074_v23 }
 0x3a1   : > { %v1609_v44 = vpop.permute.xlu1 %1608 }
 0x3a2   : > { %v1601_v15 = vpop.permute.xlu0 %1600  ;;  %v1796_v45 = vcombine.low %v7340_v61, %v1609_v44 }
 0x3a3   : > { %v1644_v39 = vcombine.low %v1589_v52, %v1601_v15  ;;  %v1645_v26 = vcombine.high %v1589_v52, %v1601_v15  ;;  %v1692_v52 = vcombine.low %v1627_v13, %v1643_v56  ;;  %v1772_v15 = vrot.slane %v1764_v47, %v7074_v23 }
 0x3a4   : > { %v1804_v63 = vrot.slane %v1796_v45, %v7074_v23 }
 0x3a5   : > { %6500 = vmatmul.mubr.msk.bf16.vlgmr.msra.gmra.mrb[20].mxu1 %vm3008_vm2, %v1985_v3  ;;  %v1652_v29 = vrot.slane %v1644_v39, %v7074_v23  ;;  %v1659_v19 = vrot.slane %v1645_v26, %v7074_v23  ;;  %v1700_v16 = vrot.slane %v1692_v52, %v7082_v36  ;;  %v1756_v3 = vrot.slane %v1748_v53, %v7074_v23 }
 0x3a6   : > { %6510 = vmatpush3.bf16.msra.mxu1 %v3006_v22  ;;  %v1607_v42 = vpop.permute.xlu0 %1606  ;;  %6511 = vmatprep.mubr.msk.bf16.mxu1 %vm6738_vm0, %v6737_v1  ;;  %v1797_v22 = vcombine.high %v7340_v61, %v1609_v44  ;;  %v1844_v33 = vcombine.low %v1788_v14, %v1804_v63  ;;  %v1749_v61 = vcombine.high %v7194_v60, %v7312_v28 }
 0x3a7   : > { %v1660_v37 = vcombine.low %v1595_v62, %v1607_v42  ;;  %v1661_v43 = vcombine.high %v1595_v62, %v1607_v42  ;;  %6521 = vmatprep.subr.bf16.mxu1 %v6737_v1  ;;  %v1845_v18 = vcombine.high %v1788_v14, %v1804_v63 }
 0x3a8   : > { %v1811_v21 = vrot.slane %v1797_v22, %v7074_v23  ;;  %v1852_v44 = vrot.slane %v1844_v33, %v7082_v36  ;;  %v1763_v60 = vrot.slane %v1749_v61, %v7074_v23 }
 0x3a9   : > { %v1668_v31 = vrot.slane %v1660_v37, %v7074_v23  ;;  %v1675_v20 = vrot.slane %v1661_v43, %v7074_v23  ;;  %v1707_v37 = vrot.slane %v1693_v17, %v7082_v36  ;;  %v1812_v43 = vcombine.low %v1756_v3, %v1772_v15 }
 0x3aa   : > { %v1860_v28 = vcombine.low %v1795_v0, %v1811_v21  ;;  %v1861_v13 = vcombine.high %v1795_v0, %v1811_v21 }
 0x3ab   : > { %v1708_v2 = vcombine.low %v1652_v29, %v1668_v31  ;;  %v1709_v6 = vcombine.high %v1652_v29, %v1668_v31  ;;  %v1724_v7 = vcombine.low %v1659_v19, %v1675_v20  ;;  %v1725_v9 = vcombine.high %v1659_v19, %v1675_v20 }
 0x3ac   : > { %v1820_v5 = vrot.slane %v1812_v43, %v7082_v36  ;;  %v1813_v19 = vcombine.high %v1756_v3, %v1772_v15 }
 0x3ad   : > { %6512 = vmatmul.mubr.msk.bf16.vlgmr.msra.gmra.mrb[24].mxu1 %vm3008_vm2, %v1991_v40  ;;  %v1716_v27 = vrot.slane %v1708_v2, %v7082_v36  ;;  %v1723_v38 = vrot.slane %v1709_v6, %v7082_v36  ;;  %v1732_v10 = vrot.slane %v1724_v7, %v7082_v36  ;;  %v1739_v39 = vrot.slane %v1725_v9, %v7082_v36 }
 0x3ae   : > { %6523 = vmatprep.mubr.msk.bf16.mxu1 %vm6738_vm0, %v6737_v1  ;;  %v1859_v40 = vrot.slane %v1845_v18, %v7082_v36  ;;  %v1877_v6 = vcombine.high %v1820_v5, %v1852_v44  ;;  %v1876_v8 = vcombine.low %v1820_v5, %v1852_v44  ;;  %v1827_v45 = vrot.slane %v1813_v19, %v7082_v36 }
 0x3af   : > { %v1741_v48 = vcombine.high %v1684_v25, %v1716_v27  ;;  %v1740_v49 = vcombine.low %v1684_v25, %v1716_v27  ;;  %v1743_v11 = vcombine.high %v1691_v50, %v1723_v38  ;;  %v1742_v12 = vcombine.low %v1691_v50, %v1723_v38 }
 0x3b0   : > { %v1745_v34 = vcombine.high %v1700_v16, %v1732_v10  ;;  %v1744_v32 = vcombine.low %v1700_v16, %v1732_v10  ;;  %v1747_v20 = vcombine.high %v1707_v37, %v1739_v39  ;;  %v1746_v46 = vcombine.low %v1707_v37, %v1739_v39 }
 0x3b1   : > { %v1885_v62 = vpack.c.bf16 %v1741_v48, %v1741_v48  ;;  %v1884_v54 = vpack.c.bf16 %v1740_v49, %v1740_v49  ;;  %v1887_v26 = vpack.c.bf16 %v1743_v11, %v1743_v11  ;;  %v1886_v42 = vpack.c.bf16 %v1742_v12, %v1742_v12 }
 0x3b2   : > { %v1889_v29 = vpack.c.bf16 %v1745_v34, %v1745_v34  ;;  %v1888_v31 = vpack.c.bf16 %v1744_v32, %v1744_v32  ;;  %v1891_v56 = vpack.c.bf16 %v1747_v20, %v1747_v20  ;;  %v1890_v2 = vpack.c.bf16 %v1746_v46, %v1746_v46 }
 0x3b3   : > { %3465 = vxpose.xlu0.c.b16.start.end [1/1] (short) (narrow) %v1885_v62, 16  ;;  %3449 = vxpose.xlu1.c.b16.start.end [1/1] (short) (narrow) %v1884_v54, 16  ;;  %v1828_v7 = vcombine.low %v1763_v60, %v1779_v41  ;;  %v1868_v25 = vrot.slane %v1860_v28, %v7082_v36  ;;  %v1893_v27 = vpack.c.bf16 %v1877_v6, %v1877_v6 }
 0x3b4   : > { %v1892_v38 = vpack.c.bf16 %v1876_v8, %v1876_v8  ;;  %v1879_v47 = vcombine.high %v1827_v45, %v1859_v40  ;;  %v1878_v4 = vcombine.low %v1827_v45, %v1859_v40  ;;  %v1829_v49 = vcombine.high %v1763_v60, %v1779_v41 }
 0x3b5   : > { %v1836_v48 = vrot.slane %v1828_v7, %v7082_v36  ;;  %v1875_v50 = vrot.slane %v1861_v13, %v7082_v36 }
 0x3b6   : > { %v1895_v52 = vpack.c.bf16 %v1879_v47, %v1879_v47  ;;  %v1894_v53 = vpack.c.bf16 %v1878_v4, %v1878_v4  ;;  %v1843_v10 = vrot.slane %v1829_v49, %v7082_v36 }
 0x3b7   : > { %3497 = vxpose.xlu0.c.b16.start.end [1/1] (short) (narrow) %v1887_v26, 16  ;;  %3481 = vxpose.xlu1.c.b16.start.end [1/1] (short) (narrow) %v1886_v42, 16  ;;  %v1881_v63 = vcombine.high %v1836_v48, %v1868_v25  ;;  %v1880_v9 = vcombine.low %v1836_v48, %v1868_v25 }
 0x3b8   : > { %v1883_v11 = vcombine.high %v1843_v10, %v1875_v50  ;;  %v1882_v12 = vcombine.low %v1843_v10, %v1875_v50 }
 0x3b9   : > { %v1897_v62 = vpack.c.bf16 %v1881_v63, %v1881_v63  ;;  %v1896_v54 = vpack.c.bf16 %v1880_v9, %v1880_v9 }
 0x3ba   : > { %v1899_v14 = vpack.c.bf16 %v1883_v11, %v1883_v11  ;;  %v1898_v15 = vpack.c.bf16 %v1882_v12, %v1882_v12 }
 0x3bb   : > { %3529 = vxpose.xlu0.c.b16.start.end [1/1] (short) (narrow) %v1889_v29, 16  ;;  %3513 = vxpose.xlu1.c.b16.start.end [1/1] (short) (narrow) %v1888_v31, 16 }
 0x3bf   : > { %3561 = vxpose.xlu0.c.b16.start.end [1/1] (short) (narrow) %v1891_v56, 16  ;;  %3545 = vxpose.xlu1.c.b16.start.end [1/1] (short) (narrow) %v1890_v2, 16 }
 0x3c3   : > { %3593 = vxpose.xlu0.c.b16.start.end [1/1] (short) (narrow) %v1893_v27, 16  ;;  %3577 = vxpose.xlu1.c.b16.start.end [1/1] (short) (narrow) %v1892_v38, 16 }
 0x3c7   : > { %3625 = vxpose.xlu0.c.b16.start.end [1/1] (short) (narrow) %v1895_v52, 16  ;;  %3609 = vxpose.xlu1.c.b16.start.end [1/1] (short) (narrow) %v1894_v53, 16 }
 0x3cb   : > { %3657 = vxpose.xlu0.c.b16.start.end [1/1] (short) (narrow) %v1897_v62, 16  ;;  %3641 = vxpose.xlu1.c.b16.start.end [1/1] (short) (narrow) %v1896_v54, 16 }
 0x3cf   : > { %3689 = vxpose.xlu0.c.b16.start.end [1/1] (short) (narrow) %v1899_v14, 16  ;;  %3673 = vxpose.xlu1.c.b16.start.end [1/1] (short) (narrow) %v1898_v15, 16 }
 0x419   : > { %v3473_v16 = vpop.trf.xlu0  ;;  %v3457_v17 = vpop.trf.xlu1 }
 0x41d   : > { %v3505_v3 = vpop.trf.xlu0  ;;  %v3489_v22 = vpop.trf.xlu1 }
 0x421   : > { %v3537_v33 = vpop.trf.xlu0  ;;  %v3521_v39 = vpop.trf.xlu1 }
 0x422   : > { %v3842_v26 = vcombine.high %v3473_v16, %v3537_v33  ;;  %v3706_v42 = vcombine.high %v3457_v17, %v3521_v39  ;;  %v3841_v41 = vcombine.low %v3473_v16, %v3537_v33  ;;  %v3705_v28 = vcombine.low %v3457_v17, %v3521_v39 }
 0x424   : > { %v7411_v37 = vrot.slane %v3842_v26, %v7074_v23  ;;  %v7420_v21 = vrot.slane %v3706_v42, %v7074_v23  ;;  %v3849_v6 = vrot.slane %v3841_v41, %v7074_v23  ;;  %v3713_v48 = vrot.slane %v3705_v28, %v7074_v23 }
 0x425   : > { %v3569_v34 = vpop.trf.xlu0  ;;  %v3553_v32 = vpop.trf.xlu1 }
 0x426   : > { %v3858_v30 = vcombine.high %v3505_v3, %v3569_v34  ;;  %v3722_v35 = vcombine.high %v3489_v22, %v3553_v32  ;;  %v3857_v0 = vcombine.low %v3505_v3, %v3569_v34  ;;  %v3721_v5 = vcombine.low %v3489_v22, %v3553_v32 }
 0x428   : > { %v7414_v43 = vrot.slane %v3858_v30, %v7074_v23  ;;  %v7417_v61 = vrot.slane %v3722_v35, %v7074_v23  ;;  %v3865_v40 = vrot.slane %v3857_v0, %v7074_v23  ;;  %v3729_v8 = vrot.slane %v3721_v5, %v7074_v23 }
 0x429   : > { %v3601_v18 = vpop.trf.xlu0  ;;  %v3585_v44 = vpop.trf.xlu1 }
 0x42a   : > { %v3922_v29 = vcombine.high %v7411_v37, %v7414_v43  ;;  %v3786_v31 = vcombine.high %v7420_v21, %v7417_v61  ;;  %v3905_v49 = vcombine.low %v3849_v6, %v3865_v40  ;;  %v3769_v62 = vcombine.low %v3713_v48, %v3729_v8 }
 0x42b   : > { %v3906_v12 = vcombine.high %v3849_v6, %v3865_v40  ;;  %v3770_v17 = vcombine.high %v3713_v48, %v3729_v8 }
 0x42c   : > { %v3936_v39 = vrot.slane %v3922_v29, %v7082_v36  ;;  %v3913_v42 = vrot.slane %v3905_v49, %v7082_v36  ;;  %v3800_v32 = vrot.slane %v3786_v31, %v7082_v36  ;;  %v3777_v35 = vrot.slane %v3769_v62, %v7082_v36 }
 0x42d   : > { %v3633_v20 = vpop.trf.xlu0  ;;  %v3617_v46 = vpop.trf.xlu1  ;;  %v3784_v31 = vrot.slane %v3770_v17, %v7082_v36  ;;  %v3920_v28 = vrot.slane %v3906_v12, %v7082_v36 }
 0x431   : > { %v3665_v19 = vpop.trf.xlu0  ;;  %v3649_v60 = vpop.trf.xlu1 }
 0x432   : > { %v3873_v56 = vcombine.low %v3601_v18, %v3665_v19  ;;  %v3874_v2 = vcombine.high %v3601_v18, %v3665_v19  ;;  %v3737_v45 = vcombine.low %v3585_v44, %v3649_v60  ;;  %v3738_v7 = vcombine.high %v3585_v44, %v3649_v60 }
 0x434   : > { %v3881_v50 = vrot.slane %v3873_v56, %v7074_v23  ;;  %v3888_v52 = vrot.slane %v3874_v2, %v7074_v23  ;;  %v3745_v54 = vrot.slane %v3737_v45, %v7074_v23  ;;  %v3752_v11 = vrot.slane %v3738_v7, %v7074_v23 }
 0x435   : > { %v3697_v13 = vpop.trf.xlu0  ;;  %v3681_v25 = vpop.trf.xlu1 }
 0x436   : > { %v3889_v27 = vcombine.low %v3633_v20, %v3697_v13  ;;  %v3890_v38 = vcombine.high %v3633_v20, %v3697_v13  ;;  %v3753_v47 = vcombine.low %v3617_v46, %v3681_v25  ;;  %v3754_v4 = vcombine.high %v3617_v46, %v3681_v25 }
 0x438   : > { %v3897_v53 = vrot.slane %v3889_v27, %v7074_v23  ;;  %v3904_v63 = vrot.slane %v3890_v38, %v7074_v23  ;;  %v3761_v9 = vrot.slane %v3753_v47, %v7074_v23  ;;  %v3768_v10 = vrot.slane %v3754_v4, %v7074_v23 }
 0x439   : > { %v3921_v27 = vcombine.low %v7411_v37, %v7414_v43  ;;  %v3785_v38 = vcombine.low %v7420_v21, %v7417_v61 }
 0x43a   : > { %v3937_v14 = vcombine.low %v3881_v50, %v3897_v53  ;;  %v3938_v15 = vcombine.high %v3881_v50, %v3897_v53  ;;  %v3954_v16 = vcombine.high %v3888_v52, %v3904_v63  ;;  %v3801_v3 = vcombine.low %v3745_v54, %v3761_v9 }
 0x43b   : > { %v3802_v22 = vcombine.high %v3745_v54, %v3761_v9  ;;  %v3818_v33 = vcombine.high %v3752_v11, %v3768_v10  ;;  %v3953_v40 = vcombine.low %v3888_v52, %v3904_v63  ;;  %v3817_v56 = vcombine.low %v3752_v11, %v3768_v10 }
 0x43c   : > { %v3968_v26 = vrot.slane %v3954_v16, %v7082_v36  ;;  %v3945_v34 = vrot.slane %v3937_v14, %v7082_v36  ;;  %v3809_v18 = vrot.slane %v3801_v3, %v7082_v36  ;;  %v3952_v29 = vrot.slane %v3938_v15, %v7082_v36 }
 0x43d   : > { %v3832_v30 = vrot.slane %v3818_v33, %v7082_v36  ;;  %v3816_v46 = vrot.slane %v3802_v22, %v7082_v36  ;;  %v3961_v47 = vrot.slane %v3953_v40, %v7082_v36  ;;  %v3825_v4 = vrot.slane %v3817_v56, %v7082_v36 }
 0x43e   : > { %v7446_v44 = vcombine.low %v3936_v39, %v3968_v26  ;;  %v3969_v20 = vcombine.low %v3913_v42, %v3945_v34  ;;  %v3833_v41 = vcombine.low %v3777_v35, %v3809_v18  ;;  %v3834_v5 = vcombine.high %v3777_v35, %v3809_v18 }
 0x43f   : > { %v7450_v0 = vcombine.low %v3800_v32, %v3832_v30  ;;  %v3970_v19 = vcombine.high %v3913_v42, %v3945_v34  ;;  %v3971_v8 = vcombine.low %v3920_v28, %v3952_v29  ;;  %v3835_v25 = vcombine.low %v3784_v31, %v3816_v46 }
 0x440   : > { %v3982_v60 = vshrl.u32 %v3969_v20, 16  ;;  %v3979_v2 = vpack.i.b16 %v3969_v20, %v3833_v41  ;;  %v3981_v6 = vshrl.u32 %v3833_v41, 16  ;;  %v3989_v7 = vshrl.u32 %v3834_v5, 16 }
 0x441   : > { %v3990_v13 = vshrl.u32 %v3970_v19, 16  ;;  %v3987_v48 = vpack.i.b16 %v3970_v19, %v3834_v5  ;;  %v3998_v49 = vshrl.u32 %v3971_v8, 16  ;;  %v3836_v50 = vcombine.high %v3784_v31, %v3816_v46 }
 0x442   : > { %4041 = vxpose.xlu1.c.b16.start.end [1/1] (short) (narrow) %v3979_v2, 16  ;;  %v3983_v45 = vpack.i.b16 %v3982_v60, %v3981_v6  ;;  %v4029_v52 = vshrl.u32 %v7450_v0, 16  ;;  %v4030_v53 = vshrl.u32 %v7446_v44, 16  ;;  %v3997_v9 = vshrl.u32 %v3835_v25, 16 }
 0x443   : > { %v3991_v63 = vpack.i.b16 %v3990_v13, %v3989_v7  ;;  %v3972_v10 = vcombine.high %v3920_v28, %v3952_v29  ;;  %v4027_v37 = vpack.i.b16 %v7446_v44, %v7450_v0  ;;  %v7466_v61 = vcombine.high %v3800_v32, %v3832_v30 }
 0x444   : > { %4057 = vxpose.xlu0.c.b16.start.end [1/1] (short) (narrow) %v3983_v45, 16  ;;  %v7464_v43 = vpack.i.b16 %v4030_v53, %v4029_v52  ;;  %v7468_v21 = vcombine.high %v3936_v39, %v3968_v26  ;;  %v3929_v62 = vrot.slane %v3921_v27, %v7082_v36  ;;  %v3793_v54 = vrot.slane %v3785_v38, %v7082_v36 }
 0x445   : > { %v3995_v11 = vpack.i.b16 %v3971_v8, %v3835_v25  ;;  %v4005_v12 = vshrl.u32 %v3836_v50, 16  ;;  %v4037_v15 = vshrl.u32 %v7466_v61, 16  ;;  %v3999_v17 = vpack.i.b16 %v3998_v49, %v3997_v9 }
 0x446   : > { %4073 = vxpose.xlu1.c.b16.start.end [1/1] (short) (narrow) %v3987_v48, 16  ;;  %v4035_v14 = vpack.i.b16 %v7468_v21, %v7466_v61  ;;  %v4038_v16 = vshrl.u32 %v7468_v21, 16  ;;  %v4006_v3 = vshrl.u32 %v3972_v10, 16  ;;  %v3837_v22 = vcombine.low %v3793_v54, %v3825_v4 }
 0x447   : > { %v3973_v33 = vcombine.low %v3929_v62, %v3961_v47  ;;  %v4003_v26 = vpack.i.b16 %v3972_v10, %v3836_v50  ;;  %v3838_v42 = vcombine.high %v3793_v54, %v3825_v4  ;;  %v3974_v35 = vcombine.high %v3929_v62, %v3961_v47 }
 0x448   : > { %4089 = vxpose.xlu0.c.b16.start.end [1/1] (short) (narrow) %v3991_v63, 16  ;;  %v7476_v39 = vpack.i.b16 %v4038_v16, %v4037_v15  ;;  %v4007_v34 = vpack.i.b16 %v4006_v3, %v4005_v12  ;;  %v4013_v32 = vshrl.u32 %v3837_v22, 16 }
 0x449   : > { %v4014_v30 = vshrl.u32 %v3973_v33, 16  ;;  %v4011_v18 = vpack.i.b16 %v3973_v33, %v3837_v22  ;;  %v4021_v46 = vshrl.u32 %v3838_v42, 16  ;;  %v4022_v29 = vshrl.u32 %v3974_v35, 16 }
 0x44a   : > { %4105 = vxpose.xlu1.c.b16.start.end [1/1] (short) (narrow) %v3995_v11, 16 }
 0x44b   : > { %v4015_v20 = vpack.i.b16 %v4014_v30, %v4013_v32  ;;  %v4023_v41 = vpack.i.b16 %v4022_v29, %v4021_v46  ;;  %v4019_v30 = vpack.i.b16 %v3974_v35, %v3838_v42 }
 0x44c   : > { %4121 = vxpose.xlu0.c.b16.start.end [1/1] (short) (narrow) %v3999_v17, 16 }
 0x44e   : > { %4137 = vxpose.xlu1.c.b16.start.end [1/1] (short) (narrow) %v4003_v26, 16 }
 0x450   : > { %4153 = vxpose.xlu0.c.b16.start.end [1/1] (short) (narrow) %v4007_v34, 16 }
 0x452   : > { %4169 = vxpose.xlu1.c.b16.start.end [1/1] (short) (narrow) %v4011_v18, 16 }
 0x454   : > { %4185 = vxpose.xlu0.c.b16.start.end [1/1] (short) (narrow) %v4015_v20, 16 }
 0x458   : > { %4217 = vxpose.xlu0.c.b16.start.end [1/1] (short) (narrow) %v4023_v41, 16 }
 0x460   : > { %v7478_v5 = vpop.f32.mrb[8].mxu1  ;;  %v7480_v19 = vpop.f32.mrb[4].mxu0 }
 0x461   : > { %v6471_v60 = vpop.f32.mrb[9].mxu1  ;;  %v6483_v31 = vpop.f32.mrb[5].mxu0  ;;  %v3353_v28 = vsel %vm3008_vm2, %v7478_v5, -inf  ;;  %v3359_v8 = vsel %vm3008_vm2, %v7480_v19, -inf }
 0x462   : > { %v3135_v40 = vpop.f32.mrb[6].mxu0  ;;  %3354 = vmax.xlane.f32.xlu1 %v3353_v28  ;;  %v3049_v56 = vpop.f32.mrb[10].mxu1 }
 0x463   : > { %v6472_v2 = vpop.f32.mrb[11].mxu1  ;;  %v6484_v6 = vpop.f32.mrb[7].mxu0 }
 0x466   : > { %3360 = vmax.xlane.f32.xlu1 %v3359_v8 }
 0x468   : > { %v7486_v45 = vpop.f32.mrb[12].mxu1  ;;  %v7488_v7 = vpop.f32.mrb[8].mxu0 }
 0x469   : > { %v6477_v13 = vpop.f32.mrb[13].mxu1  ;;  %v6495_v25 = vpop.f32.mrb[9].mxu0  ;;  %v3356_v27 = vsel %vm3008_vm2, %v7486_v45, -inf  ;;  %v3365_v49 = vsel %vm3008_vm2, %v7488_v7, -inf }
 0x46a   : > { %v3221_v38 = vpop.f32.mrb[10].mxu0  ;;  %3357 = vmax.xlane.f32.xlu0 %v3356_v27  ;;  %v3092_v47 = vpop.f32.mrb[14].mxu1 }
 0x46b   : > { %v6478_v4 = vpop.f32.mrb[15].mxu1  ;;  %v6496_v48 = vpop.f32.mrb[11].mxu0 }
 0x46e   : > { %3366 = vmax.xlane.f32.xlu0 %v3365_v49 }
 0x470   : > { %v7494_v50 = vpop.f32.mrb[16].mxu1  ;;  %v7496_v52 = vpop.f32.mrb[12].mxu0 }
 0x471   : > { %v6489_v53 = vpop.f32.mrb[17].mxu1  ;;  %v6507_v63 = vpop.f32.mrb[13].mxu0  ;;  %v3362_v9 = vsel %vm3008_vm2, %v7494_v50, -inf  ;;  %v3371_v12 = vsel %vm3008_vm2, %v7496_v52, -inf }
 0x472   : > { %v3307_v10 = vpop.f32.mrb[14].mxu0  ;;  %3363 = vmax.xlane.f32.xlu0 %v3362_v9  ;;  %v3178_v62 = vpop.f32.mrb[18].mxu1 }
 0x473   : > { %v6490_v54 = vpop.f32.mrb[19].mxu1  ;;  %v6508_v11 = vpop.f32.mrb[15].mxu0 }
 0x476   : > { %3372 = vmax.xlane.f32.xlu0 %v3371_v12 }
 0x478   : > { %v7502_v15 = vpop.f32.mrb[20].mxu1 }
 0x479   : > { %v6501_v16 = vpop.f32.mrb[21].mxu1  ;;  %v3368_v18 = vsel %vm3008_vm2, %v7502_v15, -inf }
 0x47a   : > { %v3264_v17 = vpop.f32.mrb[22].mxu1 }
 0x47b   : > { %v6502_v3 = vpop.f32.mrb[23].mxu1 }
 0x480   : > { %v7504_v22 = vpop.f32.mrb[24].mxu1 }
 0x481   : > { %v6513_v33 = vpop.f32.mrb[25].mxu1  ;;  %v3374_v26 = vsel %vm3008_vm2, %v7504_v22, -inf }
 0x482   : > { %3375 = vmax.xlane.f32.xlu0 %v3374_v26  ;;  %v3350_v34 = vpop.f32.mrb[26].mxu1 }
 0x483   : > { %v6514_v32 = vpop.f32.mrb[27].mxu1 }
 0x493   : > { %4201 = vxpose.xlu1.c.b16.start.end [1/1] (short) (narrow) %v4019_v30, 16 }
 0x4a0   : > { %3369 = vmax.xlane.f32.xlu1 %v3368_v18 }
 0x4a8   : > { %v4049_v20 = vpop.trf.xlu1 }
 0x4aa   : > { %v4065_v46 = vpop.trf.xlu0 }
 0x4ac   : > { %v4081_v29 = vpop.trf.xlu1 }
 0x4ae   : > { %v4097_v41 = vpop.trf.xlu0 }
 0x4af   : > { %4249 = vxpose.xlu0.c.b16.start.end [1/1] (short) (narrow) %v7464_v43, 16 }
 0x4b0   : > { %v4113_v60 = vpop.trf.xlu1 }
 0x4b1   : > { %v4297_v31 = vcombine.low %v4049_v20, %v4113_v60 }
 0x4b2   : > { %v4129_v28 = vpop.trf.xlu0 }
 0x4b3   : > { %v4365_v40 = vcombine.low %v4065_v46, %v4129_v28  ;;  %v7512_v2 = vrot.slane %v4297_v31, %v7074_v23 }
 0x4b4   : > { %v4145_v56 = vpop.trf.xlu1 }
 0x4b5   : > { %v4305_v42 = vcombine.low %v4081_v29, %v4145_v56  ;;  %v7515_v6 = vrot.slane %v4365_v40, %v7074_v23 }
 0x4b6   : > { %v4161_v35 = vpop.trf.xlu0 }
 0x4b7   : > { %v7518_v8 = vrot.slane %v4305_v42, %v7074_v23  ;;  %v4373_v13 = vcombine.low %v4097_v41, %v4161_v35 }
 0x4b8   : > { %v7534_v4 = vpop.trf.xlu1 }
 0x4b9   : > { %v4329_v43 = vcombine.low %v7512_v2, %v7518_v8  ;;  %v4330_v25 = vcombine.high %v7512_v2, %v7518_v8  ;;  %v7525_v27 = vrot.slane %v4373_v13, %v7074_v23 }
 0x4ba   : > { %v7536_v48 = vpop.trf.xlu0 }
 0x4bb   : > { %v4397_v38 = vcombine.low %v7515_v6, %v7525_v27  ;;  %v4398_v47 = vcombine.high %v7515_v6, %v7525_v27 }
 0x4bd   : > { %v4412_v2 = vrot.slane %v4398_v47, %v7082_v36 }
 0x4be   : > { %v7539_v63 = vpop.trf.xlu0 }
 0x4cd   : > { %4233 = vxpose.xlu1.c.b16.start.end [1/1] (short) (narrow) %v4027_v37, 16 }
 0x4ef   : > { %v3355_v49 = vpop.xlane.xlu1 %3354 }
 0x4f0   : > { %v3377_v53 = vsub.f32 %v7478_v5, %v3355_v49 }
 0x4f2   : > { %v3385_v9 = vmul.f32 1.442695, %v3377_v53 }
 0x4f3   : > { %v3361_v10 = vpop.xlane.xlu1 %3360 }
 0x4f4   : > { %6693 = vpow2.f32 %v3385_v9  ;;  %v3379_v62 = vsub.f32 %v7480_v19, %v3361_v10 }
 0x4f6   : > { %v3389_v54 = vmul.f32 1.442695, %v3379_v62 }
 0x4f7   : > { %v3358_v11 = vpop.xlane.xlu0 %3357 }
 0x4f8   : > { %6695 = vpow2.f32 %v3389_v54  ;;  %v3378_v44 = vsub.f32 %v7486_v45, %v3358_v11 }
 0x4f9   : > { %v4209_v60 = vpop.trf.xlu1 }
 0x4fa   : > { %v3387_v0 = vmul.f32 1.442695, %v3378_v44 }
 0x4fb   : > { %v3367_v37 = vpop.xlane.xlu0 %3366 }
 0x4fc   : > { %6697 = vpow2.f32 %v3387_v0  ;;  %v3381_v12 = vsub.f32 %v7488_v7, %v3367_v37 }
 0x4fe   : > { %v6694_v16 = vpop.eup %6693  ;;  %v3393_v17 = vmul.f32 1.442695, %v3381_v12 }
 0x4ff   : > { %v3364_v5 = vpop.xlane.xlu0 %3363  ;;  %v3401_v3 = vsel %vm3008_vm2, %v6694_v16, 0.0 }
 0x500   : > { %6699 = vpow2.f32 %v3393_v17  ;;  %v3380_v33 = vsub.f32 %v7494_v50, %v3364_v5  ;;  %3402 = vadd.xlane.f32.xlu1 %v3401_v3 }
 0x502   : > { %v7546_v19 = vpop.eup %6695  ;;  %v3391_v26 = vmul.f32 1.442695, %v3380_v33 }
 0x503   : > { %v3373_v34 = vpop.xlane.xlu0 %3372  ;;  %v3407_v45 = vsel %vm3008_vm2, %v7546_v19, 0.0 }
 0x504   : > { %6701 = vpow2.f32 %v3391_v26  ;;  %v3383_v32 = vsub.f32 %v7496_v52, %v3373_v34  ;;  %3408 = vadd.xlane.f32.xlu1 %v3407_v45 }
 0x506   : > { %v6698_v7 = vpop.eup %6697  ;;  %v3397_v30 = vmul.f32 1.442695, %v3383_v32 }
 0x507   : > { %v3404_v18 = vsel %vm3008_vm2, %v6698_v7, 0.0 }
 0x508   : > { %6703 = vpow2.f32 %v3397_v30  ;;  %3405 = vadd.xlane.f32.xlu0 %v3404_v18 }
 0x50a   : > { %v7552_v20 = vpop.eup %6699 }
 0x50b   : > { %v3413_v50 = vsel %vm3008_vm2, %v7552_v20, 0.0 }
 0x50c   : > { %3414 = vadd.xlane.f32.xlu1 %v3413_v50 }
 0x50e   : > { %v7556_v46 = vpop.eup %6701 }
 0x50f   : > { %v3410_v29 = vsel %vm3008_vm2, %v7556_v46, 0.0  ;;  %v3376_v31 = vpop.xlane.xlu0 %3375 }
 0x510   : > { %3411 = vadd.xlane.f32.xlu0 %v3410_v29  ;;  %v3384_v28 = vsub.f32 %v7504_v22, %v3376_v31  ;;  %v4337_v31 = vrot.slane %v4329_v43, %v7082_v36 }
 0x512   : > { %v7560_v52 = vpop.eup %6703  ;;  %v3399_v42 = vmul.f32 1.442695, %v3384_v28 }
 0x513   : > { %v3419_v41 = vsel %vm3008_vm2, %v7560_v52, 0.0 }
 0x514   : > { %3420 = vadd.xlane.f32.xlu1 %v3419_v41 }
 0x515   : > { %v4257_v10 = vpop.trf.xlu0 }
 0x516   : > { %v4381_v18 = vcombine.low %v7536_v48, %v4257_v10  ;;  %v4405_v10 = vrot.slane %v4397_v38, %v7082_v36 }
 0x52d   : > { %v3370_v40 = vpop.xlane.xlu1 %3369 }
 0x52e   : > { %v3382_v56 = vsub.f32 %v7502_v15, %v3370_v40  ;;  %v4388_v40 = vrot.slane %v4381_v18, %v7074_v23 }
 0x530   : > { %v3395_v35 = vmul.f32 1.442695, %v3382_v56  ;;  %v4344_v56 = vrot.slane %v4330_v25, %v7082_v36 }
 0x532   : > { %6705 = vpow2.f32 %v3395_v35 }
 0x533   : > { %6707 = vpow2.f32 %v3399_v42  ;;  %v4241_v15 = vpop.trf.xlu1 }
 0x534   : > { %v4313_v33 = vcombine.low %v7534_v4, %v4241_v15 }
 0x536   : > { %v4320_v45 = vrot.slane %v4313_v33, %v7074_v23 }
 0x53c   : > { %v7566_v13 = vpop.eup %6705 }
 0x53d   : > { %v3416_v49 = vsel %vm3008_vm2, %v7566_v13, 0.0  ;;  %v7570_v53 = vpop.eup %6707 }
 0x53e   : > { %3417 = vadd.xlane.f32.xlu0 %v3416_v49  ;;  %v3422_v22 = vsel %vm3008_vm2, %v7570_v53, 0.0 }
 0x541   : > { %4265 = vxpose.xlu1.c.b16.start.end [1/1] (short) (narrow) %v4035_v14, 16 }
 0x542   : > { %3423 = vadd.xlane.f32.xlu0 %v3422_v22 }
 0x56f   : > { %4281 = vxpose.xlu0.c.b16.start.end [1/1] (short) (narrow) %v7476_v39, 16 }
 0x58d   : > { %v3403_v9 = vpop.xlane.xlu1 %3402 }
 0x58e   : > { %6709 = vrcp.f32 %v3403_v9 }
 0x591   : > { %v3409_v39 = vpop.xlane.xlu1 %3408 }
 0x595   : > { %v3406_v62 = vpop.xlane.xlu0 %3405 }
 0x596   : > { %6711 = vrcp.f32 %v3406_v62 }
 0x597   : > { %6713 = vrcp.f32 %v3409_v39 }
 0x598   : > { %v6710_v54 = vpop.eup %6709 }
 0x599   : > { %v3433_v11 = vmul.f32 %v6710_v54, %v6694_v16  ;;  %v3415_v12 = vpop.xlane.xlu1 %3414 }
 0x59b   : > { %v3441_v44 = vpack.c.bf16 %v3433_v11, %v3433_v11 }
 0x59d   : > { %v4461_v0 = vsel %vm3008_vm2, %v3441_v44, 0  ;;  %v3412_v3 = vpop.xlane.xlu0 %3411 }
 0x59e   : > { %6516 = vmatpush3.bf16.xpose.msra.mxu0 %v4461_v0  ;;  %6715 = vrcp.f32 %v3412_v3 }
 0x59f   : > { %6527 = vmatprep.subr.bf16.mxu0 %v6737_v1  ;;  %6717 = vrcp.f32 %v3415_v12 }
 0x5a0   : > { %v6712_v61 = vpop.eup %6711 }
 0x5a1   : > { %v3434_v21 = vmul.f32 %v6712_v61, %v6698_v7  ;;  %v3421_v17 = vpop.xlane.xlu1 %3420  ;;  %v6714_v50 = vpop.eup %6713 }
 0x5a3   : > { %v3442_v14 = vpack.c.bf16 %v3434_v21, %v3434_v21 }
 0x5a5   : > { %v4508_v37 = vsel %vm3008_vm2, %v3442_v14, 0 }
 0x5a6   : > { %6522 = vmatpush3.bf16.xpose.msra.mxu1 %v4508_v37 }
 0x5a7   : > { %6533 = vmatprep.subr.bf16.mxu1 %v6737_v1  ;;  %v4273_v5 = vpop.trf.xlu1 }
 0x5a8   : > { %v4321_v16 = vcombine.low %v4209_v60, %v4273_v5  ;;  %v6716_v60 = vpop.eup %6715 }
 0x5a9   : > { %v3436_v35 = vmul.f32 %v6716_v60, %v7556_v46  ;;  %v6718_v61 = vpop.eup %6717 }
 0x5aa   : > { %v4328_v34 = vrot.slane %v4321_v16, %v7074_v23 }
 0x5ab   : > { %v3444_v62 = vpack.c.bf16 %v3436_v35, %v3436_v35 }
 0x5ac   : > { %v4345_v32 = vcombine.low %v4320_v45, %v4328_v34  ;;  %v4346_v30 = vcombine.high %v4320_v45, %v4328_v34 }
 0x5ae   : > { %v4353_v29 = vrot.slane %v4345_v32, %v7082_v36  ;;  %v4360_v28 = vrot.slane %v4346_v30, %v7082_v36 }
 0x5b0   : > { %v4361_v42 = vcombine.low %v4337_v31, %v4353_v29  ;;  %v4362_v43 = vcombine.high %v4337_v31, %v4353_v29  ;;  %v7601_v15 = vcombine.low %v4344_v56, %v4360_v28  ;;  %v7603_v9 = vcombine.high %v4344_v56, %v4360_v28 }
 0x5b2   : > { %v4442_v21 = vshrl.u32 %v4362_v43, 16  ;;  %v4448_v38 = vshrl.u32 %v7601_v15, 16  ;;  %v4454_v14 = vshrl.u32 %v7603_v9, 16 }
 0x5cb   : > { %v3418_v26 = vpop.xlane.xlu0 %3417 }
 0x5cc   : > { %6719 = vrcp.f32 %v3418_v26  ;;  %v3437_v26 = vmul.f32 %v6718_v61, %v7552_v20 }
 0x5cd   : > { %6721 = vrcp.f32 %v3421_v17 }
 0x5ce   : > { %v3445_v20 = vpack.c.bf16 %v3437_v26, %v3437_v26 }
 0x5cf   : > { %v3424_v7 = vpop.xlane.xlu0 %3423 }
 0x5d0   : > { %6723 = vrcp.f32 %v3424_v7  ;;  %v4602_v7 = vsel %vm3008_vm2, %v3444_v62, 0 }
 0x5d5   : > { %v4289_v41 = vpop.trf.xlu0 }
 0x5d6   : > { %v4389_v4 = vcombine.low %v7539_v63, %v4289_v41  ;;  %v3435_v63 = vmul.f32 %v6714_v50, %v7546_v19  ;;  %v4436_v19 = vshrl.u32 %v4361_v42, 16  ;;  %v6720_v39 = vpop.eup %6719  ;;  %v4649_v41 = vsel %vm3008_vm2, %v3445_v20, 0 }
 0x5d7   : > { %v3438_v30 = vmul.f32 %v6720_v39, %v7566_v13  ;;  %v6722_v18 = vpop.eup %6721 }
 0x5d8   : > { %v4396_v48 = vrot.slane %v4389_v4, %v7074_v23  ;;  %v3443_v46 = vpack.c.bf16 %v3435_v63, %v3435_v63  ;;  %v3439_v60 = vmul.f32 %v6722_v18, %v7560_v52 }
 0x5d9   : > { %v3446_v50 = vpack.c.bf16 %v3438_v30, %v3438_v30 }
 0x5da   : > { %v4413_v49 = vcombine.low %v4388_v40, %v4396_v48  ;;  %v4414_v22 = vcombine.high %v4388_v40, %v4396_v48  ;;  %v4555_v16 = vsel %vm3008_vm2, %v3443_v46, 0  ;;  %v6724_v29 = vpop.eup %6723  ;;  %v3447_v31 = vpack.c.bf16 %v3439_v60, %v3439_v60 }
 0x5db   : > { %v4696_v13 = vsel %vm3008_vm2, %v3446_v50, 0  ;;  %v3440_v4 = vmul.f32 %v6724_v29, %v7570_v53 }
 0x5dc   : > { %v4421_v8 = vrot.slane %v4413_v49, %v7082_v36  ;;  %v4428_v25 = vrot.slane %v4414_v22, %v7082_v36  ;;  %v4743_v28 = vsel %vm3008_vm2, %v3447_v31, 0 }
 0x5dd   : > { %v3448_v52 = vpack.c.bf16 %v3440_v4, %v3440_v4 }
 0x5de   : > { %v4429_v54 = vcombine.low %v4405_v10, %v4421_v8  ;;  %v4430_v11 = vcombine.high %v4405_v10, %v4421_v8  ;;  %v4431_v44 = vcombine.low %v4412_v2, %v4428_v25  ;;  %v4432_v0 = vcombine.high %v4412_v2, %v4428_v25 }
 0x5df   : > { %v4790_v53 = vsel %vm3008_vm2, %v3448_v52, 0 }
 0x5e0   : > { %v4435_v6 = vpack.i.b16 %v4429_v54, %v4361_v42  ;;  %v4437_v27 = vshrl.u32 %v4429_v54, 16  ;;  %v4441_v47 = vpack.i.b16 %v4430_v11, %v4362_v43  ;;  %v4443_v37 = vshrl.u32 %v4430_v11, 16 }
 0x5e1   : > { %v4447_v12 = vpack.i.b16 %v4431_v44, %v7601_v15  ;;  %v4449_v17 = vshrl.u32 %v4431_v44, 16  ;;  %v4453_v5 = vpack.i.b16 %v4432_v0, %v7603_v9  ;;  %v4455_v3 = vshrl.u32 %v4432_v0, 16 }
 0x5e2   : > { %6518 = vmatmul.mubr.msk.bf16.vlgmr.msra.gmra.mrb[16].mxu0 %vm3008_vm2, %v4435_v6  ;;  %v4438_v33 = vpack.i.b16 %v4437_v27, %v4436_v19  ;;  %v4444_v34 = vpack.i.b16 %v4443_v37, %v4442_v21 }
 0x5e3   : > { %6528 = vmatpush3.bf16.xpose.msra.mxu0 %v4555_v16  ;;  %6529 = vmatprep.mubr.msk.bf16.mxu0 %vm6738_vm0, %v6737_v1  ;;  %v4450_v45 = vpack.i.b16 %v4449_v17, %v4448_v38  ;;  %v4456_v32 = vpack.i.b16 %v4455_v3, %v4454_v14  ;;  %v6643_v17 = vld [vmem:[%s7939_s8] sm:$0xff]  }
 0x5e4   : > { %6524 = vmatmul.mubr.msk.bf16.vlgmr.msra.gmra.mrb[28].mxu1 %vm3008_vm2, %v4438_v33  ;;  %6539 = vmatprep.subr.bf16.mxu0 %v6737_v1 }
 0x5e5   : > { %6534 = vmatpush3.bf16.xpose.msra.mxu1 %v4602_v7  ;;  %6535 = vmatprep.mubr.msk.bf16.mxu1 %vm6738_vm0, %v6737_v1 }
 0x5e6   : > { %6545 = vmatprep.subr.bf16.mxu1 %v6737_v1 }
 0x5ea   : > { %6530 = vmatmul.mubr.msk.bf16.vlgmr.msra.gmra.mrb[20].mxu0 %vm3008_vm2, %v4441_v47 }
 0x5eb   : > { %6540 = vmatpush3.bf16.xpose.msra.mxu0 %v4649_v41  ;;  %6541 = vmatprep.mubr.msk.bf16.mxu0 %vm6738_vm0, %v6737_v1 }
 0x5ec   : > { %6536 = vmatmul.mubr.msk.bf16.vlgmr.msra.gmra.mrb[32].mxu1 %vm3008_vm2, %v4444_v34  ;;  %6551 = vmatprep.subr.bf16.mxu0 %v6737_v1 }
 0x5ed   : > { %6546 = vmatpush3.bf16.xpose.msra.mxu1 %v4696_v13  ;;  %6547 = vmatprep.mubr.msk.bf16.mxu1 %vm6738_vm0, %v6737_v1 }
 0x5ee   : > { %6557 = vmatprep.subr.bf16.mxu1 %v6737_v1 }
 0x5f2   : > { %6542 = vmatmul.mubr.msk.bf16.vlgmr.msra.gmra.mrb[24].mxu0 %vm3008_vm2, %v4447_v12 }
 0x5f3   : > { %6552 = vmatpush3.bf16.xpose.msra.mxu0 %v4743_v28  ;;  %6553 = vmatprep.mubr.msk.bf16.mxu0 %vm6738_vm0, %v6737_v1  ;;  %v6645_v28 = vld [vmem:[%s7939_s8 + $0x10] sm:$0xff]  }
 0x5f4   : > { %6548 = vmatmul.mubr.msk.bf16.vlgmr.msra.gmra.mrb[36].mxu1 %vm3008_vm2, %v4450_v45  ;;  %6563 = vmatprep.subr.bf16.mxu0 %v6737_v1 }
 0x5f5   : > { %6558 = vmatpush3.bf16.xpose.msra.mxu1 %v4790_v53  ;;  %6559 = vmatprep.mubr.msk.bf16.mxu1 %vm6738_vm0, %v6737_v1 }
 0x5fa   : > { %6554 = vmatmul.mubr.msk.bf16.vlgmr.msra.gmra.mrb[28].mxu0 %vm3008_vm2, %v4453_v5  ;;  %v6644_v5 = vld [vmem:[%s7939_s8 + $0x8] sm:$0xff]  }
 0x5fb   : > { %6579 = vmatprep.mubr.msk.bf16.mxu0 %vm6738_vm0, %v6737_v1  ;;  %6564 = vmatpush3.bf16.msra.mxu0 %v6643_v17  ;;  %vm6184_vm0 = vcmask 23552  }
 0x5fc   : > { %6560 = vmatmul.mubr.msk.bf16.vlgmr.msra.gmra.mrb[40].mxu1 %vm3008_vm2, %v4456_v32  ;;  %6565 = vmatprep.subr.bf16.mxu0 %v6737_v1 }
 0x5fd   : > { %5682 = vmatprep.mubr.bf16.mxu1 %v6739_v24 }
 0x5ff   : > { %6566 = vmatpush3.bf16.msra.mxu0 %v6644_v5 }
 0x600   : > { %6567 = vmatprep.subr.bf16.mxu0 %v6737_v1 }
 0x603   : > { %6568 = vmatpush3.bf16.msra.mxu0 %v6645_v28 }
 0x604   : > { %6569 = vmatprep.subr.bf16.mxu0 %v6737_v1 }
 0x6b5   : > { %v4497_v40 = vpop.f32.mrb[16].mxu0 }
 0x6b6   : > { %4833 = vxpose.xlu1.b32.start [1/2] (short) (narrow) %v4497_v40, 8  ;;  %v6519_v48 = vpop.f32.mrb[17].mxu0 }
 0x6b7   : > { %v4500_v56 = vpop.f32.mrb[18].mxu0  ;;  %v4544_v42 = vpop.f32.mrb[28].mxu1 }
 0x6b8   : > { %v6520_v63 = vpop.f32.mrb[19].mxu0  ;;  %4865 = vxpose.xlu0.b32.start [1/2] (short) (narrow) %v4544_v42, 8  ;;  %v6525_v35 = vpop.f32.mrb[29].mxu1 }
 0x6b9   : > { %v4547_v49 = vpop.f32.mrb[30].mxu1 }
 0x6ba   : > { %4834 = vxpose.xlu1.b32.end [2/2] (short) (narrow) %v4500_v56, 8  ;;  %v6526_v22 = vpop.f32.mrb[31].mxu1 }
 0x6bc   : > { %4866 = vxpose.xlu0.b32.end [2/2] (short) (narrow) %v4547_v49, 8 }
 0x6bd   : > { %v4591_v43 = vpop.f32.mrb[20].mxu0 }
 0x6be   : > { %v6531_v15 = vpop.f32.mrb[21].mxu0 }
 0x6bf   : > { %v4594_v9 = vpop.f32.mrb[22].mxu0  ;;  %v4638_v10 = vpop.f32.mrb[32].mxu1  ;;  %v6646_v15 = vld [vmem:[%s7939_s8 + $0x18] sm:$0xff]  }
 0x6c0   : > { %v6532_v2 = vpop.f32.mrb[23].mxu0  ;;  %4897 = vxpose.xlu0.b32.start [1/2] (short) (narrow) %v4591_v43, 8  ;;  %4929 = vxpose.xlu1.b32.start [1/2] (short) (narrow) %v4638_v10, 8  ;;  %v6537_v8 = vpop.f32.mrb[33].mxu1 }
 0x6c1   : > { %v4641_v25 = vpop.f32.mrb[34].mxu1  ;;  %6570 = vmatpush3.bf16.msra.mxu0 %v6646_v15 }
 0x6c2   : > { %v6538_v19 = vpop.f32.mrb[35].mxu1  ;;  %6571 = vmatprep.subr.bf16.mxu0 %v6737_v1 }
 0x6c4   : > { %4898 = vxpose.xlu0.b32.end [2/2] (short) (narrow) %v4594_v9, 8  ;;  %4930 = vxpose.xlu1.b32.end [2/2] (short) (narrow) %v4641_v25, 8  ;;  %v6647_v25 = vld [vmem:[%s7939_s8 + $0x20] sm:$0xff]  }
 0x6c5   : > { %v4685_v46 = vpop.f32.mrb[24].mxu0  ;;  %6572 = vmatpush3.bf16.msra.mxu0 %v6647_v25 }
 0x6c6   : > { %v6543_v62 = vpop.f32.mrb[25].mxu0  ;;  %6573 = vmatprep.subr.bf16.mxu0 %v6737_v1 }
 0x6c7   : > { %v4688_v54 = vpop.f32.mrb[26].mxu0  ;;  %v4732_v11 = vpop.f32.mrb[36].mxu1 }
 0x6c8   : > { %v6544_v44 = vpop.f32.mrb[27].mxu0  ;;  %4961 = vxpose.xlu0.b32.start [1/2] (short) (narrow) %v4685_v46, 8  ;;  %4993 = vxpose.xlu1.b32.start [1/2] (short) (narrow) %v4732_v11, 8  ;;  %v6549_v0 = vpop.f32.mrb[37].mxu1 }
 0x6c9   : > { %v4735_v61 = vpop.f32.mrb[38].mxu1 }
 0x6ca   : > { %v6550_v21 = vpop.f32.mrb[39].mxu1 }
 0x6cc   : > { %4962 = vxpose.xlu0.b32.end [2/2] (short) (narrow) %v4688_v54, 8  ;;  %4994 = vxpose.xlu1.b32.end [2/2] (short) (narrow) %v4735_v61, 8 }
 0x6cd   : > { %v4779_v38 = vpop.f32.mrb[28].mxu0 }
 0x6ce   : > { %v6555_v14 = vpop.f32.mrb[29].mxu0 }
 0x6cf   : > { %v4782_v6 = vpop.f32.mrb[30].mxu0  ;;  %v4826_v27 = vpop.f32.mrb[40].mxu1 }
 0x6d0   : > { %v6556_v47 = vpop.f32.mrb[31].mxu0  ;;  %5025 = vxpose.xlu0.b32.start [1/2] (short) (narrow) %v4779_v38, 8  ;;  %5057 = vxpose.xlu1.b32.start [1/2] (short) (narrow) %v4826_v27, 8  ;;  %v6561_v37 = vpop.f32.mrb[41].mxu1 }
 0x6d1   : > { %v4829_v39 = vpop.f32.mrb[42].mxu1  ;;  %v6648_v47 = vld [vmem:[%s7939_s8 + $0x28] sm:$0xff]  }
 0x6d2   : > { %v6562_v12 = vpop.f32.mrb[43].mxu1  ;;  %6574 = vmatpush3.bf16.msra.mxu0 %v6648_v47  ;;  %v6653_v47 = vld [vmem:[%s7947_s16 + $0x4] ss:$8 sps:$4 sm:$0xff]  }
 0x6d3   : > { %6575 = vmatprep.subr.bf16.mxu0 %v6737_v1  ;;  %5650 = vmatprep.subr.bf16.mxu1 %v6653_v47 }
 0x6d4   : > { %5026 = vxpose.xlu0.b32.end [2/2] (short) (narrow) %v4782_v6, 8  ;;  %5058 = vxpose.xlu1.b32.end [2/2] (short) (narrow) %v4829_v39, 8 }
 0x6f2   : > { %6604 = vset.pattern.permute.xlu1 %v6739_v24 }
 0x6fd   : > { %6605 = vset.pattern.permute.xlu0 %v6739_v24 }
 0x736   : > { %v4849_v3 = vpop.trf.xlu1 }
 0x738   : > { %v4881_v16 = vpop.trf.xlu0 }
 0x740   : > { %v4913_v33 = vpop.trf.xlu0  ;;  %v4945_v26 = vpop.trf.xlu1 }
 0x741   : > { %v5089_v34 = vcombine.low %v4849_v3, %v4913_v33  ;;  %v5090_v45 = vcombine.high %v4849_v3, %v4913_v33  ;;  %v5105_v32 = vcombine.low %v4881_v16, %v4945_v26  ;;  %v5106_v7 = vcombine.high %v4881_v16, %v4945_v26 }
 0x743   : > { %v5097_v30 = vrot.slane %v5089_v34, %v7074_v23  ;;  %v5104_v20 = vrot.slane %v5090_v45, %v7074_v23  ;;  %v5113_v18 = vrot.slane %v5105_v32, %v7074_v23  ;;  %v5120_v50 = vrot.slane %v5106_v7, %v7074_v23  ;;  %v6649_v34 = vld [vmem:[%s7939_s8 + $0x30] sm:$0xff]  }
 0x744   : > { %6576 = vmatpush3.bf16.msra.mxu0 %v6649_v34  ;;  %v6663_v34 = vld [vmem:[%s7947_s16 + $0x40] ss:$8 sps:$4 sm:$0xff]  }
 0x745   : > { %v5153_v29 = vcombine.low %v5097_v30, %v5113_v18  ;;  %v5154_v41 = vcombine.high %v5097_v30, %v5113_v18  ;;  %v5169_v60 = vcombine.low %v5104_v20, %v5120_v50  ;;  %v5170_v24 = vcombine.high %v5104_v20, %v5120_v50  ;;  %6577 = vmatprep.subr.bf16.mxu0 %v6737_v1 }
 0x747   : > { %v5161_v13 = vrot.slane %v5153_v29, %v7082_v36  ;;  %v5168_v4 = vrot.slane %v5154_v41, %v7082_v36  ;;  %v5177_v31 = vrot.slane %v5169_v60, %v7082_v36  ;;  %v5184_v52 = vrot.slane %v5170_v24, %v7082_v36 }
 0x748   : > { %v4977_v42 = vpop.trf.xlu0  ;;  %v5009_v63 = vpop.trf.xlu1 }
 0x749   : > { %v6301_v53 = vcombine.low %v5161_v13, %v5168_v4  ;;  %v6303_v40 = vcombine.high %v5161_v13, %v5168_v4  ;;  %v6305_v48 = vcombine.low %v5177_v31, %v5184_v52  ;;  %v6307_v56 = vcombine.high %v5177_v31, %v5184_v52  ;;  %v6650_v4 = vld [vmem:[%s7939_s8 + $0x38] sm:$0xff]  }
 0x74a   : > { %6578 = vmatpush3.bf16.msra.mxu0 %v6650_v4  ;;  %v6680_v4 = vld [vmem:[%s7949_s18 + $0x10] sm:$0xff]  }
 0x74b   : > { %v5233_v35 = vrot.slane %v6301_v53, %v7074_v23  ;;  %v5249_v49 = vrot.slane %v6303_v40, %v7074_v23  ;;  %v5265_v22 = vrot.slane %v6305_v48, %v7074_v23  ;;  %v5281_v43 = vrot.slane %v6307_v56, %v7074_v23 }
 0x74d   : > { %v5289_v9 = vcombine.low %v5233_v35, %v5249_v49  ;;  %v5321_v10 = vcombine.low %v5265_v22, %v5281_v43  ;;  %v5290_v2 = vcombine.high %v5233_v35, %v5249_v49  ;;  %v5322_v8 = vcombine.high %v5265_v22, %v5281_v43 }
 0x74f   : > { %v7690_v19 = vrot.slane %v5289_v9, %v7082_v36  ;;  %v7693_v46 = vrot.slane %v5321_v10, %v7082_v36  ;;  %v5304_v62 = vrot.slane %v5290_v2, %v7082_v36  ;;  %v5336_v54 = vrot.slane %v5322_v8, %v7082_v36 }
 0x750   : > { %v5041_v11 = vpop.trf.xlu0  ;;  %v5073_v44 = vpop.trf.xlu1 }
 0x751   : > { %v5121_v0 = vcombine.low %v4977_v42, %v5041_v11  ;;  %v5122_v61 = vcombine.high %v4977_v42, %v5041_v11  ;;  %v5137_v21 = vcombine.low %v5009_v63, %v5073_v44  ;;  %v5138_v38 = vcombine.high %v5009_v63, %v5073_v44  ;;  %v6309_v44 = vld [vmem:[%s7940_s9] ss:$0 sm:$0xff] }
 0x752   : > { %v5354_v14 = vcombine.high %v7690_v19, %v7693_v46  ;;  %v5355_v6 = vcombine.low %v5304_v62, %v5336_v54  ;;  %v5353_v27 = vcombine.low %v7690_v19, %v7693_v46  ;;  %v5356_v5 = vcombine.high %v5304_v62, %v5336_v54 }
 0x753   : > { %v5129_v37 = vrot.slane %v5121_v0, %v7074_v23  ;;  %v5136_v39 = vrot.slane %v5122_v61, %v7074_v23  ;;  %v5145_v12 = vrot.slane %v5137_v21, %v7074_v23  ;;  %v5152_v17 = vrot.slane %v5138_v38, %v7074_v23 }
 0x754   : > { %5362 = vrot.lane.b32.xlu0 %v5354_v14, %s6746_s30  ;;  %5366 = vrot.lane.b32.xlu1 %v5355_v6, %s6744_s27 }
 0x755   : > { %v5185_v3 = vcombine.low %v5129_v37, %v5145_v12  ;;  %v5186_v16 = vcombine.high %v5129_v37, %v5145_v12  ;;  %v5201_v33 = vcombine.low %v5136_v39, %v5152_v17  ;;  %v5202_v26 = vcombine.high %v5136_v39, %v5152_v17  ;;  %v6656_v37 = vld [vmem:[%s7947_s16 + $0x14] ss:$8 sps:$4 sm:$0xff]   ;;  %v6659_v39 = vld [vmem:[%s7947_s16 + $0x24] ss:$8 sps:$4 sm:$0xff]   ;;  %v6657_v12 = vld [vmem:[%s7947_s16 + $0x20] ss:$8 sps:$4 sm:$0xff]  }
 0x757   : > { %v5193_v45 = vrot.slane %v5185_v3, %v7082_v36  ;;  %v5200_v32 = vrot.slane %v5186_v16, %v7082_v36  ;;  %v5209_v7 = vrot.slane %v5201_v33, %v7082_v36  ;;  %v5216_v30 = vrot.slane %v5202_v26, %v7082_v36  ;;  %v6662_v33 = vld [vmem:[%s7947_s16 + $0x34] ss:$8 sps:$4 sm:$0xff]   ;;  %v6660_v26 = vld [vmem:[%s7947_s16 + $0x30] ss:$8 sps:$4 sm:$0xff]  }
 0x758   : > { %5370 = vrot.lane.b32.xlu1 %v5356_v5, %s6742_s6  ;;  %s7973_s6 = smov 96  }
 0x759   : > { %v6302_v20 = vcombine.low %v5193_v45, %v5200_v32  ;;  %v6304_v18 = vcombine.high %v5193_v45, %v5200_v32  ;;  %v6306_v50 = vcombine.low %v5209_v7, %v5216_v30  ;;  %v6308_v29 = vcombine.high %v5209_v7, %v5216_v30  ;;  %v6665_v45 = vld [vmem:[%s7947_s16 + $0x44] ss:$8 sps:$4 sm:$0xff]   ;;  %v6668_v32 = vld [vmem:[%s7947_s16 + $0x54] ss:$8 sps:$4 sm:$0xff]   ;;  %v6666_v7 = vld [vmem:[%s7947_s16 + $0x50] ss:$8 sps:$4 sm:$0xff]  }
 0x75a   : > { %v6671_v30 = vld [vmem:[%s7947_s16 + $0x64] ss:$8 sps:$4 sm:$0xff]  }
 0x75b   : > { %v5240_v41 = vrot.slane %v6302_v20, %v7074_v23  ;;  %v5256_v60 = vrot.slane %v6304_v18, %v7074_v23  ;;  %v5272_v24 = vrot.slane %v6306_v50, %v7074_v23  ;;  %v5288_v13 = vrot.slane %v6308_v29, %v7074_v23  ;;  %v6669_v20 = vld [vmem:[%s7947_s16 + $0x60] ss:$8 sps:$4 sm:$0xff]   ;;  %v6674_v18 = vld [vmem:[%s7947_s16 + $0x74] ss:$8 sps:$4 sm:$0xff]  }
 0x75c   : > { %v6675_v50 = vld [vmem:[%s7949_s18 + $0x40] sm:$0xff]  }
 0x75d   : > { %v5305_v31 = vcombine.low %v5240_v41, %v5256_v60  ;;  %v5337_v52 = vcombine.low %v5272_v24, %v5288_v13  ;;  %v5306_v28 = vcombine.high %v5240_v41, %v5256_v60  ;;  %v5338_v53 = vcombine.high %v5272_v24, %v5288_v13  ;;  %v6676_v29 = vld [vmem:[%s7949_s18] sm:$0xff]   ;;  %v6677_v41 = vld [vmem:[%s7949_s18 + $0x48] sm:$0xff]   ;;  %6413 = vmatprep.subr.bf16.mxu0 %v6675_v50  ;;  %v6672_v60 = vld [vmem:[%s7947_s16 + $0x70] ss:$8 sps:$4 sm:$0xff]  }
 0x75e   : > { %v6678_v24 = vld [vmem:[%s7949_s18 + $0x8] sm:$0xff]   ;;  %v6679_v13 = vld [vmem:[%s7949_s18 + $0x50] sm:$0xff]  }
 0x75f   : > { %v5313_v40 = vrot.slane %v5305_v31, %v7082_v36  ;;  %v5345_v48 = vrot.slane %v5337_v52, %v7082_v36  ;;  %v5320_v63 = vrot.slane %v5306_v28, %v7082_v36  ;;  %v5352_v23 = vrot.slane %v5338_v53, %v7082_v36  ;;  %v6681_v31 = vld [vmem:[%s7949_s18 + $0x58] sm:$0xff]   ;;  %v6683_v28 = vld [vmem:[%s7949_s18 + $0x60] sm:$0xff]  }
 0x760   : > { %v6682_v52 = vld [vmem:[%s7949_s18 + $0x18] sm:$0xff]   ;;  %v6684_v53 = vld [vmem:[%s7949_s18 + $0x20] sm:$0xff]  }
 0x761   : > { %v5358_v56 = vcombine.high %v5313_v40, %v5345_v48  ;;  %v5357_v42 = vcombine.low %v5313_v40, %v5345_v48  ;;  %v5360_v1 = vcombine.high %v5320_v63, %v5352_v23  ;;  %v5359_v35 = vcombine.low %v5320_v63, %v5352_v23  ;;  %v6685_v40 = vld [vmem:[%s7949_s18 + $0x68] sm:$0xff]  }
 0x762   : > { %v6686_v48 = vld [vmem:[%s7949_s18 + $0x28] sm:$0xff]  }
 0x763   : > { %5378 = vrot.lane.b32.xlu0 %v5358_v56, %s6743_s25  ;;  %5374 = vrot.lane.b32.xlu1 %v5357_v42, %s6745_s29 }
 0x767   : > { %5386 = vrot.lane.b32.xlu0 %v5360_v1, %s6741_s5  ;;  %5382 = vrot.lane.b32.xlu1 %v5359_v35, %s7973_s6  ;;  %v6318_v1 = vld [vmem:[%s7943_s12] ss:$0 sm:$0xff]  ;;  %s681_s6 = scalar_lea.vmem %s7953_s22, %s7974_s26 }
 0x7c6   : > { %v5367_v49 = vpop.permute.xlu1 %5366  ;;  %v5363_v22 = vpop.permute.xlu0 %5362 }
 0x7c7   : > { %v5389_v43 = vsel %vm3008_vm2, %v5353_v27, %v5363_v22  ;;  %v6651_v27 = vld [vmem:[%s7947_s16] ss:$8 sps:$4 sm:$0xff]  }
 0x7c8   : > { %v5391_v9 = vsel %vm5390_vm3, %v5389_v43, %v5367_v49  ;;  %5651 = vmatpush1.bf16.msra.mxu1 %v6651_v27  ;;  %v6319_v49 = vld [vmem:[%s7944_s13] ss:$0 sm:$0xff] }
 0x7c9   : > { %5652 = vmatprep.subr.bf16.mxu1 %v6656_v37  ;;  %v6336_v27 = vld [vmem:[%s7950_s19] ss:$0 sm:$0xff] }
 0x7ca   : > { %v5371_v15 = vpop.permute.xlu1 %5370 }
 0x7cb   : > { %v5393_v10 = vsel %vm5392_vm4, %v5391_v9, %v5371_v15  ;;  %v6687_v9 = vld [vmem:[%s7949_s18 + $0x70] sm:$0xff]  }
 0x7d5   : > { %v5379_v36 = vpop.permute.xlu0 %5378  ;;  %v5375_v2 = vpop.permute.xlu1 %5374 }
 0x7d6   : > { %v5394_v8 = vsel %vm729_vm1, %v5393_v10, %v5375_v2  ;;  %v6688_v10 = vld [vmem:[%s7949_s18 + $0x30] sm:$0xff]   ;;  %v6690_v2 = vld [vmem:[%s7949_s18 + $0x38] sm:$0xff]  }
 0x7d7   : > { %v5396_v19 = vsel %vm5395_vm5, %v5394_v8, %v5379_v36  ;;  %v6689_v36 = vld [vmem:[%s7949_s18 + $0x78] sm:$0xff]   ;;  %v5558_v8 = vld [vmem:[%s7948_s17] sm:$0x3] }
 0x7d9   : > { %v5387_v25 = vpop.permute.xlu0 %5386  ;;  %v5383_v46 = vpop.permute.xlu1 %5382 }
 0x7da   : > { %v5398_v62 = vsel %vm5397_vm6, %v5396_v19, %v5383_v46  ;;  %v5567_v19 = vrot.slane %v5558_v8, %v7182_v51 }
 0x7db   : > { %v5400_v54 = vsel %vm5399_vm7, %v5398_v62, %v5387_v25  ;;  %v5563_v25 = vrot.slane %v5558_v8, %v7013_v59 }
 0x7dc   : > { %v5401_v11 = vpack.c.bf16 %v5400_v54, %v5400_v54 }
 0x7de   : > { %6580 = vmatmul.mubr.bf16.vlgmr.msra.gmra.mrb[32].mxu0 %v5401_v11 }
 0x7df   : > { %6414 = vmatpush3.bf16.msra.mxu0 %v6676_v29  ;;  %v6061_v29 = vsub.s32 4, %v7010_v58 }
 0x7e0   : > { %6415 = vmatprep.subr.bf16.mxu0 %v6677_v41 }
 0x7e3   : > { %6416 = vmatpush3.bf16.msra.mxu0 %v6678_v24 }
 0x7e4   : > { %6417 = vmatprep.subr.bf16.mxu0 %v6679_v13 }
 0x7e7   : > { %6418 = vmatpush3.bf16.msra.mxu0 %v6680_v4  ;;  %v6749_v4 = vmov 1966171168  }
 0x7e8   : > { %6419 = vmatprep.subr.bf16.mxu0 %v6681_v31  ;;  %v5901_v31 = vunpack.c.l.s4 %v6749_v4 }
 0x7eb   : > { %6420 = vmatpush3.bf16.msra.mxu0 %v6682_v52  ;;  %v5902_v52 = vunpack.c.0.s8 %v5901_v31 }
 0x7ec   : > { %6421 = vmatprep.subr.bf16.mxu0 %v6683_v28 }
 0x7ef   : > { %6422 = vmatpush3.bf16.msra.mxu0 %v6684_v53 }
 0x7f0   : > { %6423 = vmatprep.subr.bf16.mxu0 %v6685_v40  ;;  %v6354_v40 = vld [vmem:[%s7946_s15] ss:$0 sm:$0xff] }
 0x7f3   : > { %6424 = vmatpush3.bf16.msra.mxu0 %v6686_v48 }
 0x7f4   : > { %6425 = vmatprep.subr.bf16.mxu0 %v6687_v9 }
 0x7f7   : > { %6426 = vmatpush3.bf16.msra.mxu0 %v6688_v10 }
 0x7f8   : > { %6427 = vmatprep.subr.bf16.mxu0 %v6689_v36  ;;  %v5949_v36 = vld [vmem:[%s7951_s20 + $0x4] sm:$0x7] }
 0x7fb   : > { %6428 = vmatpush3.bf16.msra.mxu0 %v6690_v2  ;;  %v5950_v2 = vld [vmem:[%s7951_s20 + $0x8] sm:$0x7] }
 0x8b1   : > { %v5507_v0 = vpop.f32.mrb[32].mxu0 }
 0x8b2   : > { %v5508_v61 = vadd.f32 %v6309_v44, %v5507_v0  ;;  %v6581_v21 = vpop.f32.mrb[33].mxu0 }
 0x8b3   : > { %v5510_v38 = vpop.f32.mrb[34].mxu0 }
 0x8b4   : > { %v5513_v14 = vadd.f32 %v5508_v61, %v7003_v55  ;;  %v6582_v6 = vpop.f32.mrb[35].mxu0  ;;  %v6654_v55 = vld [vmem:[%s7947_s16 + $0x10] ss:$8 sps:$4 sm:$0xff]  }
 0x8b5   : > { %5653 = vmatpush1.bf16.msra.mxu1 %v6654_v55 }
 0x8b6   : > { %5516 = vadd.xlane.f32.xlu1 %v5513_v14  ;;  %5654 = vmatprep.subr.bf16.mxu1 %v6659_v39 }
 0x8b9   : > { %5655 = vmatpush1.bf16.msra.mxu1 %v6657_v12 }
 0x8ba   : > { %5656 = vmatprep.subr.bf16.mxu1 %v6662_v33 }
 0x8bd   : > { %5657 = vmatpush1.bf16.msra.mxu1 %v6660_v26  ;;  %v6068_v26 = vsub.s32 5, %v7010_v58 }
 0x8be   : > { %5658 = vmatprep.subr.bf16.mxu1 %v6665_v45 }
 0x8c1   : > { %5659 = vmatpush1.bf16.msra.mxu1 %v6663_v34 }
 0x8c2   : > { %5660 = vmatprep.subr.bf16.mxu1 %v6668_v32 }
 0x8c5   : > { %5661 = vmatpush1.bf16.msra.mxu1 %v6666_v7 }
 0x8c6   : > { %5662 = vmatprep.subr.bf16.mxu1 %v6671_v30 }
 0x8c9   : > { %5663 = vmatpush1.bf16.msra.mxu1 %v6669_v20 }
 0x8ca   : > { %5664 = vmatprep.subr.bf16.mxu1 %v6674_v18  ;;  %v6047_v18 = vsub.s32 2, %v7010_v58 }
 0x8cd   : > { %5665 = vmatpush1.bf16.msra.mxu1 %v6672_v60 }
 0x943   : > { %v5517_v17 = vpop.xlane.xlu1 %5516 }
 0x944   : > { %v5518_v5 = vmul.f32 0.0078125, %v5517_v17 }
 0x946   : > { %v5519_v3 = vsub.f32 %v5513_v14, %v5518_v5  ;;  %v7856_v5 = vld [vmem:[%s7952_s21] sm:$0xff] }
 0x947   : > { %v6069_v34 = vrot.slane %v7856_v5, %v6068_v26  ;;  %v6041_v20 = vrot.slane %v7856_v5, %v7182_v51  ;;  %v6048_v50 = vrot.slane %v7856_v5, %v6047_v18  ;;  %v6062_v41 = vrot.slane %v7856_v5, %v6061_v29  ;;  %v6353_v51 = vld [vmem:[%s7945_s14] ss:$0 sm:$0xff] }
 0x948   : > { %v5520_v16 = vmul.f32 %v5519_v3, %v5519_v3  ;;  %v6082_v29 = vsub.s32 7, %v7010_v58 }
 0x94a   : > { %5521 = vadd.xlane.f32.xlu0 %v5520_v16  ;;  %v6054_v16 = vsub.s32 3, %v7010_v58 }
 0x94c   : > { %v6055_v33 = vrot.slane %v7856_v5, %v6054_v16  ;;  %v5954_v16 = vld [vmem:[%s7951_s20 + $0x18] sm:$0x7] }
 0x9d7   : > { %v5522_v56 = vpop.xlane.xlu0 %5521 }
 0x9d8   : > { %v5523_v42 = vmul.f32 0.0078125, %v5522_v56  ;;  %v5905_v56 = vsub.s32 %v5902_v52, %v7010_v58 }
 0x9da   : > { %v5524_v63 = vadd.f32 1e-05, %v5523_v42 }
 0x9dc   : > { %6725 = vrsqrt.f32 %v5524_v63 }
 0x9e6   : > { %v6726_v23 = vpop.eup %6725 }
 0x9e7   : > { %v5526_v35 = vmul.f32 %v6726_v23, %v5519_v3  ;;  %v6034_v3 = vrot.slane %v7856_v5, %v7013_v59 }
 0x9e9   : > { %v5533_v22 = vmul.f32 %v6318_v1, %v5526_v35 }
 0x9eb   : > { %v5540_v43 = vadd.f32 %v6319_v49, %v5533_v22  ;;  %v5948_v22 = vld [vmem:[%s7951_s20] sm:$0x7] }
 0x9ed   : > { %v5541_v15 = vpack.c.bf16 %v5540_v43, %v5540_v43 }
 0x9ef   : > { %5683 = vmatmul.mubr.bf16.vlgmr.msra.gmra.mrb[44].mxu1 %v5541_v15 }
 0xac2   : > { %v5684_v46 = vpop.f32.mrb[44].mxu1 }
 0xac3   : > { %v5685_v62 = vadd.f32 %v5684_v46, %v5563_v25  ;;  %v5686_v54 = vpop.f32.mrb[45].mxu1 }
 0xac4   : > { %v5687_v11 = vadd.f32 %v5686_v54, %v5567_v19  ;;  %v5688_v44 = vpop.f32.mrb[46].mxu1  ;;  %v5951_v54 = vld [vmem:[%s7951_s20 + $0xc] sm:$0x7] }
 0xac5   : > { %v5691_v0 = vmax.f32 %v5685_v62, 0.0  ;;  %v5689_v61 = vpop.f32.mrb[47].mxu1 }
 0xac6   : > { %v5692_v21 = vmax.f32 %v5687_v11, 0.0 }
 0xac7   : > { %v5693_v14 = vpack.c.bf16 %v5691_v0, %v5691_v0 }
 0xac8   : > { %v5694_v38 = vpack.c.bf16 %v5692_v21, %v5692_v21 }
 0xaca   : > { %5862 = vmatprep.mubr.bf16.mxu0 %v5694_v38 }
 0xacb   : > { %5863 = vmatmul.mubr.bf16.vlgmr.msra.gmra.mrb[36].mxu0 %v5693_v14 }
 0xb9e   : > { %v6429_v6 = vpop.f32.mrb[36].mxu0 }
 0xb9f   : > { %v6430_v47 = vpop.f32.mrb[37].mxu0 }
 0xba0   : > { %v6431_v37 = vadd.f32 %v6430_v47, %v6429_v6  ;;  %v6432_v55 = vpop.f32.mrb[38].mxu0  ;;  %v5952_v6 = vld [vmem:[%s7951_s20 + $0x10] sm:$0x7] }
 0xba1   : > { %v6433_v39 = vpop.f32.mrb[39].mxu0 }
 0xba2   : > { %v5865_v12 = vadd.f32 %v6431_v37, %v6336_v27  ;;  %v5953_v39 = vld [vmem:[%s7951_s20 + $0x14] sm:$0x7] }
 0xba4   : > { %v5870_v17 = vadd.f32 %v5865_v12, %v5540_v43 }
 0xba6   : > { %5873 = vadd.xlane.f32.xlu0 %v5870_v17 }
 0xbbc   : > { %6036 = vbcast.lane.b32.xlu0 %v6034_v3, 256 }
 0xbc0   : > { %6057 = vbcast.lane.b32.xlu0 %v6055_v33, 256 }
 0xbc4   : > { %6071 = vbcast.lane.b32.xlu0 %v6069_v34, 256 }
 0xc33   : > { %v5874_v45 = vpop.xlane.xlu0 %5873 }
 0xc34   : > { %v5875_v32 = vmul.f32 0.0078125, %v5874_v45  ;;  %v5955_v45 = vld [vmem:[%s7951_s20 + $0x1c] sm:$0x7] }
 0xc36   : > { %v5876_v7 = vsub.f32 %v5870_v17, %v5875_v32 }
 0xc38   : > { %v5877_v30 = vmul.f32 %v5876_v7, %v5876_v7 }
 0xc3a   : > { %5878 = vadd.xlane.f32.xlu1 %v5877_v30 }
 0xc4b   : > { %6043 = vbcast.lane.b32.xlu1 %v6041_v20, 256 }
 0xc4f   : > { %6050 = vbcast.lane.b32.xlu1 %v6048_v50, 256 }
 0xc53   : > { %6064 = vbcast.lane.b32.xlu1 %v6062_v41, 256 }
 0xcc7   : > { %v5879_v60 = vpop.xlane.xlu1 %5878 }
 0xcc8   : > { %v5880_v24 = vmul.f32 0.0078125, %v5879_v60  ;;  %v6083_v60 = vrot.slane %v7856_v5, %v6082_v29 }
 0xcca   : > { %v5881_v13 = vadd.f32 1e-05, %v5880_v24  ;;  %v6037_v24 = vpop.permute.xlu0 %6036 }
 0xccc   : > { %6727 = vrsqrt.f32 %v5881_v13  ;;  %v6044_v13 = vpop.permute.xlu1 %6043 }
 0xcce   : > { %v6058_v4 = vpop.permute.xlu0 %6057 }
 0xcd0   : > { %v6051_v31 = vpop.permute.xlu1 %6050 }
 0xcd2   : > { %v6072_v52 = vpop.permute.xlu0 %6071 }
 0xcd6   : > { %v6728_v28 = vpop.eup %6727 }
 0xcd7   : > { %v5883_v53 = vmul.f32 %v6728_v28, %v5876_v7  ;;  %v6065_v28 = vpop.permute.xlu1 %6064 }
 0xcd9   : > { %v5890_v48 = vmul.f32 %v6353_v51, %v5883_v53 }
 0xcdb   : > { %v5897_v42 = vadd.f32 %v6354_v40, %v5890_v48 }
 0xcdd   : > { %v5906_v63 = vrot.slane %v5897_v42, %v5905_v56  ;;  %v5899_v23 = vcombine.high %v5897_v42, %v5897_v42 }
 0xcdf   : > { %v5922_v1 = vrot.slane %v5906_v63, %v5905_v56  ;;  %v5914_v35 = vcombine.high %v5906_v63, %v5906_v63  ;;  %v5913_v49 = vrot.slane %v5899_v23, %v5905_v56 }
 0xce1   : > { %v5959_v43 = vrot.slane %v5922_v1, %v7013_v59  ;;  %v5936_v15 = vrot.slane %v5914_v35, %v5905_v56  ;;  %v5944_v9 = vcombine.high %v5922_v1, %v5922_v1  ;;  %v5929_v10 = vrot.slane %v5913_v49, %v5905_v56 }
 0xce2   : > { %v5915_v8 = vcombine.high %v5913_v49, %v5913_v49 }
 0xce3   : > { %v5996_v25 = vmul.f32 %v5959_v43, %v5948_v22  ;;  %v5963_v19 = vrot.slane %v5936_v15, %v7013_v59  ;;  %v5967_v46 = vrot.slane %v5944_v9, %v7013_v59  ;;  %v5946_v62 = vcombine.high %v5936_v15, %v5936_v15 }
 0xce4   : > { %v5975_v11 = vrot.slane %v5929_v10, %v7013_v59  ;;  %v5943_v44 = vrot.slane %v5915_v8, %v5905_v56  ;;  %v5945_v0 = vcombine.high %v5929_v10, %v5929_v10  ;;  %v6136_v8 = vand.u32 127, %v937_v57 }
 0xce5   : > { %v6005_v61 = vsel %vm6004_vm8, %v5996_v25, 0.0  ;;  %v5997_v21 = vmul.f32 %v5963_v19, %v5949_v36  ;;  %v5998_v38 = vmul.f32 %v5967_v46, %v5950_v2  ;;  %v5971_v14 = vrot.slane %v5946_v62, %v7013_v59 }
 0xce6   : > { %6006 = vadd.xlane.f32.xlu0 %v6005_v61  ;;  %v5979_v37 = vrot.slane %v5943_v44, %v7013_v59  ;;  %v5947_v55 = vcombine.high %v5943_v44, %v5943_v44  ;;  %v6000_v17 = vmul.f32 %v5975_v11, %v5952_v6  ;;  %v5983_v3 = vrot.slane %v5945_v0, %v7013_v59 }
 0xce7   : > { %v6008_v27 = vsel %vm6004_vm8, %v5997_v21, 0.0  ;;  %v5999_v47 = vmul.f32 %v5971_v14, %v5951_v54  ;;  %v6011_v12 = vsel %vm6004_vm8, %v5998_v38, 0.0  ;;  %v6139_v46 = vsub.s32 %v6136_v8, %v7010_v58 }
 0xce8   : > { %6009 = vadd.xlane.f32.xlu1 %v6008_v27  ;;  %v6001_v26 = vmul.f32 %v5979_v37, %v5953_v39  ;;  %v5987_v34 = vrot.slane %v5947_v55, %v7013_v59  ;;  %v6017_v32 = vsel %vm6004_vm8, %v6000_v17, 0.0  ;;  %v6002_v7 = vmul.f32 %v5983_v3, %v5954_v16 }
 0xce9   : > { %v6014_v33 = vsel %vm6004_vm8, %v5999_v47, 0.0  ;;  %v6075_v59 = vsub.s32 6, %v7010_v58 }
 0xcea   : > { %6012 = vadd.xlane.f32.xlu0 %v6011_v12  ;;  %v6020_v30 = vsel %vm6004_vm8, %v6001_v26, 0.0  ;;  %v6003_v20 = vmul.f32 %v5987_v34, %v5955_v45  ;;  %v6023_v18 = vsel %vm6004_vm8, %v6002_v7, 0.0 }
 0xceb   : > { %v6076_v41 = vrot.slane %v7856_v5, %v6075_v59 }
 0xcec   : > { %6015 = vadd.xlane.f32.xlu1 %v6014_v33  ;;  %v6026_v50 = vsel %vm6004_vm8, %v6003_v20, 0.0 }
 0xcee   : > { %6018 = vadd.xlane.f32.xlu0 %v6017_v32 }
 0xcf0   : > { %6021 = vadd.xlane.f32.xlu1 %v6020_v30 }
 0xcf2   : > { %6024 = vadd.xlane.f32.xlu0 %v6023_v18 }
 0xcf4   : > { %6027 = vadd.xlane.f32.xlu1 %v6026_v50 }
 0xd05   : > { %6078 = vbcast.lane.b32.xlu1 %v6076_v41, 256 }
 0xd08   : > { %6085 = vbcast.lane.b32.xlu0 %v6083_v60, 256 }
 0xd73   : > { %v6007_v51 = vpop.xlane.xlu0 %6006 }
 0xd74   : > { %v6095_v53 = vadd.f32 %v6037_v24, %v6007_v51 }
 0xd75   : > { %v6010_v40 = vpop.xlane.xlu1 %6009 }
 0xd76   : > { %v6096_v48 = vadd.f32 %v6044_v13, %v6010_v40  ;;  %6112 = vperm.xlu1 %6604, %v6095_v53  }
 0xd77   : > { %v6013_v56 = vpop.xlane.xlu0 %6012 }
 0xd78   : > { %v6097_v42 = vadd.f32 %v6051_v31, %v6013_v56  ;;  %6115 = vperm.xlu0 %6605, %v6096_v48  }
 0xd79   : > { %v6016_v63 = vpop.xlane.xlu1 %6015 }
 0xd7a   : > { %6118 = vperm.xlu1 %6604, %v6097_v42   ;;  %v6098_v5 = vadd.f32 %v6058_v4, %v6016_v63 }
 0xd7b   : > { %v6019_v23 = vpop.xlane.xlu0 %6018 }
 0xd7c   : > { %v6099_v1 = vadd.f32 %v6065_v28, %v6019_v23 }
 0xd7d   : > { %v6022_v35 = vpop.xlane.xlu1 %6021 }
 0xd7e   : > { %6121 = vperm.xlu1 %6604, %v6098_v5   ;;  %6124 = vperm.xlu0 %6605, %v6099_v1   ;;  %v6100_v22 = vadd.f32 %v6072_v52, %v6022_v35 }
 0xd7f   : > { %v6025_v49 = vpop.xlane.xlu0 %6024 }
 0xd81   : > { %v6028_v43 = vpop.xlane.xlu1 %6027 }
 0xd82   : > { %6127 = vperm.xlu1 %6604, %v6100_v22  }
 0xd83   : > { %v6086_v15 = vpop.permute.xlu0 %6085 }
 0xd84   : > { %v6102_v9 = vadd.f32 %v6086_v15, %v6028_v43 }
 0xd85   : > { %v6079_v10 = vpop.permute.xlu1 %6078 }
 0xd86   : > { %v6101_v36 = vadd.f32 %v6079_v10, %v6025_v49  ;;  %6133 = vperm.xlu1 %6604, %v6102_v9  }
 0xd88   : > { %6130 = vperm.xlu0 %6605, %v6101_v36  }
 0xdf5   : > { %v6113_v2 = vpop.permute.xlu1 %6112 }
 0xdf6   : > { %v6140_v11 = vrot.slane %v6113_v2, %v6139_v46 }
 0xdf7   : > { %v6116_v19 = vpop.permute.xlu0 %6115 }
 0xdf8   : > { %v6144_v62 = vrot.slane %v6116_v19, %v6139_v46 }
 0xdf9   : > { %v6119_v25 = vpop.permute.xlu1 %6118 }
 0xdfa   : > { %v6148_v44 = vrot.slane %v6119_v25, %v6139_v46  ;;  %v6170_v0 = vsel %vm6169_vm9, %v6144_v62, %v6140_v11 }
 0xdfc   : > { %v6172_v14 = vsel %vm6171_vm10, %v6148_v44, %v6170_v0 }
 0xdfd   : > { %v6122_v54 = vpop.permute.xlu1 %6121  ;;  %v6125_v21 = vpop.permute.xlu0 %6124 }
 0xdfe   : > { %v6152_v61 = vrot.slane %v6122_v54, %v6139_v46  ;;  %v6156_v6 = vrot.slane %v6125_v21, %v6139_v46 }
 0xe00   : > { %v6174_v27 = vsel %vm6173_vm11, %v6152_v61, %v6172_v14 }
 0xe01   : > { %v6128_v38 = vpop.permute.xlu1 %6127  ;;  %v6176_v37 = vsel %vm6175_vm12, %v6156_v6, %v6174_v27 }
 0xe02   : > { %v6160_v57 = vrot.slane %v6128_v38, %v6139_v46 }
 0xe04   : > { %v6178_v39 = vsel %vm6177_vm13, %v6160_v57, %v6176_v37 }
 0xe05   : > { %v6134_v47 = vpop.permute.xlu1 %6133 }
 0xe06   : > { %v6168_v12 = vrot.slane %v6134_v47, %v6139_v46 }
 0xe07   : > { %v6131_v58 = vpop.permute.xlu0 %6130 }
 0xe08   : > { %v6164_v55 = vrot.slane %v6131_v58, %v6139_v46 }
 0xe0a   : > { %v6180_v17 = vsel %vm6179_vm14, %v6164_v55, %v6178_v39 }
 0xe0b   : > { %v6182_v3 = vsel %vm6181_vm15, %v6168_v12, %v6180_v17 }
 0xe0c   : > { %6185 = vst.msk [vmem:[%s681_s6] sm:$0xff] %vm6184_vm0, %v6182_v3 }
 0xe0d PF: > { %s32_s3 = sadd.s32 1, %s6735_s3  }
 0xe0e   : > { %p29_p4 = scmp.ge.s32.totalorder %s32_s3, 4  }
 0xe10   :  { %31 = sbr.rel (!%p29_p4) target bundleno = 8 (0x8), region = 138 }

</bundles_post_ra>
